<compile_context>
chip_gen: v6e
topology: v6e:2x2x1
jax: 0.10.0
libtpu: 0.0.40
codegen_flags: <defaults>
</compile_context>

<pallas_src>
import jax
import jax.numpy as jnp
from jax.experimental import pallas as pl
from jax.experimental.pallas import tpu as pltpu

EPS = 1e-5
BF16 = jnp.bfloat16
F32 = jnp.float32


# --------------------------- in-kernel helpers ---------------------------

def _stats_into(st_ref, y_f32):
    """Per-strip channel sums for BatchNorm: st[0]=sum, st[1]=sum of squares (f32)."""
    st_ref[0:1, :] = jnp.sum(y_f32, axis=0, keepdims=True)
    st_ref[1:2, :] = jnp.sum(y_f32 * y_f32, axis=0, keepdims=True)


# -------------------- pass 1: conv1 (wrapper im2col) + stats ----------------

def conv1_kernel(xc_ref, w_ref, y_ref, st_ref):
    # xc_ref: (BH, W, Kp) bf16 — wrapper-side im2col of x, zero-padded to Kp lanes
    # w_ref : (Kp, Cout)  bf16
    # y_ref : (BH, W, Cout) bf16 ;  st_ref: (2, Cout) f32
    bh, w, kp = xc_ref.shape
    cout = y_ref.shape[-1]
    y = jnp.dot(xc_ref[...].reshape(bh * w, kp), w_ref[...],
                preferred_element_type=jnp.float32)          # one MXU matmul, f32 acc
    y_ref[...] = y.reshape(bh, w, cout).astype(y_ref.dtype)  # lane-dense bf16 store
    _stats_into(st_ref, y)


# ------------------- pass 2: BN1+ReLU (folded) -> conv2 + stats -------------

def conv2_kernel(y1_ref, sc_ref, sh_ref, w_ref, y_ref, st_ref, apad_ref, pat_ref):
    # y1_ref : (H, W, C) bf16    full image, resident across the strip axis
    # sc/sh  : (1, C)   f32      folded BN1 scale / shift
    # w_ref  : (9*C, C) bf16
    # y_ref  : (BH, W, C) bf16 ; st_ref: (2, C) f32
    # apad_ref: (BH+2, W+2, C) bf16 ;  pat_ref: (BH, W, 9*C) bf16
    s = pl.program_id(1)
    n_s = pl.num_programs(1)
    _h, w, c = y1_ref.shape
    bh = y_ref.shape[0]
    scale = sc_ref[...]                      # (1, C) — broadcasts against (rows, W, C)
    shift = sh_ref[...]

    def bn_relu(rows_bf16):                  # BN1 + ReLU = one f32 FMA + max
        return jnp.maximum(rows_bf16.astype(jnp.float32) * scale + shift, 0.0)

    r0 = pl.multiple_of(s * bh, bh)

    # 1-px zero border on the W axis (re-written every step: scratch persists).
    zcol = jnp.zeros((bh + 2, 1, c), apad_ref.dtype)
    apad_ref[:, 0:1, :] = zcol
    apad_ref[:, w + 1:w + 2, :] = zcol

    # strip interior rows
    apad_ref[1:bh + 1, 1:w + 1, :] = bn_relu(y1_ref[pl.ds(r0, bh)]).astype(apad_ref.dtype)

    zrow = jnp.zeros((1, w, c), apad_ref.dtype)

    # 1-row top halo
    @pl.when(s == 0)
    def _():
        apad_ref[0:1, 1:w + 1, :] = zrow

    @pl.when(s > 0)
    def _():
        apad_ref[0:1, 1:w + 1, :] = bn_relu(
            y1_ref[pl.ds(r0 - 1, 1)]).astype(apad_ref.dtype)

    # 1-row bottom halo
    @pl.when(s == n_s - 1)
    def _():
        apad_ref[bh + 1:bh + 2, 1:w + 1, :] = zrow

    @pl.when(s < n_s - 1)
    def _():
        apad_ref[bh + 1:bh + 2, 1:w + 1, :] = bn_relu(
            y1_ref[pl.ds(r0 + bh, 1)]).astype(apad_ref.dtype)

    # 3-D im2col pack: one lane-aligned rectangular copy per tap, reshape ONCE.
    for t in range(9):                       # static unroll: 9 copies, 1 matmul
        ky, kx = t // 3, t % 3
        pat_ref[:, :, t * c:(t + 1) * c] = apad_ref[ky:ky + bh, kx:kx + w, :]

    y = jnp.dot(pat_ref[...].reshape(bh * w, 9 * c), w_ref[...],
                preferred_element_type=jnp.float32)
    y_ref[...] = y.reshape(bh, w, c).astype(y_ref.dtype)
    _stats_into(st_ref, y)


# --------------------------- pass 3: BN2 + ReLU ------------------------------

def bn_relu_kernel(y2_ref, sc_ref, sh_ref, out_ref):
    y = y2_ref[...].astype(jnp.float32)
    out_ref[...] = jnp.maximum(y * sc_ref[...] + sh_ref[...], 0.0)   # lane-dense store


# ------------------------------- wrapper ------------------------------------

def _fold_bn(st, gamma, beta, count):
    """Global batch sums (N,S,2,C) -> per-channel (scale, shift), all in f32."""
    s = jnp.sum(st, axis=(0, 1))                       # (2, C)
    mean = s[0] / count
    var = jnp.maximum(s[1] / count - mean * mean, 0.0)
    scale = gamma.reshape(-1) * jax.lax.rsqrt(var + EPS)
    shift = beta.reshape(-1) - mean * scale
    return scale.reshape(1, -1).astype(F32), shift.reshape(1, -1).astype(F32)


@jax.jit
def double_conv(x_nchw, params):
    """DoubleConv forward (training-mode BN). x: (N,Cin,H,W) f32 -> (N,Cout,H,W) f32."""
    N, Cin, H, W = x_nchw.shape
    Cout = params["w1"].shape[-1]
    nhw = float(N * H * W)

    BH = 8 if (H % 8 == 0 and H > 8) else H      # strip height (tune per generation)
    S = H // BH

    # ---- wrapper-side prep (tiny XLA ops) ----------------------------------
    x = jnp.transpose(x_nchw, (0, 2, 3, 1))      # NCHW -> NHWC (channels on lanes)

    # conv1 im2col in XLA (Cin tiny); zero-pad K to a 128-lane multiple so the
    # pass-1 block and matmul are fully lane-dense.
    K1 = 9 * Cin
    K1p = ((K1 + 127) // 128) * 128
    xp = jnp.pad(x, ((0, 0), (1, 1), (1, 1), (0, 0)))
    cols = [xp[:, ky:ky + H, kx:kx + W, :] for ky in range(3) for kx in range(3)]
    xcols = jnp.concatenate(cols, axis=-1)                       # (N,H,W,9*Cin)
    xcols = jnp.pad(xcols, ((0, 0), (0, 0), (0, 0), (0, K1p - K1))).astype(BF16)

    # (3,3,ci,co) -> (9*ci, co); row order (ky,kx,ci) matches the im2col packing.
    w1 = jnp.pad(params["w1"].reshape(K1, Cout), ((0, K1p - K1), (0, 0))).astype(BF16)
    w2 = params["w2"].reshape(9 * Cout, Cout).astype(BF16)

    cp = pltpu.CompilerParams(dimension_semantics=("parallel", "parallel"))

    # ---- pass 1: conv1 (one matmul per strip) + per-strip channel sums ------
    y1, st1 = pl.pallas_call(
        conv1_kernel,
        grid=(N, S),
        in_specs=[pl.BlockSpec((None, BH, W, K1p), lambda n, s: (n, s, 0, 0)),
                  pl.BlockSpec((K1p, Cout), lambda n, s: (0, 0))],
        out_specs=(pl.BlockSpec((None, BH, W, Cout), lambda n, s: (n, s, 0, 0)),
                   pl.BlockSpec((None, None, 2, Cout), lambda n, s: (n, s, 0, 0))),
        out_shape=(jax.ShapeDtypeStruct((N, H, W, Cout), BF16),
                   jax.ShapeDtypeStruct((N, S, 2, Cout), F32)),
        compiler_params=cp,
    )(xcols, w1)

    scale1, shift1 = _fold_bn(st1, params["g1"], params["b1"], nhw)

    # ---- pass 2: BN1+ReLU folded FMA, conv2 (one matmul per strip) + sums ---
    y2, st2 = pl.pallas_call(
        conv2_kernel,
        grid=(N, S),
        in_specs=[pl.BlockSpec((None, H, W, Cout), lambda n, s: (n, 0, 0, 0)),
                  pl.BlockSpec((1, Cout), lambda n, s: (0, 0)),
                  pl.BlockSpec((1, Cout), lambda n, s: (0, 0)),
                  pl.BlockSpec((9 * Cout, Cout), lambda n, s: (0, 0))],
        out_specs=(pl.BlockSpec((None, BH, W, Cout), lambda n, s: (n, s, 0, 0)),
                   pl.BlockSpec((None, None, 2, Cout), lambda n, s: (n, s, 0, 0))),
        out_shape=(jax.ShapeDtypeStruct((N, H, W, Cout), BF16),
                   jax.ShapeDtypeStruct((N, S, 2, Cout), F32)),
        scratch_shapes=[pltpu.VMEM((BH + 2, W + 2, Cout), BF16),
                        pltpu.VMEM((BH, W, 9 * Cout), BF16)],
        compiler_params=cp,
    )(y1, scale1, shift1, w2)

    scale2, shift2 = _fold_bn(st2, params["g2"], params["b2"], nhw)

    # ---- pass 3: BN2+ReLU, lane-dense f32 output -----------------------------
    out = pl.pallas_call(
        bn_relu_kernel,
        grid=(N, S),
        in_specs=[pl.BlockSpec((None, BH, W, Cout), lambda n, s: (n, s, 0, 0)),
                  pl.BlockSpec((1, Cout), lambda n, s: (0, 0)),
                  pl.BlockSpec((1, Cout), lambda n, s: (0, 0))],
        out_specs=pl.BlockSpec((None, BH, W, Cout), lambda n, s: (n, s, 0, 0)),
        out_shape=jax.ShapeDtypeStruct((N, H, W, Cout), F32),
        compiler_params=cp,
    )(y2, scale2, shift2)

    return jnp.transpose(out, (0, 3, 1, 2))      # NHWC -> NCHW


# ------------------------------ reference ------------------------------------

def reference(x, p):
    """Pure-JAX NCHW reference of the PyTorch forward (training-mode BN, with bias)."""
    def conv(x, w, b):
        y = jax.lax.conv_general_dilated(
            x, w, (1, 1), ((1, 1), (1, 1)),
            dimension_numbers=("NCHW", "HWIO", "NCHW"),
            precision=jax.lax.Precision.HIGHEST)
        return y + b.reshape(1, -1, 1, 1)

    def bn_relu(y, g, beta):
        mean = jnp.mean(y, axis=(0, 2, 3), keepdims=True)
        var = jnp.mean((y - mean) ** 2, axis=(0, 2, 3), keepdims=True)
        yhat = (y - mean) * jax.lax.rsqrt(var + EPS)
        return jnp.maximum(yhat * g.reshape(1, -1, 1, 1)
                           + beta.reshape(1, -1, 1, 1), 0.0)

    y = bn_relu(conv(x, p["w1"], p["bc1"]), p["g1"], p["b1"])
    return bn_relu(conv(y, p["w2"], p["bc2"]), p["g2"], p["b2"])


if __name__ == "__main__":
    key = jax.random.PRNGKey(0)
    # Cout=128 keeps every channel axis lane-dense; typical UNet DoubleConv width.
    N, Cin, Cout, H, W = 2, 4, 128, 16, 16
    ks = jax.random.split(key, 8)

    x = jax.random.normal(ks[0], (N, Cin, H, W), jnp.float32)

    def conv_init(k, cin, cout):
        kw, kb = jax.random.split(k)
        bound = 1.0 / (cin * 9) ** 0.5
        w = jax.random.uniform(kw, (3, 3, cin, cout), jnp.float32, -bound, bound)
        b = jax.random.uniform(kb, (cout,), jnp.float32, -bound, bound)
        return w, b

    w1, bc1 = conv_init(ks[1], Cin, Cout)
    w2, bc2 = conv_init(ks[2], Cout, Cout)
    params = {
        # bc1 / bc2 are only consumed by the reference: training-mode BN cancels them.
        "w1": w1, "bc1": bc1,
        "g1": jax.random.uniform(ks[3], (1, Cout), jnp.float32, 0.5, 1.5),
        "b1": 0.1 * jax.random.normal(ks[4], (1, Cout), jnp.float32),
        "w2": w2, "bc2": bc2,
        "g2": jax.random.uniform(ks[5], (1, Cout), jnp.float32, 0.5, 1.5),
        "b2": 0.1 * jax.random.normal(ks[6], (1, Cout), jnp.float32),
    }

    out = jax.block_until_ready(double_conv(x, params))
    ref = jax.block_until_ready(reference(x, params))

    assert out.shape == (N, Cout, H, W), out.shape
    err = float(jnp.max(jnp.abs(out - ref)))
    # Headroom for intentional bf16 operand storage (f32 MXU acc) vs HIGHEST ref.
    assert err < 5e-2, f"max abs error {err}"
    print("KERNEL_OK")
</pallas_src>

<mosaic_0001>
module attributes {stable_mosaic.version = 11 : i64} {
  func.func @conv1_kernel(%arg0: i32, %arg1: i32, %arg2: memref<1x8x16x128xbf16, #tpu.memory_space<vmem>>, %arg3: memref<128x128xbf16, #tpu.memory_space<vmem>>, %arg4: memref<1x8x16x128xbf16, #tpu.memory_space<vmem>>, %arg5: memref<1x1x2x128xf32, #tpu.memory_space<vmem>>) attributes {dimension_semantics = [#tpu.dimension_semantics<parallel>, #tpu.dimension_semantics<parallel>], iteration_bounds = array<i64: 2, 2>, scalar_prefetch = 0 : i64, scratch_operands = 0 : i64, tpu.core_type = #tpu.core_type<tc>, window_params = [{transform_indices = @transform_0, window_bounds = array<i64: 1, 8, 16, 128>}, {pipeline_mode = #tpu.pipeline_mode<synchronous>, transform_indices = @transform_1, window_bounds = array<i64: 128, 128>}, {transform_indices = @transform_2, window_bounds = array<i64: 1, 8, 16, 128>}, {transform_indices = @transform_3, window_bounds = array<i64: 1, 1, 2, 128>}]} {
    %c0 = arith.constant 0 : index
    %c0_0 = arith.constant 0 : index
    %c0_1 = arith.constant 0 : index
    %c0_2 = arith.constant 0 : index
    %0 = vector.load %arg2[%c0, %c0_0, %c0_1, %c0_2] : memref<1x8x16x128xbf16, #tpu.memory_space<vmem>>, vector<1x8x16x128xbf16>
    %1 = vector.shape_cast %0 : vector<1x8x16x128xbf16> to vector<8x16x128xbf16>
    %2 = vector.shape_cast %1 : vector<8x16x128xbf16> to vector<128x128xbf16>
    %c0_3 = arith.constant 0 : index
    %c0_4 = arith.constant 0 : index
    %3 = vector.load %arg3[%c0_3, %c0_4] : memref<128x128xbf16, #tpu.memory_space<vmem>>, vector<128x128xbf16>
    %cst = arith.constant dense<0.000000e+00> : vector<128x128xf32>
    %4 = tpu.matmul %2, %3, %cst {dimension_numbers = #tpu.dot_dimension_numbers<[1], [0], [0], [1], [0, 0, 1, 1], [], []>} : vector<128x128xbf16>, vector<128x128xbf16>, vector<128x128xf32> -> vector<128x128xf32>
    %5 = vector.shape_cast %4 : vector<128x128xf32> to vector<8x16x128xf32>
    %6 = arith.truncf %5 : vector<8x16x128xf32> to vector<8x16x128xbf16>
    %c0_5 = arith.constant 0 : index
    %c0_6 = arith.constant 0 : index
    %c0_7 = arith.constant 0 : index
    %c0_8 = arith.constant 0 : index
    %7 = vector.load %arg4[%c0_5, %c0_6, %c0_7, %c0_8] : memref<1x8x16x128xbf16, #tpu.memory_space<vmem>>, vector<1x8x16x128xbf16>
    %8 = vector.shape_cast %7 : vector<1x8x16x128xbf16> to vector<8x16x128xbf16>
    %9 = vector.shape_cast %6 : vector<8x16x128xbf16> to vector<1x8x16x128xbf16>
    tpu.vector_store %arg4[%c0_5, %c0_6, %c0_7, %c0_8], %9 {strides = array<i32>} : memref<1x8x16x128xbf16, #tpu.memory_space<vmem>>, vector<1x8x16x128xbf16>,
    %cst_9 = arith.constant dense<0.000000e+00> : vector<128xf32>
    %10 = vector.multi_reduction <add>, %4, %cst_9 [0] : vector<128x128xf32> to vector<128xf32>
    %11 = vector.shape_cast %10 : vector<128xf32> to vector<1x128xf32>
    %c0_10 = arith.constant 0 : index
    %c0_11 = arith.constant 0 : index
    %c0_12 = arith.constant 0 : index
    %c0_13 = arith.constant 0 : index
    %12 = vector.load %arg5[%c0_10, %c0_11, %c0_12, %c0_13] : memref<1x1x2x128xf32, #tpu.memory_space<vmem>>, vector<1x1x1x128xf32>
    %13 = vector.shape_cast %12 : vector<1x1x1x128xf32> to vector<1x128xf32>
    %14 = vector.shape_cast %11 : vector<1x128xf32> to vector<1x1x1x128xf32>
    tpu.vector_store %arg5[%c0_10, %c0_11, %c0_12, %c0_13], %14 {strides = array<i32>} : memref<1x1x2x128xf32, #tpu.memory_space<vmem>>, vector<1x1x1x128xf32>,
    %15 = arith.mulf %4, %4 : vector<128x128xf32>
    %cst_14 = arith.constant dense<0.000000e+00> : vector<128xf32>
    %16 = vector.multi_reduction <add>, %15, %cst_14 [0] : vector<128x128xf32> to vector<128xf32>
    %17 = vector.shape_cast %16 : vector<128xf32> to vector<1x128xf32>
    %c0_15 = arith.constant 0 : index
    %c0_16 = arith.constant 0 : index
    %c1 = arith.constant 1 : index
    %c0_17 = arith.constant 0 : index
    %18 = vector.load %arg5[%c0_15, %c0_16, %c1, %c0_17] : memref<1x1x2x128xf32, #tpu.memory_space<vmem>>, vector<1x1x1x128xf32>
    %19 = vector.shape_cast %18 : vector<1x1x1x128xf32> to vector<1x128xf32>
    %20 = vector.shape_cast %17 : vector<1x128xf32> to vector<1x1x1x128xf32>
    tpu.vector_store %arg5[%c0_15, %c0_16, %c1, %c0_17], %20 {strides = array<i32>} : memref<1x1x2x128xf32, #tpu.memory_space<vmem>>, vector<1x1x1x128xf32>,
    return
  }
  func.func @transform_0(%arg0: i32, %arg1: i32) -> (i32, i32, i32, i32) {
    %c0_i32 = arith.constant 0 : i32
    %c0_i32_0 = arith.constant 0 : i32
    %c0_i32_1 = arith.constant 0 : i32
    return %arg0, %arg1, %c0_i32, %c0_i32_0 : i32, i32, i32, i32
  }
  func.func @transform_1(%arg0: i32, %arg1: i32) -> (i32, i32) {
    %c0_i32 = arith.constant 0 : i32
    %c0_i32_0 = arith.constant 0 : i32
    %c0_i32_1 = arith.constant 0 : i32
    return %c0_i32, %c0_i32_0 : i32, i32
  }
  func.func @transform_2(%arg0: i32, %arg1: i32) -> (i32, i32, i32, i32) {
    %c0_i32 = arith.constant 0 : i32
    %c0_i32_0 = arith.constant 0 : i32
    %c0_i32_1 = arith.constant 0 : i32
    return %arg0, %arg1, %c0_i32, %c0_i32_0 : i32, i32, i32, i32
  }
  func.func @transform_3(%arg0: i32, %arg1: i32) -> (i32, i32, i32, i32) {
    %c0_i32 = arith.constant 0 : i32
    %c0_i32_0 = arith.constant 0 : i32
    %c0_i32_1 = arith.constant 0 : i32
    return %arg0, %arg1, %c0_i32, %c0_i32_0 : i32, i32, i32, i32
  }
}

module attributes {stable_mosaic.version = 11 : i64} {
  func.func @conv2_kernel(%arg0: i32, %arg1: i32, %arg2: memref<1x16x16x128xbf16, #tpu.memory_space<vmem>>, %arg3: memref<1x128xf32, #tpu.memory_space<vmem>>, %arg4: memref<1x128xf32, #tpu.memory_space<vmem>>, %arg5: memref<1152x128xbf16, #tpu.memory_space<vmem>>, %arg6: memref<1x8x16x128xbf16, #tpu.memory_space<vmem>>, %arg7: memref<1x1x2x128xf32, #tpu.memory_space<vmem>>, %arg8: memref<10x18x128xbf16, #tpu.memory_space<vmem>>, %arg9: memref<8x16x1152xbf16, #tpu.memory_space<vmem>>) attributes {dimension_semantics = [#tpu.dimension_semantics<parallel>, #tpu.dimension_semantics<parallel>], iteration_bounds = array<i64: 2, 2>, scalar_prefetch = 0 : i64, scratch_operands = 2 : i64, tpu.core_type = #tpu.core_type<tc>, window_params = [{transform_indices = @transform_0, window_bounds = array<i64: 1, 16, 16, 128>}, {pipeline_mode = #tpu.pipeline_mode<synchronous>, transform_indices = @transform_1, window_bounds = array<i64: 1, 128>}, {pipeline_mode = #tpu.pipeline_mode<synchronous>, transform_indices = @transform_2, window_bounds = array<i64: 1, 128>}, {pipeline_mode = #tpu.pipeline_mode<synchronous>, transform_indices = @transform_3, window_bounds = array<i64: 1152, 128>}, {transform_indices = @transform_4, window_bounds = array<i64: 1, 8, 16, 128>}, {transform_indices = @transform_5, window_bounds = array<i64: 1, 1, 2, 128>}]} {
    %c0 = arith.constant 0 : index
    %c0_0 = arith.constant 0 : index
    %0 = vector.load %arg3[%c0, %c0_0] : memref<1x128xf32, #tpu.memory_space<vmem>>, vector<1x128xf32>
    %c0_1 = arith.constant 0 : index
    %c0_2 = arith.constant 0 : index
    %1 = vector.load %arg4[%c0_1, %c0_2] : memref<1x128xf32, #tpu.memory_space<vmem>>, vector<1x128xf32>
    %c8_i32 = arith.constant 8 : i32
    %2 = arith.muli %arg1, %c8_i32 : i32
    %3 = tpu.assume_multiple %2, 8 : i32
    %cst = arith.constant 0.000000e+00 : bf16
    %4 = vector.broadcast %cst : bf16 to vector<10x1x128xbf16>
    %c0_3 = arith.constant 0 : index
    %c0_4 = arith.constant 0 : index
    %c0_5 = arith.constant 0 : index
    %5 = vector.load %arg8[%c0_3, %c0_4, %c0_5] : memref<10x18x128xbf16, #tpu.memory_space<vmem>>, vector<10x1x128xbf16>
    tpu.vector_store %arg8[%c0_3, %c0_4, %c0_5], %4 {strides = array<i32>} : memref<10x18x128xbf16, #tpu.memory_space<vmem>>, vector<10x1x128xbf16>,
    %c0_6 = arith.constant 0 : index
    %c17 = arith.constant 17 : index
    %c0_7 = arith.constant 0 : index
    %6 = vector.load %arg8[%c0_6, %c17, %c0_7] : memref<10x18x128xbf16, #tpu.memory_space<vmem>>, vector<10x1x128xbf16>
    tpu.vector_store %arg8[%c0_6, %c17, %c0_7], %4 {strides = array<i32>} : memref<10x18x128xbf16, #tpu.memory_space<vmem>>, vector<10x1x128xbf16>,
    %c0_8 = arith.constant 0 : index
    %7 = arith.index_cast %3 : i32 to index
    %c0_9 = arith.constant 0 : index
    %c0_10 = arith.constant 0 : index
    %8 = vector.load %arg2[%c0_8, %7, %c0_9, %c0_10] : memref<1x16x16x128xbf16, #tpu.memory_space<vmem>>, vector<1x8x16x128xbf16>
    %9 = vector.shape_cast %8 : vector<1x8x16x128xbf16> to vector<8x16x128xbf16>
    %10 = arith.extf %9 : vector<8x16x128xbf16> to vector<8x16x128xf32>
    %11 = vector.shape_cast %0 : vector<1x128xf32> to vector<1x1x128xf32>
    %12 = vector.broadcast %11 : vector<1x1x128xf32> to vector<8x16x128xf32>
    %13 = arith.mulf %10, %12 : vector<8x16x128xf32>
    %14 = vector.shape_cast %1 : vector<1x128xf32> to vector<1x1x128xf32>
    %15 = vector.broadcast %14 : vector<1x1x128xf32> to vector<8x16x128xf32>
    %16 = arith.addf %13, %15 : vector<8x16x128xf32>
    %cst_11 = arith.constant 0.000000e+00 : f32
    %17 = vector.broadcast %cst_11 : f32 to vector<8x16x128xf32>
    %18 = arith.maximumf %16, %17 : vector<8x16x128xf32>
    %19 = arith.truncf %18 : vector<8x16x128xf32> to vector<8x16x128xbf16>
    %c1 = arith.constant 1 : index
    %c1_12 = arith.constant 1 : index
    %c0_13 = arith.constant 0 : index
    %20 = vector.load %arg8[%c1, %c1_12, %c0_13] : memref<10x18x128xbf16, #tpu.memory_space<vmem>>, vector<8x16x128xbf16>
    tpu.vector_store %arg8[%c1, %c1_12, %c0_13], %19 {strides = array<i32>} : memref<10x18x128xbf16, #tpu.memory_space<vmem>>, vector<8x16x128xbf16>,
    %cst_14 = arith.constant 0.000000e+00 : bf16
    %21 = vector.broadcast %cst_14 : bf16 to vector<1x16x128xbf16>
    %c0_i32 = arith.constant 0 : i32
    %22 = arith.cmpi eq, %arg1, %c0_i32 : i32
    %23 = arith.extui %22 : i1 to i32
    %c0_i32_15 = arith.constant 0 : i32
    %24 = arith.cmpi ne, %23, %c0_i32_15 : i32
    scf.if %24 {
      %c0_86 = arith.constant 0 : index
      %c1_87 = arith.constant 1 : index
      %c0_88 = arith.constant 0 : index
      %72 = vector.load %arg8[%c0_86, %c1_87, %c0_88] : memref<10x18x128xbf16, #tpu.memory_space<vmem>>, vector<1x16x128xbf16>
      tpu.vector_store %arg8[%c0_86, %c1_87, %c0_88], %21 {strides = array<i32>} : memref<10x18x128xbf16, #tpu.memory_space<vmem>>, vector<1x16x128xbf16>,
    } else {
    }
    %c0_i32_16 = arith.constant 0 : i32
    %25 = arith.cmpi sgt, %arg1, %c0_i32_16 : i32
    %26 = arith.extui %25 : i1 to i32
    %c0_i32_17 = arith.constant 0 : i32
    %27 = arith.cmpi ne, %26, %c0_i32_17 : i32
    scf.if %27 {
      %c1_i32_86 = arith.constant 1 : i32
      %72 = arith.subi %3, %c1_i32_86 : i32
      %c0_87 = arith.constant 0 : index
      %73 = arith.index_cast %72 : i32 to index
      %c0_88 = arith.constant 0 : index
      %c0_89 = arith.constant 0 : index
      %74 = vector.load %arg2[%c0_87, %73, %c0_88, %c0_89] : memref<1x16x16x128xbf16, #tpu.memory_space<vmem>>, vector<1x1x16x128xbf16>
      %75 = vector.shape_cast %74 : vector<1x1x16x128xbf16> to vector<1x16x128xbf16>
      %76 = arith.extf %75 : vector<1x16x128xbf16> to vector<1x16x128xf32>
      %77 = vector.shape_cast %0 : vector<1x128xf32> to vector<1x1x128xf32>
      %78 = vector.broadcast %77 : vector<1x1x128xf32> to vector<1x16x128xf32>
      %79 = arith.mulf %76, %78 : vector<1x16x128xf32>
      %80 = vector.shape_cast %1 : vector<1x128xf32> to vector<1x1x128xf32>
      %81 = vector.broadcast %80 : vector<1x1x128xf32> to vector<1x16x128xf32>
      %82 = arith.addf %79, %81 : vector<1x16x128xf32>
      %cst_90 = arith.constant 0.000000e+00 : f32
      %83 = vector.broadcast %cst_90 : f32 to vector<1x16x128xf32>
      %84 = arith.maximumf %82, %83 : vector<1x16x128xf32>
      %85 = arith.truncf %84 : vector<1x16x128xf32> to vector<1x16x128xbf16>
      %c0_91 = arith.constant 0 : index
      %c1_92 = arith.constant 1 : index
      %c0_93 = arith.constant 0 : index
      %86 = vector.load %arg8[%c0_91, %c1_92, %c0_93] : memref<10x18x128xbf16, #tpu.memory_space<vmem>>, vector<1x16x128xbf16>
      tpu.vector_store %arg8[%c0_91, %c1_92, %c0_93], %85 {strides = array<i32>} : memref<10x18x128xbf16, #tpu.memory_space<vmem>>, vector<1x16x128xbf16>,
    } else {
    }
    %c1_i32 = arith.constant 1 : i32
    %28 = arith.cmpi eq, %arg1, %c1_i32 : i32
    %29 = arith.extui %28 : i1 to i32
    %c0_i32_18 = arith.constant 0 : i32
    %30 = arith.cmpi ne, %29, %c0_i32_18 : i32
    scf.if %30 {
      %c9 = arith.constant 9 : index
      %c1_86 = arith.constant 1 : index
      %c0_87 = arith.constant 0 : index
      %72 = vector.load %arg8[%c9, %c1_86, %c0_87] : memref<10x18x128xbf16, #tpu.memory_space<vmem>>, vector<1x16x128xbf16>
      tpu.vector_store %arg8[%c9, %c1_86, %c0_87], %21 {strides = array<i32>} : memref<10x18x128xbf16, #tpu.memory_space<vmem>>, vector<1x16x128xbf16>,
    } else {
    }
    %c1_i32_19 = arith.constant 1 : i32
    %31 = arith.cmpi slt, %arg1, %c1_i32_19 : i32
    %32 = arith.extui %31 : i1 to i32
    %c0_i32_20 = arith.constant 0 : i32
    %33 = arith.cmpi ne, %32, %c0_i32_20 : i32
    scf.if %33 {
      %c8_i32_86 = arith.constant 8 : i32
      %72 = arith.addi %3, %c8_i32_86 : i32
      %c0_87 = arith.constant 0 : index
      %73 = arith.index_cast %72 : i32 to index
      %c0_88 = arith.constant 0 : index
      %c0_89 = arith.constant 0 : index
      %74 = vector.load %arg2[%c0_87, %73, %c0_88, %c0_89] : memref<1x16x16x128xbf16, #tpu.memory_space<vmem>>, vector<1x1x16x128xbf16>
      %75 = vector.shape_cast %74 : vector<1x1x16x128xbf16> to vector<1x16x128xbf16>
      %76 = arith.extf %75 : vector<1x16x128xbf16> to vector<1x16x128xf32>
      %77 = vector.shape_cast %0 : vector<1x128xf32> to vector<1x1x128xf32>
      %78 = vector.broadcast %77 : vector<1x1x128xf32> to vector<1x16x128xf32>
      %79 = arith.mulf %76, %78 : vector<1x16x128xf32>
      %80 = vector.shape_cast %1 : vector<1x128xf32> to vector<1x1x128xf32>
      %81 = vector.broadcast %80 : vector<1x1x128xf32> to vector<1x16x128xf32>
      %82 = arith.addf %79, %81 : vector<1x16x128xf32>
      %cst_90 = arith.constant 0.000000e+00 : f32
      %83 = vector.broadcast %cst_90 : f32 to vector<1x16x128xf32>
      %84 = arith.maximumf %82, %83 : vector<1x16x128xf32>
      %85 = arith.truncf %84 : vector<1x16x128xf32> to vector<1x16x128xbf16>
      %c9 = arith.constant 9 : index
      %c1_91 = arith.constant 1 : index
      %c0_92 = arith.constant 0 : index
      %86 = vector.load %arg8[%c9, %c1_91, %c0_92] : memref<10x18x128xbf16, #tpu.memory_space<vmem>>, vector<1x16x128xbf16>
      tpu.vector_store %arg8[%c9, %c1_91, %c0_92], %85 {strides = array<i32>} : memref<10x18x128xbf16, #tpu.memory_space<vmem>>, vector<1x16x128xbf16>,
    } else {
    }
    %c0_21 = arith.constant 0 : index
    %c0_22 = arith.constant 0 : index
    %c0_23 = arith.constant 0 : index
    %34 = vector.load %arg8[%c0_21, %c0_22, %c0_23] : memref<10x18x128xbf16, #tpu.memory_space<vmem>>, vector<8x16x128xbf16>
    %c0_24 = arith.constant 0 : index
    %c0_25 = arith.constant 0 : index
    %c0_26 = arith.constant 0 : index
    %35 = vector.load %arg9[%c0_24, %c0_25, %c0_26] : memref<8x16x1152xbf16, #tpu.memory_space<vmem>>, vector<8x16x128xbf16>
    tpu.vector_store %arg9[%c0_24, %c0_25, %c0_26], %34 {strides = array<i32>} : memref<8x16x1152xbf16, #tpu.memory_space<vmem>>, vector<8x16x128xbf16>,
    %c0_27 = arith.constant 0 : index
    %c1_28 = arith.constant 1 : index
    %c0_29 = arith.constant 0 : index
    %36 = vector.load %arg8[%c0_27, %c1_28, %c0_29] : memref<10x18x128xbf16, #tpu.memory_space<vmem>>, vector<8x16x128xbf16>
    %c0_30 = arith.constant 0 : index
    %c0_31 = arith.constant 0 : index
    %c128 = arith.constant 128 : index
    %37 = vector.load %arg9[%c0_30, %c0_31, %c128] : memref<8x16x1152xbf16, #tpu.memory_space<vmem>>, vector<8x16x128xbf16>
    tpu.vector_store %arg9[%c0_30, %c0_31, %c128], %36 {strides = array<i32>} : memref<8x16x1152xbf16, #tpu.memory_space<vmem>>, vector<8x16x128xbf16>,
    %c0_32 = arith.constant 0 : index
    %c2 = arith.constant 2 : index
    %c0_33 = arith.constant 0 : index
    %38 = vector.load %arg8[%c0_32, %c2, %c0_33] : memref<10x18x128xbf16, #tpu.memory_space<vmem>>, vector<8x16x128xbf16>
    %c0_34 = arith.constant 0 : index
    %c0_35 = arith.constant 0 : index
    %c256 = arith.constant 256 : index
    %39 = vector.load %arg9[%c0_34, %c0_35, %c256] : memref<8x16x1152xbf16, #tpu.memory_space<vmem>>, vector<8x16x128xbf16>
    tpu.vector_store %arg9[%c0_34, %c0_35, %c256], %38 {strides = array<i32>} : memref<8x16x1152xbf16, #tpu.memory_space<vmem>>, vector<8x16x128xbf16>,
    %c1_36 = arith.constant 1 : index
    %c0_37 = arith.constant 0 : index
    %c0_38 = arith.constant 0 : index
    %40 = vector.load %arg8[%c1_36, %c0_37, %c0_38] : memref<10x18x128xbf16, #tpu.memory_space<vmem>>, vector<8x16x128xbf16>
    %c0_39 = arith.constant 0 : index
    %c0_40 = arith.constant 0 : index
    %c384 = arith.constant 384 : index
    %41 = vector.load %arg9[%c0_39, %c0_40, %c384] : memref<8x16x1152xbf16, #tpu.memory_space<vmem>>, vector<8x16x128xbf16>
    tpu.vector_store %arg9[%c0_39, %c0_40, %c384], %40 {strides = array<i32>} : memref<8x16x1152xbf16, #tpu.memory_space<vmem>>, vector<8x16x128xbf16>,
    %c1_41 = arith.constant 1 : index
    %c1_42 = arith.constant 1 : index
    %c0_43 = arith.constant 0 : index
    %42 = vector.load %arg8[%c1_41, %c1_42, %c0_43] : memref<10x18x128xbf16, #tpu.memory_space<vmem>>, vector<8x16x128xbf16>
    %c0_44 = arith.constant 0 : index
    %c0_45 = arith.constant 0 : index
    %c512 = arith.constant 512 : index
    %43 = vector.load %arg9[%c0_44, %c0_45, %c512] : memref<8x16x1152xbf16, #tpu.memory_space<vmem>>, vector<8x16x128xbf16>
    tpu.vector_store %arg9[%c0_44, %c0_45, %c512], %42 {strides = array<i32>} : memref<8x16x1152xbf16, #tpu.memory_space<vmem>>, vector<8x16x128xbf16>,
    %c1_46 = arith.constant 1 : index
    %c2_47 = arith.constant 2 : index
    %c0_48 = arith.constant 0 : index
    %44 = vector.load %arg8[%c1_46, %c2_47, %c0_48] : memref<10x18x128xbf16, #tpu.memory_space<vmem>>, vector<8x16x128xbf16>
    %c0_49 = arith.constant 0 : index
    %c0_50 = arith.constant 0 : index
    %c640 = arith.constant 640 : index
    %45 = vector.load %arg9[%c0_49, %c0_50, %c640] : memref<8x16x1152xbf16, #tpu.memory_space<vmem>>, vector<8x16x128xbf16>
    tpu.vector_store %arg9[%c0_49, %c0_50, %c640], %44 {strides = array<i32>} : memref<8x16x1152xbf16, #tpu.memory_space<vmem>>, vector<8x16x128xbf16>,
    %c2_51 = arith.constant 2 : index
    %c0_52 = arith.constant 0 : index
    %c0_53 = arith.constant 0 : index
    %46 = vector.load %arg8[%c2_51, %c0_52, %c0_53] : memref<10x18x128xbf16, #tpu.memory_space<vmem>>, vector<8x16x128xbf16>
    %c0_54 = arith.constant 0 : index
    %c0_55 = arith.constant 0 : index
    %c768 = arith.constant 768 : index
    %47 = vector.load %arg9[%c0_54, %c0_55, %c768] : memref<8x16x1152xbf16, #tpu.memory_space<vmem>>, vector<8x16x128xbf16>
    tpu.vector_store %arg9[%c0_54, %c0_55, %c768], %46 {strides = array<i32>} : memref<8x16x1152xbf16, #tpu.memory_space<vmem>>, vector<8x16x128xbf16>,
    %c2_56 = arith.constant 2 : index
    %c1_57 = arith.constant 1 : index
    %c0_58 = arith.constant 0 : index
    %48 = vector.load %arg8[%c2_56, %c1_57, %c0_58] : memref<10x18x128xbf16, #tpu.memory_space<vmem>>, vector<8x16x128xbf16>
    %c0_59 = arith.constant 0 : index
    %c0_60 = arith.constant 0 : index
    %c896 = arith.constant 896 : index
    %49 = vector.load %arg9[%c0_59, %c0_60, %c896] : memref<8x16x1152xbf16, #tpu.memory_space<vmem>>, vector<8x16x128xbf16>
    tpu.vector_store %arg9[%c0_59, %c0_60, %c896], %48 {strides = array<i32>} : memref<8x16x1152xbf16, #tpu.memory_space<vmem>>, vector<8x16x128xbf16>,
    %c2_61 = arith.constant 2 : index
    %c2_62 = arith.constant 2 : index
    %c0_63 = arith.constant 0 : index
    %50 = vector.load %arg8[%c2_61, %c2_62, %c0_63] : memref<10x18x128xbf16, #tpu.memory_space<vmem>>, vector<8x16x128xbf16>
    %c0_64 = arith.constant 0 : index
    %c0_65 = arith.constant 0 : index
    %c1024 = arith.constant 1024 : index
    %51 = vector.load %arg9[%c0_64, %c0_65, %c1024] : memref<8x16x1152xbf16, #tpu.memory_space<vmem>>, vector<8x16x128xbf16>
    tpu.vector_store %arg9[%c0_64, %c0_65, %c1024], %50 {strides = array<i32>} : memref<8x16x1152xbf16, #tpu.memory_space<vmem>>, vector<8x16x128xbf16>,
    %c0_66 = arith.constant 0 : index
    %c0_67 = arith.constant 0 : index
    %c0_68 = arith.constant 0 : index
    %52 = vector.load %arg9[%c0_66, %c0_67, %c0_68] : memref<8x16x1152xbf16, #tpu.memory_space<vmem>>, vector<8x16x1152xbf16>
    %53 = vector.shape_cast %52 : vector<8x16x1152xbf16> to vector<128x1152xbf16>
    %c0_69 = arith.constant 0 : index
    %c0_70 = arith.constant 0 : index
    %54 = vector.load %arg5[%c0_69, %c0_70] : memref<1152x128xbf16, #tpu.memory_space<vmem>>, vector<1152x128xbf16>
    %cst_71 = arith.constant dense<0.000000e+00> : vector<128x128xf32>
    %55 = tpu.matmul %53, %54, %cst_71 {dimension_numbers = #tpu.dot_dimension_numbers<[1], [0], [0], [1], [0, 0, 1, 1], [], []>} : vector<128x1152xbf16>, vector<1152x128xbf16>, vector<128x128xf32> -> vector<128x128xf32>
    %56 = vector.shape_cast %55 : vector<128x128xf32> to vector<8x16x128xf32>
    %57 = arith.truncf %56 : vector<8x16x128xf32> to vector<8x16x128xbf16>
    %c0_72 = arith.constant 0 : index
    %c0_73 = arith.constant 0 : index
    %c0_74 = arith.constant 0 : index
    %c0_75 = arith.constant 0 : index
    %58 = vector.load %arg6[%c0_72, %c0_73, %c0_74, %c0_75] : memref<1x8x16x128xbf16, #tpu.memory_space<vmem>>, vector<1x8x16x128xbf16>
    %59 = vector.shape_cast %58 : vector<1x8x16x128xbf16> to vector<8x16x128xbf16>
    %60 = vector.shape_cast %57 : vector<8x16x128xbf16> to vector<1x8x16x128xbf16>
    tpu.vector_store %arg6[%c0_72, %c0_73, %c0_74, %c0_75], %60 {strides = array<i32>} : memref<1x8x16x128xbf16, #tpu.memory_space<vmem>>, vector<1x8x16x128xbf16>,
    %cst_76 = arith.constant dense<0.000000e+00> : vector<128xf32>
    %61 = vector.multi_reduction <add>, %55, %cst_76 [0] : vector<128x128xf32> to vector<128xf32>
    %62 = vector.shape_cast %61 : vector<128xf32> to vector<1x128xf32>
    %c0_77 = arith.constant 0 : index
    %c0_78 = arith.constant 0 : index
    %c0_79 = arith.constant 0 : index
    %c0_80 = arith.constant 0 : index
    %63 = vector.load %arg7[%c0_77, %c0_78, %c0_79, %c0_80] : memref<1x1x2x128xf32, #tpu.memory_space<vmem>>, vector<1x1x1x128xf32>
    %64 = vector.shape_cast %63 : vector<1x1x1x128xf32> to vector<1x128xf32>
    %65 = vector.shape_cast %62 : vector<1x128xf32> to vector<1x1x1x128xf32>
    tpu.vector_store %arg7[%c0_77, %c0_78, %c0_79, %c0_80], %65 {strides = array<i32>} : memref<1x1x2x128xf32, #tpu.memory_space<vmem>>, vector<1x1x1x128xf32>,
    %66 = arith.mulf %55, %55 : vector<128x128xf32>
    %cst_81 = arith.constant dense<0.000000e+00> : vector<128xf32>
    %67 = vector.multi_reduction <add>, %66, %cst_81 [0] : vector<128x128xf32> to vector<128xf32>
    %68 = vector.shape_cast %67 : vector<128xf32> to vector<1x128xf32>
    %c0_82 = arith.constant 0 : index
    %c0_83 = arith.constant 0 : index
    %c1_84 = arith.constant 1 : index
    %c0_85 = arith.constant 0 : index
    %69 = vector.load %arg7[%c0_82, %c0_83, %c1_84, %c0_85] : memref<1x1x2x128xf32, #tpu.memory_space<vmem>>, vector<1x1x1x128xf32>
    %70 = vector.shape_cast %69 : vector<1x1x1x128xf32> to vector<1x128xf32>
    %71 = vector.shape_cast %68 : vector<1x128xf32> to vector<1x1x1x128xf32>
    tpu.vector_store %arg7[%c0_82, %c0_83, %c1_84, %c0_85], %71 {strides = array<i32>} : memref<1x1x2x128xf32, #tpu.memory_space<vmem>>, vector<1x1x1x128xf32>,
    return
  }
  func.func @transform_0(%arg0: i32, %arg1: i32) -> (i32, i32, i32, i32) {
    %c0_i32 = arith.constant 0 : i32
    %c0_i32_0 = arith.constant 0 : i32
    %c0_i32_1 = arith.constant 0 : i32
    %c0_i32_2 = arith.constant 0 : i32
    return %arg0, %c0_i32, %c0_i32_0, %c0_i32_1 : i32, i32, i32, i32
  }
  func.func @transform_1(%arg0: i32, %arg1: i32) -> (i32, i32) {
    %c0_i32 = arith.constant 0 : i32
    %c0_i32_0 = arith.constant 0 : i32
    %c0_i32_1 = arith.constant 0 : i32
    return %c0_i32, %c0_i32_0 : i32, i32
  }
  func.func @transform_2(%arg0: i32, %arg1: i32) -> (i32, i32) {
    %c0_i32 = arith.constant 0 : i32
    %c0_i32_0 = arith.constant 0 : i32
    %c0_i32_1 = arith.constant 0 : i32
    return %c0_i32, %c0_i32_0 : i32, i32
  }
  func.func @transform_3(%arg0: i32, %arg1: i32) -> (i32, i32) {
    %c0_i32 = arith.constant 0 : i32
    %c0_i32_0 = arith.constant 0 : i32
    %c0_i32_1 = arith.constant 0 : i32
    return %c0_i32, %c0_i32_0 : i32, i32
  }
  func.func @transform_4(%arg0: i32, %arg1: i32) -> (i32, i32, i32, i32) {
    %c0_i32 = arith.constant 0 : i32
    %c0_i32_0 = arith.constant 0 : i32
    %c0_i32_1 = arith.constant 0 : i32
    return %arg0, %arg1, %c0_i32, %c0_i32_0 : i32, i32, i32, i32
  }
  func.func @transform_5(%arg0: i32, %arg1: i32) -> (i32, i32, i32, i32) {
    %c0_i32 = arith.constant 0 : i32
    %c0_i32_0 = arith.constant 0 : i32
    %c0_i32_1 = arith.constant 0 : i32
    return %arg0, %arg1, %c0_i32, %c0_i32_0 : i32, i32, i32, i32
  }
}

module attributes {stable_mosaic.version = 11 : i64} {
  func.func @bn_relu_kernel(%arg0: i32, %arg1: i32, %arg2: memref<1x8x16x128xbf16, #tpu.memory_space<vmem>>, %arg3: memref<1x128xf32, #tpu.memory_space<vmem>>, %arg4: memref<1x128xf32, #tpu.memory_space<vmem>>, %arg5: memref<1x8x16x128xf32, #tpu.memory_space<vmem>>) attributes {dimension_semantics = [#tpu.dimension_semantics<parallel>, #tpu.dimension_semantics<parallel>], iteration_bounds = array<i64: 2, 2>, scalar_prefetch = 0 : i64, scratch_operands = 0 : i64, tpu.core_type = #tpu.core_type<tc>, window_params = [{transform_indices = @transform_0, window_bounds = array<i64: 1, 8, 16, 128>}, {pipeline_mode = #tpu.pipeline_mode<synchronous>, transform_indices = @transform_1, window_bounds = array<i64: 1, 128>}, {pipeline_mode = #tpu.pipeline_mode<synchronous>, transform_indices = @transform_2, window_bounds = array<i64: 1, 128>}, {transform_indices = @transform_3, window_bounds = array<i64: 1, 8, 16, 128>}]} {
    %c0 = arith.constant 0 : index
    %c0_0 = arith.constant 0 : index
    %c0_1 = arith.constant 0 : index
    %c0_2 = arith.constant 0 : index
    %0 = vector.load %arg2[%c0, %c0_0, %c0_1, %c0_2] : memref<1x8x16x128xbf16, #tpu.memory_space<vmem>>, vector<1x8x16x128xbf16>
    %1 = vector.shape_cast %0 : vector<1x8x16x128xbf16> to vector<8x16x128xbf16>
    %2 = arith.extf %1 : vector<8x16x128xbf16> to vector<8x16x128xf32>
    %c0_3 = arith.constant 0 : index
    %c0_4 = arith.constant 0 : index
    %3 = vector.load %arg3[%c0_3, %c0_4] : memref<1x128xf32, #tpu.memory_space<vmem>>, vector<1x128xf32>
    %4 = vector.shape_cast %3 : vector<1x128xf32> to vector<1x1x128xf32>
    %5 = vector.broadcast %4 : vector<1x1x128xf32> to vector<8x16x128xf32>
    %6 = arith.mulf %2, %5 : vector<8x16x128xf32>
    %c0_5 = arith.constant 0 : index
    %c0_6 = arith.constant 0 : index
    %7 = vector.load %arg4[%c0_5, %c0_6] : memref<1x128xf32, #tpu.memory_space<vmem>>, vector<1x128xf32>
    %8 = vector.shape_cast %7 : vector<1x128xf32> to vector<1x1x128xf32>
    %9 = vector.broadcast %8 : vector<1x1x128xf32> to vector<8x16x128xf32>
    %10 = arith.addf %6, %9 : vector<8x16x128xf32>
    %cst = arith.constant 0.000000e+00 : f32
    %11 = vector.broadcast %cst : f32 to vector<8x16x128xf32>
    %12 = arith.maximumf %10, %11 : vector<8x16x128xf32>
    %c0_7 = arith.constant 0 : index
    %c0_8 = arith.constant 0 : index
    %c0_9 = arith.constant 0 : index
    %c0_10 = arith.constant 0 : index
    %13 = vector.load %arg5[%c0_7, %c0_8, %c0_9, %c0_10] : memref<1x8x16x128xf32, #tpu.memory_space<vmem>>, vector<1x8x16x128xf32>
    %14 = vector.shape_cast %13 : vector<1x8x16x128xf32> to vector<8x16x128xf32>
    %15 = vector.shape_cast %12 : vector<8x16x128xf32> to vector<1x8x16x128xf32>
    tpu.vector_store %arg5[%c0_7, %c0_8, %c0_9, %c0_10], %15 {strides = array<i32>} : memref<1x8x16x128xf32, #tpu.memory_space<vmem>>, vector<1x8x16x128xf32>,
    return
  }
  func.func @transform_0(%arg0: i32, %arg1: i32) -> (i32, i32, i32, i32) {
    %c0_i32 = arith.constant 0 : i32
    %c0_i32_0 = arith.constant 0 : i32
    %c0_i32_1 = arith.constant 0 : i32
    return %arg0, %arg1, %c0_i32, %c0_i32_0 : i32, i32, i32, i32
  }
  func.func @transform_1(%arg0: i32, %arg1: i32) -> (i32, i32) {
    %c0_i32 = arith.constant 0 : i32
    %c0_i32_0 = arith.constant 0 : i32
    %c0_i32_1 = arith.constant 0 : i32
    return %c0_i32, %c0_i32_0 : i32, i32
  }
  func.func @transform_2(%arg0: i32, %arg1: i32) -> (i32, i32) {
    %c0_i32 = arith.constant 0 : i32
    %c0_i32_0 = arith.constant 0 : i32
    %c0_i32_1 = arith.constant 0 : i32
    return %c0_i32, %c0_i32_0 : i32, i32
  }
  func.func @transform_3(%arg0: i32, %arg1: i32) -> (i32, i32, i32, i32) {
    %c0_i32 = arith.constant 0 : i32
    %c0_i32_0 = arith.constant 0 : i32
    %c0_i32_1 = arith.constant 0 : i32
    return %arg0, %arg1, %c0_i32, %c0_i32_0 : i32, i32, i32, i32
  }
}

</mosaic_0001>

<bundles_post_ra>
// kernel: double_conv.3
= control target key start
LH: loop header
LB: loop body
LE: loop exit
PB: predicated region body
PF: predicated region fallthrough
CT: control target
= control target key end

     0   :  { %s1040_s12 = smov 0   ;;  %s1042_s13 = smov 0   ;;  %s1154_s0 = inlined_call_operand.vmem [shape: bf16[2,16,16,128], index: 0, kind: input, shape index: {}]   ;;  %s1155_s1 = inlined_call_operand.vmem [shape: bf16[128,128], index: 1, kind: input, shape index: {}]   ;;  %s1156_s2 = inlined_call_operand.vmem [shape: bf16[2,16,16,128], index: 2, kind: output, shape index: {0}]   ;;  %s1157_s3 = inlined_call_operand.vmem [shape: f32[2,2,2,128], index: 3, kind: output, shape index: {1}]  }
   0x1   :  { %s1044_s14 = smov 0   ;;  %s1046_s15 = smov 0  }
   0x2   :  { %s1048_s16 = smov 0  }
   0x3 LB: > { %s23_s17 = sadd.s32 1, %s1010_s14  ;;  %s26_s18 = sadd.s32 1, %s1014_s15  ;;  %s1018_s16 = sphi %s1048_s16, %s14_s16   ;;  %s1014_s15 = sphi %s1046_s15, %s1161_s15   ;;  %s1010_s14 = sphi %s1044_s14, %s1160_s14   ;;  %s1006_s13 = sphi %s1042_s13, %s1159_s13   ;;  %s1002_s12 = sphi %s1040_s12, %s1158_s12  }
   0x4   : > { %p24_p0 = scmp.ge.s32.totalorder %s23_s17, 2  ;;  %p752_p1 = scmp.ge.s32.totalorder %s1018_s16, 1 }
   0x5   : > { %p164_p2 = scmp.lt.s32.totalorder %s1018_s16, 5 }
   0x6   : > { %s1163_s17 = smov (%p24_p0, %s23_s17), 0  ;;  %s1165_s18 = smov (!%p24_p0, %s26_s18), %s1014_s15 }
   0x7   : > { %p165_p3 = pnand %p752_p1, %p164_p2  ;;  %p28_p4 = scmp.ge.s32.totalorder %s1165_s18, 2 }
   0x8   : > { %s753_s21 = sshll.u32 (!%p165_p3), %s1002_s12, 3  ;;  %p207_p5 = scmp.lt.s32.totalorder (!%p165_p3), %s1006_s13, 1 }
   0x9   : > { %s1167_s18 = smov (%p28_p4, %s1165_s18), 0  ;;  %168 = sbr.rel (%p165_p3) target bundleno = 291 (0x123), region = 28 }
   0xa   : > { %p209_p6 = scmp.lt.s32.totalorder (!%p165_p3), %s753_s21, 15  ;;  %p230_p7 = scmp.lt.s32.totalorder (!%p165_p3), %s1002_s12, 1 }
   0xe   : > { %v964_v0 = vld [vmem:[%s1155_s1 + $0x38] sm:$0xff]   ;;  %v965_v1 = vld [vmem:[%s1155_s1 + $0x30] sm:$0xff]   ;;  %s1169_s13 = smov (!%p207_p5, %s1006_s13), 1  ;;  %v966_v2 = vld [vmem:[%s1155_s1 + $0x28] sm:$0xff]   ;;  %s1171_s21 = smov (!%p209_p6, %s753_s21), 15 }
   0xf   : > { %876 = vmatprep.subr.bf16.mxu0 %v964_v0  ;;  %908 = vmatprep.subr.bf16.mxu1 %v964_v0  ;;  %s755_s26 = sshll.u32 %s1169_s13, 5  ;;  %s754_s27 = sshll.u32 %s1171_s21, 1  ;;  %v967_v3 = vld [vmem:[%s1155_s1 + $0x20] sm:$0xff]   ;;  %v968_v5 = vld [vmem:[%s1155_s1 + $0x18] sm:$0xff]   ;;  %v969_v7 = vld [vmem:[%s1155_s1 + $0x10] sm:$0xff]  }
  0x10   : > { %877 = vmatpush3.bf16.msra.mxu0 %v964_v0  ;;  %916 = vmatpush3.bf16.msra.mxu1 %v964_v0  ;;  %s1085_s28 = sadd.s32 %s755_s26, %s754_s27  ;;  %v970_v8 = vld [vmem:[%s1155_s1 + $0x8] sm:$0xff]   ;;  %v971_v9 = vld [vmem:[%s1155_s1] sm:$0xff]   ;;  %s1173_s12 = smov (!%p230_p7, %s1002_s12), 1 }
  0x11   : > { %878 = vmatprep.subr.bf16.mxu0 %v965_v1  ;;  %909 = vmatprep.subr.bf16.mxu1 %v965_v1  ;;  %s756_s4 = sshll.u32 %s1085_s28, 2  ;;  %s761_s26 = sshll.u32 %s1169_s13, 1 }
  0x12   : > { %s1096_s7 = scalar_lea.vmem %s1154_s0, %s756_s4  ;;  %s1123_s25 = scalar_lea.vmem %s1156_s2, %s756_s4 }
  0x13   : > { %v972_v4 = vld [vmem:[%s1096_s7] sm:$0xff]   ;;  %v973_v10 = vld [vmem:[%s1096_s7 + $0x8] sm:$0xff]   ;;  %v974_v12 = vld [vmem:[%s1096_s7 + $0x10] sm:$0xff]   ;;  %s233_s27 = sadd.s32 %s761_s26, %s1173_s12 }
  0x14   : > { %879 = vmatpush3.bf16.msra.mxu0 %v965_v1  ;;  %917 = vmatpush3.bf16.msra.mxu1 %v965_v1  ;;  %v976_v6 = vld [vmem:[%s1096_s7 + $0x20] sm:$0xff]   ;;  %v977_v11 = vld [vmem:[%s1096_s7 + $0x28] sm:$0xff]   ;;  %v978_v13 = vld [vmem:[%s1096_s7 + $0x30] sm:$0xff]   ;;  %s762_s28 = sshll.u32 %s233_s27, 1 }
  0x15   : > { %880 = vmatprep.subr.bf16.mxu0 %v966_v2  ;;  %910 = vmatprep.subr.bf16.mxu1 %v966_v2  ;;  %v975_v14 = vld [vmem:[%s1096_s7 + $0x18] sm:$0xff]   ;;  %s235_s4 = scalar_lea.vmem %s1157_s3, %s762_s28 }
  0x16   : > { %892 = vmatprep.mubr.bf16.mxu0 %v972_v4  ;;  %900 = vmatprep.mubr.bf16.mxu1 %v976_v6  ;;  %v979_v15 = vld [vmem:[%s1096_s7 + $0x38] sm:$0xff]  }
  0x18   : > { %881 = vmatpush3.bf16.msra.mxu0 %v966_v2  ;;  %918 = vmatpush3.bf16.msra.mxu1 %v966_v2 }
  0x19   : > { %882 = vmatprep.subr.bf16.mxu0 %v967_v3  ;;  %911 = vmatprep.subr.bf16.mxu1 %v967_v3 }
  0x1c   : > { %883 = vmatpush3.bf16.msra.mxu0 %v967_v3  ;;  %919 = vmatpush3.bf16.msra.mxu1 %v967_v3 }
  0x1d   : > { %884 = vmatprep.subr.bf16.mxu0 %v968_v5  ;;  %912 = vmatprep.subr.bf16.mxu1 %v968_v5 }
  0x20   : > { %885 = vmatpush3.bf16.msra.mxu0 %v968_v5  ;;  %920 = vmatpush3.bf16.msra.mxu1 %v968_v5 }
  0x21   : > { %886 = vmatprep.subr.bf16.mxu0 %v969_v7  ;;  %913 = vmatprep.subr.bf16.mxu1 %v969_v7 }
  0x24   : > { %887 = vmatpush3.bf16.msra.mxu0 %v969_v7  ;;  %921 = vmatpush3.bf16.msra.mxu1 %v969_v7 }
  0x25   : > { %888 = vmatprep.subr.bf16.mxu0 %v970_v8  ;;  %914 = vmatprep.subr.bf16.mxu1 %v970_v8 }
  0x28   : > { %889 = vmatpush3.bf16.msra.mxu0 %v970_v8  ;;  %922 = vmatpush3.bf16.msra.mxu1 %v970_v8 }
  0x29   : > { %890 = vmatprep.subr.bf16.mxu0 %v971_v9  ;;  %915 = vmatprep.subr.bf16.mxu1 %v971_v9 }
  0x2c   : > { %891 = vmatpush3.bf16.msra.mxu0 %v971_v9  ;;  %923 = vmatpush3.bf16.msra.mxu1 %v971_v9 }
  0x2f   : > { %893 = vmatmul.mubr.bf16.vlgmr.msra.gmra.mxu0 %v973_v10  ;;  %901 = vmatmul.mubr.bf16.vlgmr.msra.gmra.mxu1 %v977_v11 }
  0x30   : > { %896 = vmatprep.mubr.bf16.mxu0 %v974_v12  ;;  %904 = vmatprep.mubr.bf16.mxu1 %v978_v13 }
  0x37   : > { %897 = vmatmul.mubr.bf16.gmra.mxu0 %v975_v14  ;;  %905 = vmatmul.mubr.bf16.gmra.mxu1 %v979_v15 }
  0xef   : > { %v894_v16 = vpop.f32.mrf.mxu0  ;;  %v902_v17 = vpop.f32.mrf.mxu1 }
  0xf0   : > { %v566_v33 = vmul.f32 %v894_v16, %v894_v16  ;;  %v574_v3 = vmul.f32 %v902_v17, %v902_v17 }
  0xf1   : > { %v399_v18 = vpop.f32.mrf.mxu0  ;;  %v431_v19 = vpop.f32.mrf.mxu1 }
  0xf2   : > { %v564_v24 = vmul.f32 %v399_v18, %v399_v18  ;;  %v572_v61 = vmul.f32 %v431_v19, %v431_v19 }
  0xf3   : > { %v895_v20 = vpop.f32.mrf.mxu0  ;;  %v903_v21 = vpop.f32.mrf.mxu1 }
  0xf4   : > { %v821_v22 = vpack.c.bf16 %v895_v20, %v894_v16  ;;  %v841_v23 = vpack.c.bf16 %v903_v21, %v902_v17  ;;  %v567_v38 = vmul.f32 %v895_v20, %v895_v20  ;;  %v575_v6 = vmul.f32 %v903_v21, %v903_v21 }
  0xf5   : > { %v402_v25 = vpop.f32.mrf.mxu0  ;;  %v434_v26 = vpop.f32.mrf.mxu1 }
  0xf6   : > { %853 = vst [vmem:[%s1123_s25 + $0x8] sm:$0xff] %v821_v22   ;;  %v816_v27 = vpack.c.bf16 %v402_v25, %v399_v18  ;;  %v542_v28 = vadd.f32 %v402_v25, %v399_v18  ;;  %v565_v29 = vmul.f32 %v402_v25, %v402_v25  ;;  %857 = vst [vmem:[%s1123_s25 + $0x28] sm:$0xff] %v841_v23  }
  0xf7   : > { %v836_v30 = vpack.c.bf16 %v434_v26, %v431_v19  ;;  %v898_v31 = vpop.f32.mrf.mxu0  ;;  %v906_v32 = vpop.f32.mrf.mxu1  ;;  %v573_v1 = vmul.f32 %v434_v26, %v434_v26 }
  0xf8   : > { %817 = vst [vmem:[%s1123_s25] sm:$0xff] %v816_v27   ;;  %v543_v34 = vadd.f32 %v894_v16, %v542_v28  ;;  %v580_v35 = vadd.f32 %v565_v29, %v564_v24  ;;  %v570_v55 = vmul.f32 %v898_v31, %v898_v31  ;;  %v578_v15 = vmul.f32 %v906_v32, %v906_v32 }
  0xf9   : > { %856 = vst [vmem:[%s1123_s25 + $0x20] sm:$0xff] %v836_v30   ;;  %v415_v36 = vpop.f32.mrf.mxu0  ;;  %v447_v37 = vpop.f32.mrf.mxu1 }
  0xfa   : > { %v581_v39 = vadd.f32 %v580_v35, %v566_v33  ;;  %v544_v40 = vadd.f32 %v895_v20, %v543_v34  ;;  %v568_v44 = vmul.f32 %v415_v36, %v415_v36  ;;  %v576_v10 = vmul.f32 %v447_v37, %v447_v37 }
  0xfb   : > { %v899_v41 = vpop.f32.mrf.mxu0  ;;  %v907_v42 = vpop.f32.mrf.mxu1 }
  0xfc   : > { %v545_v43 = vadd.f32 %v544_v40, %v415_v36  ;;  %v582_v45 = vadd.f32 %v581_v39, %v567_v38  ;;  %v831_v46 = vpack.c.bf16 %v899_v41, %v898_v31  ;;  %v851_v48 = vpack.c.bf16 %v907_v42, %v906_v32 }
  0xfd   : > { %v418_v47 = vpop.f32.mrf.mxu0  ;;  %v450_v49 = vpop.f32.mrf.mxu1  ;;  %v571_v58 = vmul.f32 %v899_v41, %v899_v41 }
  0xfe   : > { %v583_v50 = vadd.f32 %v582_v45, %v568_v44  ;;  %855 = vst [vmem:[%s1123_s25 + $0x18] sm:$0xff] %v831_v46   ;;  %v826_v51 = vpack.c.bf16 %v418_v47, %v415_v36  ;;  %v546_v52 = vadd.f32 %v545_v43, %v418_v47  ;;  %v569_v53 = vmul.f32 %v418_v47, %v418_v47 }
  0xff   : > { %859 = vst [vmem:[%s1123_s25 + $0x38] sm:$0xff] %v851_v48   ;;  %v846_v54 = vpack.c.bf16 %v450_v49, %v447_v37  ;;  %v577_v14 = vmul.f32 %v450_v49, %v450_v49 }
 0x100   : > { %854 = vst [vmem:[%s1123_s25 + $0x10] sm:$0xff] %v826_v51   ;;  %v547_v56 = vadd.f32 %v898_v31, %v546_v52  ;;  %v584_v57 = vadd.f32 %v583_v50, %v569_v53 }
 0x101   : > { %858 = vst [vmem:[%s1123_s25 + $0x30] sm:$0xff] %v846_v54  }
 0x102   : > { %v548_v59 = vadd.f32 %v899_v41, %v547_v56  ;;  %v585_v60 = vadd.f32 %v584_v57, %v570_v55 }
 0x104   : > { %v586_v62 = vadd.f32 %v585_v60, %v571_v58  ;;  %v549_v63 = vadd.f32 %v548_v59, %v431_v19  ;;  %v579_v19 = vmul.f32 %v907_v42, %v907_v42 }
 0x106   : > { %v550_v0 = vadd.f32 %v549_v63, %v434_v26  ;;  %v587_v2 = vadd.f32 %v586_v62, %v572_v61 }
 0x108   : > { %v551_v4 = vadd.f32 %v902_v17, %v550_v0  ;;  %v588_v5 = vadd.f32 %v587_v2, %v573_v1 }
 0x10a   : > { %v589_v7 = vadd.f32 %v588_v5, %v574_v3  ;;  %v552_v8 = vadd.f32 %v903_v21, %v551_v4 }
 0x10c   : > { %v553_v9 = vadd.f32 %v552_v8, %v447_v37  ;;  %v590_v11 = vadd.f32 %v589_v7, %v575_v6 }
 0x10e   : > { %v591_v12 = vadd.f32 %v590_v11, %v576_v10  ;;  %v554_v13 = vadd.f32 %v553_v9, %v450_v49 }
 0x110   : > { %v555_v16 = vadd.f32 %v906_v32, %v554_v13  ;;  %v592_v18 = vadd.f32 %v591_v12, %v577_v14 }
 0x112   : > { %v556_v20 = vadd.f32 %v907_v42, %v555_v16  ;;  %v593_v22 = vadd.f32 %v592_v18, %v578_v15 }
 0x114   : > { %v557_v17 = vrot.slane %v556_v20, 4  ;;  %v594_v23 = vadd.f32 %v593_v22, %v579_v19 }
 0x116   : > { %v558_v24 = vadd.f32 %v557_v17, %v556_v20  ;;  %v595_v25 = vrot.slane %v594_v23, 4 }
 0x118   : > { %v559_v21 = vrot.slane %v558_v24, 2  ;;  %v596_v26 = vadd.f32 %v595_v25, %v594_v23 }
 0x11a   : > { %v560_v27 = vadd.f32 %v559_v21, %v558_v24  ;;  %v597_v28 = vrot.slane %v596_v26, 2 }
 0x11c   : > { %v561_v29 = vrot.slane %v560_v27, 1  ;;  %v598_v30 = vadd.f32 %v597_v28, %v596_v26 }
 0x11e   : > { %v562_v31 = vadd.f32 %v561_v29, %v560_v27  ;;  %v599_v32 = vrot.slane %v598_v30, 1 }
 0x120   : > { %563 = vst [vmem:[%s235_s4] sm:$0x1] %v562_v31  ;;  %v600_v33 = vadd.f32 %v599_v32, %v598_v30 }
 0x122   : > { %601 = vst [vmem:[%s235_s4 + $0x1] sm:$0x1] %v600_v33 }
 0x123 PF: > { %s14_s16 = sadd.s32 1, %s1018_s16   ;;  %s1158_s12 = smov %s1010_s14 }
 0x124   : > { %p11_p8 = scmp.ge.s32.totalorder %s14_s16, 6   ;;  %s1159_s13 = smov %s1014_s15 }
 0x125   : > { %s1160_s14 = smov %s1163_s17  ;;  %s1161_s15 = smov %s1167_s18 }
 0x126   :  { %13 = sbr.rel (!%p11_p8) target bundleno = 3 (0x3), region = 70 }

// kernel: double_conv.5
= control target key start
LH: loop header
LB: loop body
LE: loop exit
PB: predicated region body
PF: predicated region fallthrough
CT: control target
= control target key end

     0   :  { %8 = vsyncpa [#allocation3], 0  ;;  %s883_s0 = inlined_call_operand.vmem [shape: bf16[2,16,16,128], index: 0, kind: input, shape index: {}]   ;;  %s884_s1 = inlined_call_operand.vmem [shape: f32[1,128], index: 1, kind: input, shape index: {}]   ;;  %s885_s2 = inlined_call_operand.vmem [shape: f32[1,128], index: 2, kind: input, shape index: {}]   ;;  %s886_s3 = inlined_call_operand.hbm [shape: f32[2,16,16,128], index: 3, kind: output, shape index: {}]  }
   0x1   :  { %10 = vsyncpa [#allocation3 + $0x1], 0  ;;  %s664_s12 = smov 0   ;;  %s666_s13 = smov 0  }
   0x2   :  { %s668_s14 = smov 0   ;;  %s670_s15 = smov 0  }
   0x3   :  { %s672_s16 = smov 0   ;;  %s674_s17 = smov 0  }
   0x4   :  { %s676_s18 = smov 0   ;;  %s678_s19 = smov 0  }
   0x5 LB: > { %s415_s20 = sadd.s32 4294967295, %s639_s19   ;;  %s416_s21 = sadd.s32 4294967294, %s639_s19   ;;  %s639_s19 = sphi %s678_s19, %s16_s19   ;;  %s635_s18 = sphi %s676_s18, %s895_s18   ;;  %s631_s17 = sphi %s674_s17, %s894_s17   ;;  %s627_s16 = sphi %s672_s16, %s893_s16   ;;  %s623_s15 = sphi %s670_s15, %s892_s15   ;;  %s619_s14 = sphi %s668_s14, %s891_s14   ;;  %s615_s13 = sphi %s666_s13, %s890_s13   ;;  %s611_s12 = sphi %s664_s12, %s889_s12  }
   0x6   : > { %s25_s22 = sadd.s32 1, %s631_s17  ;;  %s28_s23 = sadd.s32 1, %s635_s18 }
   0x7   : > { %p26_p0 = scmp.ge.s32.totalorder %s25_s22, 2  ;;  %p117_p1 = scmp.ne.s32.totalorder %s619_s14, %s615_s13 }
   0x8   : > { %p118_p2 = scmp.eq.s32.totalorder %s415_s20, 3  ;;  %p123_p5 = scmp.ne.s32.totalorder %s615_s13, %s611_s12 }
   0x9   : > { %s897_s22 = smov (%p26_p0, %s25_s22), 0  ;;  %s899_s23 = smov (!%p26_p0, %s28_s23), %s635_s18 }
   0xa   : > { %s103_s24 = ssub.s32 %s631_s17, %s897_s22  ;;  %p715_p3 = por %p118_p2, %p117_p1 }
   0xb   : > { %p30_p4 = scmp.ge.s32.totalorder %s899_s23, 2  ;;  %p124_p6 = scmp.eq.s32.totalorder %s416_s21, 3 }
   0xc   : > { %p419_p7 = scmp.ge.s32.totalorder %s639_s19, 1  ;;  %p162_p9 = scmp.lt.s32.totalorder %s639_s19, 5 }
   0xd   : > { %s901_s23 = smov (%p30_p4, %s899_s23), 0  ;;  %p724_p8 = por %p124_p6, %p123_p5 }
   0xe   : > { %s102_s27 = ssub.s32 %s635_s18, %s901_s23  ;;  %s107_s28 = sadd.s32 1, %s619_s14 }
   0xf   : > { %s104_s29 = sor.u32 %s103_s24, %s102_s27  ;;  %p163_p10 = pnand %p419_p7, %p162_p9 }
  0x10   : > { %p105_p11 = scmp.eq.s32.totalorder %s104_s29, 0  ;;  %s421_s4 = sshll.u32 (!%p163_p10), %s623_s15, 3 }
  0x11   : > { %166 = sbr.rel (%p163_p10) target bundleno = 62 (0x3e), region = 32  ;;  %p192_p12 = scmp.lt.s32.totalorder (!%p163_p10), %s627_s16, 1 }
  0x12   : > { %s733_s30 = scalar_select %p105_p11, %s619_s14, %s107_s28  }
  0x13   : > { %p194_p13 = scmp.lt.s32.totalorder (!%p163_p10), %s421_s4, 15  ;;  %s188_s10 = sand.u32 (!%p163_p10), 1, %s615_s13  }
  0x14   : > { %s755_s28 = sshll.u32 (!%p163_p10), %s188_s10, 7  ;;  %s641_s27 = smov (!%p163_p10), [#allocation2]  }
  0x16   : > { %s193_s5 = scalar_select %p192_p12, %s627_s16, 1  ;;  %v747_v0 = vld [vmem:[%s884_s1] ss:$0 sm:$0xff] }
  0x17   : > { %s903_s4 = smov (!%p194_p13, %s421_s4), 15  ;;  %v760_v9 = vld [vmem:[%s885_s2] ss:$0 sm:$0xff] }
  0x18   : > { %s423_s6 = sshll.u32 %s193_s5, 5  ;;  %s422_s7 = sshll.u32 %s903_s4, 1 }
  0x19   : > { %s198_s8 = sadd.s32 %s423_s6, %s422_s7  ;;  %s434_s5 = sshll.u32 %s623_s15, 4 }
  0x1a   : > { %s424_s9 = sshll.u32 %s198_s8, 2  ;;  %s430_s6 = sshll.u32 %s627_s16, 5 }
  0x1b   : > { %s742_s21 = scalar_lea.vmem %s883_s0, %s424_s9  ;;  %s785_s7 = scalar_lea.vmem [#allocation2], %s755_s28 }
  0x1c   : > { %v436_v1 = vld [vmem:[%s742_s21] sm:$0xff]   ;;  %v467_v2 = vld [vmem:[%s742_s21 + $0x8] sm:$0xff]   ;;  %v468_v3 = vld [vmem:[%s742_s21 + $0x10] sm:$0xff]   ;;  %s791_s15 = sadd.s32 %s434_s5, %s430_s6  ;;  %s330_s8 = sshll.u32 %s785_s7, 4  ;;  %s820_s8 = int_to_ptr.vmem [resolvable:$true] %s330_s8 }
  0x1d   : > { %v437_v4 = vunpack.c.l.bf16 %v436_v1  ;;  %v438_v5 = vunpack.c.h.bf16 %v436_v1  ;;  %v441_v6 = vunpack.c.l.bf16 %v467_v2  ;;  %v442_v7 = vunpack.c.h.bf16 %v467_v2  ;;  %v469_v8 = vld [vmem:[%s742_s21 + $0x18] sm:$0xff]   ;;  %v470_v30 = vld [vmem:[%s742_s21 + $0x20] sm:$0xff]   ;;  %v471_v31 = vld [vmem:[%s742_s21 + $0x28] sm:$0xff]   ;;  %s431_s16 = sshll.u32 %s791_s15, 7  ;;  %s547_s24 = scalar_lea.vmem %s820_s8, 2048 }
  0x1e   : > { %v445_v10 = vunpack.c.l.bf16 %v468_v3  ;;  %v446_v11 = vunpack.c.h.bf16 %v468_v3  ;;  %v449_v12 = vunpack.c.l.bf16 %v469_v8  ;;  %v450_v13 = vunpack.c.h.bf16 %v469_v8  ;;  %v472_v36 = vld [vmem:[%s742_s21 + $0x30] sm:$0xff]   ;;  %v473_v37 = vld [vmem:[%s742_s21 + $0x38] sm:$0xff]   ;;  %s818_s20 = scalar_lea.hbm %s886_s3, %s431_s16  ;;  %s832_s21 = scalar_lea.sflag [#allocation3], %s188_s10 }
  0x1f   : > { %v242_v14 = vmul.f32 %v437_v4, %v747_v0  ;;  %v243_v15 = vmul.f32 %v438_v5, %v747_v0  ;;  %v244_v16 = vmul.f32 %v441_v6, %v747_v0  ;;  %v245_v17 = vmul.f32 %v442_v7, %v747_v0  ;;  %p548_p0 = scmp.ne.s32.totalorder %s820_s8, %s547_s24  ;;  %s551_s28 = sshll.u32 %s641_s27, 4  ;;  %s552_s28 = int_to_ptr.vmem [resolvable:$false] %s551_s28 }
  0x20   : > { %v246_v18 = vmul.f32 %v445_v10, %v747_v0  ;;  %v247_v19 = vmul.f32 %v446_v11, %v747_v0  ;;  %v248_v20 = vmul.f32 %v449_v12, %v747_v0  ;;  %v249_v21 = vmul.f32 %v450_v13, %v747_v0  ;;  %s553_s29 = scalar_lea.vmem %s552_s28, 4096  ;;  %p554_p4 = scmp.lt.s32.totalorder %s820_s8, %s552_s28 }
  0x21   : > { %v265_v22 = vadd.f32 %v760_v9, %v242_v14  ;;  %v266_v23 = vadd.f32 %v760_v9, %v243_v15  ;;  %v267_v24 = vadd.f32 %v760_v9, %v244_v16  ;;  %v268_v25 = vadd.f32 %v760_v9, %v245_v17  ;;  %p549_p1 = pnand %p548_p0, %p715_p3  ;;  %p555_p5 = scmp.lt.s32.totalorder %s553_s29, %s547_s24 }
  0x22   : > { %v269_v26 = vadd.f32 %v760_v9, %v246_v18  ;;  %v270_v27 = vadd.f32 %v760_v9, %v247_v19  ;;  %v271_v28 = vadd.f32 %v760_v9, %v248_v20  ;;  %v272_v29 = vadd.f32 %v760_v9, %v249_v21 }
  0x23   : > { %v281_v32 = vmax.f32 %v265_v22, 0.0  ;;  %v282_v33 = vmax.f32 %v266_v23, 0.0  ;;  %v283_v34 = vmax.f32 %v267_v24, 0.0  ;;  %v284_v35 = vmax.f32 %v268_v25, 0.0  ;;  %p550_p2 = pneg %p549_p1  ;;  %p556_p6 = por %p555_p5, %p554_p4 }
  0x24   : > { %v285_v38 = vmax.f32 %v269_v26, 0.0  ;;  %v286_v39 = vmax.f32 %v270_v27, 0.0  ;;  %v287_v40 = vmax.f32 %v271_v28, 0.0  ;;  %v288_v41 = vmax.f32 %v272_v29, 0.0 }
  0x25   : > { %297 = vst [vmem:[%s785_s7] sm:$0xff] %v281_v32  ;;  %298 = vst [vmem:[%s785_s7 + $0x8] sm:$0xff] %v282_v33  ;;  %v453_v42 = vunpack.c.l.bf16 %v470_v30  ;;  %v454_v43 = vunpack.c.h.bf16 %v470_v30  ;;  %v457_v44 = vunpack.c.l.bf16 %v471_v31  ;;  %v458_v45 = vunpack.c.h.bf16 %v471_v31  ;;  %p557_p7 = pnand %p556_p6, %p550_p2 }
  0x26   : > { %299 = vst [vmem:[%s785_s7 + $0x10] sm:$0xff] %v283_v34  ;;  %300 = vst [vmem:[%s785_s7 + $0x18] sm:$0xff] %v284_v35  ;;  %v461_v46 = vunpack.c.l.bf16 %v472_v36  ;;  %v462_v47 = vunpack.c.h.bf16 %v472_v36  ;;  %v465_v48 = vunpack.c.l.bf16 %v473_v37  ;;  %v466_v49 = vunpack.c.h.bf16 %v473_v37 }
  0x27   : > { %301 = vst [vmem:[%s785_s7 + $0x20] sm:$0xff] %v285_v38  ;;  %302 = vst [vmem:[%s785_s7 + $0x28] sm:$0xff] %v286_v39  ;;  %v250_v50 = vmul.f32 %v453_v42, %v747_v0  ;;  %v251_v51 = vmul.f32 %v454_v43, %v747_v0  ;;  %v252_v52 = vmul.f32 %v457_v44, %v747_v0 }
  0x28   : > { %303 = vst [vmem:[%s785_s7 + $0x30] sm:$0xff] %v287_v40  ;;  %304 = vst [vmem:[%s785_s7 + $0x38] sm:$0xff] %v288_v41  ;;  %v253_v53 = vmul.f32 %v458_v45, %v747_v0  ;;  %v254_v54 = vmul.f32 %v461_v46, %v747_v0  ;;  %v255_v55 = vmul.f32 %v462_v47, %v747_v0 }
  0x29   : > { %v256_v56 = vmul.f32 %v465_v48, %v747_v0  ;;  %v257_v57 = vmul.f32 %v466_v49, %v747_v0  ;;  %v273_v58 = vadd.f32 %v760_v9, %v250_v50  ;;  %v274_v59 = vadd.f32 %v760_v9, %v251_v51 }
  0x2a   : > { %v275_v60 = vadd.f32 %v760_v9, %v252_v52  ;;  %v276_v61 = vadd.f32 %v760_v9, %v253_v53  ;;  %v277_v62 = vadd.f32 %v760_v9, %v254_v54  ;;  %v278_v63 = vadd.f32 %v760_v9, %v255_v55 }
  0x2b   : > { %v279_v0 = vadd.f32 %v760_v9, %v256_v56  ;;  %v280_v1 = vadd.f32 %v760_v9, %v257_v57  ;;  %v289_v2 = vmax.f32 %v273_v58, 0.0  ;;  %v290_v3 = vmax.f32 %v274_v59, 0.0 }
  0x2c   : > { %v291_v4 = vmax.f32 %v275_v60, 0.0  ;;  %v292_v5 = vmax.f32 %v276_v61, 0.0  ;;  %v293_v6 = vmax.f32 %v277_v62, 0.0  ;;  %v294_v7 = vmax.f32 %v278_v63, 0.0 }
  0x2d   : > { %v295_v8 = vmax.f32 %v279_v0, 0.0  ;;  %v296_v9 = vmax.f32 %v280_v1, 0.0  ;;  %305 = vst [vmem:[%s785_s7 + $0x40] sm:$0xff] %v289_v2  ;;  %306 = vst [vmem:[%s785_s7 + $0x48] sm:$0xff] %v290_v3 }
  0x2e   : > { %307 = vst [vmem:[%s785_s7 + $0x50] sm:$0xff] %v291_v4  ;;  %308 = vst [vmem:[%s785_s7 + $0x58] sm:$0xff] %v292_v5 }
  0x2f   : > { %309 = vst [vmem:[%s785_s7 + $0x60] sm:$0xff] %v293_v6  ;;  %310 = vst [vmem:[%s785_s7 + $0x68] sm:$0xff] %v294_v7 }
  0x30   : > { %311 = vst [vmem:[%s785_s7 + $0x70] sm:$0xff] %v295_v8  ;;  %312 = vst [vmem:[%s785_s7 + $0x78] sm:$0xff] %v296_v9 }
  0x31   : > { %560 = shalt.err (!%p557_p7)
}
  0x32   : > { %s561_s10 = scalar_lea.hbm %s818_s20, 2048  ;;  %s565_s6 = scalar_lea.hbm %s886_s3, 8192 }
  0x33   : > { %p562_p9 = scmp.ne.s32.totalorder %s818_s20, %s561_s10  ;;  %p566_p12 = scmp.lt.s32.totalorder %s818_s20, %s886_s3 }
  0x34   : > { %p567_p13 = scmp.lt.s32.totalorder %s565_s6, %s561_s10 }
  0x35   : > { %p563_p10 = pnand %p562_p9, %p715_p3 }
  0x36   : > { %p568_p0 = por %p567_p13, %p566_p12 }
  0x37   : > { %p564_p11 = pneg %p563_p10 }
  0x39   : > { %p569_p1 = pnand %p568_p0, %p564_p11 }
  0x3b   : > { %572 = shalt.err (!%p569_p1)
}
  0x3c   : > { %s642_s16 = smov 128   ;;  %s643_s9 = smov 8  }
  0x3d   : > { %474 = dma.vmem_to_hbm [thread:$0]  (%p715_p3), %s820_s8, 2048, %s818_s20, %s832_s21, %s642_s16, %s642_s16, %s643_s9  }
  0x3e PF: > { %p480_p2 = scmp.ge.s32.totalorder %s639_s19, 2  ;;  %s345_s11 = sand.u32 1, %s611_s12  }
  0x3f   : > { %s346_s24 = scalar_lea.sflag [#allocation3], %s345_s11 }
  0x40   : > { %p477_p4 = pnand %p480_p2, %p724_p8 }
  0x42   : > { %p478_p5 = pneg %p477_p4 }
  0x44   : > { %606 = dma.done.wait (%p478_p5), %s346_s24, 2048  }
  0x45   : > { %608 = vsyncadd (%p478_p5), %s346_s24, 4294965248  ;;  %s16_s19 = sadd.s32 1, %s639_s19   ;;  %s889_s12 = smov %s615_s13 }
  0x46   : > { %p13_p6 = scmp.ge.s32.totalorder %s16_s19, 6   ;;  %s890_s13 = smov %s619_s14 }
  0x47   : > { %s891_s14 = smov %s733_s30  ;;  %s892_s15 = smov %s631_s17 }
  0x48   : > { %s893_s16 = smov %s635_s18  ;;  %s894_s17 = smov %s897_s22 }
  0x49   : > { %s895_s18 = smov %s901_s23  ;;  %15 = sbr.rel (!%p13_p6) target bundleno = 5 (0x5), region = 67 }
  0x4e   :  { %351 = vsyncpa [#allocation3], 1 }
  0x4f   :  { %353 = vsyncpa [#allocation3 + $0x1], 1 }

// kernel: double_conv.4
= control target key start
LH: loop header
LB: loop body
LE: loop exit
PB: predicated region body
PF: predicated region fallthrough
CT: control target
= control target key end

     0   :  { %s4846_s18 = smov 0   ;;  %s4848_s19 = smov 0   ;;  %s5717_s0 = inlined_call_operand.vmem [shape: bf16[2,16,16,128], index: 0, kind: input, shape index: {}]   ;;  %s5718_s1 = inlined_call_operand.vmem [shape: f32[1,128], index: 1, kind: input, shape index: {}]   ;;  %s5719_s2 = inlined_call_operand.vmem [shape: f32[1,128], index: 2, kind: input, shape index: {}]   ;;  %s5720_s3 = inlined_call_operand.vmem [shape: bf16[1152,128], index: 3, kind: input, shape index: {}]   ;;  %s5721_s4 = inlined_call_operand.vmem [shape: bf16[2,16,16,128], index: 4, kind: output, shape index: {0}]   ;;  %s5722_s5 = inlined_call_operand.vmem [shape: f32[2,2,2,128], index: 5, kind: output, shape index: {1}]  }
   0x1   :  { %s4850_s20 = smov 0   ;;  %s4852_s21 = smov 0  }
   0x2   :  { %s4854_s22 = smov 0  }
   0x3 LB: > { %s25_s23 = sadd.s32 1, %s4804_s20  ;;  %s28_s24 = sadd.s32 1, %s4808_s21  ;;  %s4812_s22 = sphi %s4854_s22, %s16_s22   ;;  %s4808_s21 = sphi %s4852_s21, %s5780_s21   ;;  %s4804_s20 = sphi %s4850_s20, %s5779_s20   ;;  %s4800_s19 = sphi %s4848_s19, %s5778_s19   ;;  %s4796_s18 = sphi %s4846_s18, %s5777_s18  }
   0x4   : > { %p26_p0 = scmp.ge.s32.totalorder %s25_s23, 2  ;;  %p3883_p1 = scmp.ge.s32.totalorder %s4812_s22, 1 }
   0x5   : > { %p206_p2 = scmp.lt.s32.totalorder %s4812_s22, 5 }
   0x6   : > { %s5782_s23 = smov (%p26_p0, %s25_s23), 0  ;;  %s5784_s24 = smov (!%p26_p0, %s28_s24), %s4808_s21 }
   0x7   : > { %p207_p3 = pnand %p3883_p1, %p206_p2  ;;  %p30_p4 = scmp.ge.s32.totalorder %s5784_s24, 2 }
   0x9   : > { %s5786_s24 = smov (%p30_p4, %s5784_s24), 0  ;;  %210 = sbr.rel (%p207_p3) target bundleno = 626 (0x272), region = 36 }
   0xe   : > { %vm275_vm0 = vcmask 1040384   ;;  %vm276_vm1 = vsmask.f32 256  ;;  %v281_v0 = vld [vmem:[#allocation2 + $0xc] sm:$0x1]  ;;  %p247_p5 = scmp.lt.s32.totalorder %s4800_s19, 1 }
   0xf   : > { %vm4880_vm2 = vmand %vm275_vm0, %vm276_vm1  ;;  %v284_v2 = vld [vmem:[#allocation2 + $0x18] sm:$0x1]  ;;  %v287_v3 = vld [vmem:[#allocation2 + $0x24] sm:$0x1]  ;;  %vm308_vm3 = vsmask.f32 7938 }
  0x10   : > { %v282_v4 = vsel %vm4880_vm2, 0, %v281_v0  ;;  %v285_v5 = vsel %vm4880_vm2, 0, %v284_v2  ;;  %v288_v6 = vsel %vm4880_vm2, 0, %v287_v3  ;;  %v290_v7 = vld [vmem:[#allocation2 + $0x30] sm:$0x1]  ;;  %s5788_s19 = smov (!%p247_p5, %s4800_s19), 1  ;;  %vm4896_vm4 = vmand %vm275_vm0, %vm308_vm3 }
  0x11   : > { %283 = vst [vmem:[#allocation2 + $0xc] sm:$0x1] %v282_v4  ;;  %286 = vst [vmem:[#allocation2 + $0x18] sm:$0x1] %v285_v5  ;;  %v291_v8 = vsel %vm4880_vm2, 0, %v290_v7  ;;  %s4901_s25 = sshll.u32 %s4796_s18, 3 }
  0x12   : > { %289 = vst [vmem:[#allocation2 + $0x24] sm:$0x1] %v288_v6  ;;  %v293_v9 = vld [vmem:[#allocation2 + $0x3c] sm:$0x1]  ;;  %v296_v10 = vld [vmem:[#allocation2 + $0x48] sm:$0x1] }
  0x13   : > { %292 = vst [vmem:[#allocation2 + $0x30] sm:$0x1] %v291_v8  ;;  %v294_v12 = vsel %vm4880_vm2, 0, %v293_v9  ;;  %v297_v13 = vsel %vm4880_vm2, 0, %v296_v10  ;;  %v299_v14 = vld [vmem:[#allocation2 + $0x54] sm:$0x1] }
  0x14   : > { %v302_v15 = vld [vmem:[#allocation2 + $0x60] sm:$0x1]  ;;  %295 = vst [vmem:[#allocation2 + $0x3c] sm:$0x1] %v294_v12  ;;  %298 = vst [vmem:[#allocation2 + $0x48] sm:$0x1] %v297_v13 }
  0x15   : > { %v300_v16 = vsel %vm4880_vm2, 0, %v299_v14  ;;  %v303_v17 = vsel %vm4880_vm2, 0, %v302_v15  ;;  %v313_v18 = vld [vmem:[#allocation2 + $0x14] sm:$0x1]  ;;  %v316_v19 = vld [vmem:[#allocation2 + $0x20] sm:$0x1] }
  0x16   : > { %301 = vst [vmem:[#allocation2 + $0x54] sm:$0x1] %v300_v16  ;;  %304 = vst [vmem:[#allocation2 + $0x60] sm:$0x1] %v303_v17  ;;  %v314_v20 = vsel %vm4896_vm4, 0, %v313_v18  ;;  %v317_v21 = vsel %vm4896_vm4, 0, %v316_v19 }
  0x17   : > { %v319_v22 = vld [vmem:[#allocation2 + $0x2c] sm:$0x1]  ;;  %v322_v23 = vld [vmem:[#allocation2 + $0x38] sm:$0x1]  ;;  %315 = vst [vmem:[#allocation2 + $0x14] sm:$0x1] %v314_v20 }
  0x18   : > { %318 = vst [vmem:[#allocation2 + $0x20] sm:$0x1] %v317_v21  ;;  %v320_v24 = vsel %vm4896_vm4, 0, %v319_v22  ;;  %v323_v25 = vsel %vm4896_vm4, 0, %v322_v23  ;;  %v325_v26 = vld [vmem:[#allocation2 + $0x44] sm:$0x1] }
  0x19   : > { %v328_v27 = vld [vmem:[#allocation2 + $0x50] sm:$0x1]  ;;  %321 = vst [vmem:[#allocation2 + $0x2c] sm:$0x1] %v320_v24  ;;  %324 = vst [vmem:[#allocation2 + $0x38] sm:$0x1] %v323_v25 }
  0x1a   : > { %v326_v28 = vsel %vm4896_vm4, 0, %v325_v26  ;;  %v329_v29 = vsel %vm4896_vm4, 0, %v328_v27  ;;  %v331_v30 = vld [vmem:[#allocation2 + $0x5c] sm:$0x1]  ;;  %v334_v31 = vld [vmem:[#allocation2 + $0x68] sm:$0x1] }
  0x1b   : > { %327 = vst [vmem:[#allocation2 + $0x44] sm:$0x1] %v326_v28  ;;  %330 = vst [vmem:[#allocation2 + $0x50] sm:$0x1] %v329_v29  ;;  %v332_v32 = vsel %vm4896_vm4, 0, %v331_v30  ;;  %v335_v33 = vsel %vm4896_vm4, 0, %v334_v31 }
  0x1c   : > { %v278_v34 = vld [vmem:[#allocation2] sm:$0x1]  ;;  %v305_v35 = vld [vmem:[#allocation2 + $0x6c] sm:$0x1]  ;;  %333 = vst [vmem:[#allocation2 + $0x5c] sm:$0x1] %v332_v32 }
  0x1d   : > { %336 = vst [vmem:[#allocation2 + $0x68] sm:$0x1] %v335_v33  ;;  %v279_v36 = vsel %vm4880_vm2, 0, %v278_v34  ;;  %v306_v37 = vsel %vm4880_vm2, 0, %v305_v35  ;;  %v310_v38 = vld [vmem:[#allocation2 + $0x8] sm:$0x1] }
  0x1e   : > { %v337_v39 = vld [vmem:[#allocation2 + $0x74] sm:$0x1]  ;;  %280 = vst [vmem:[#allocation2] sm:$0x1] %v279_v36  ;;  %307 = vst [vmem:[#allocation2 + $0x6c] sm:$0x1] %v306_v37 }
  0x1f   : > { %v311_v40 = vsel %vm4896_vm4, 0, %v310_v38  ;;  %v338_v41 = vsel %vm4896_vm4, 0, %v337_v39  ;;  %s4114_s26 = sshll.u32 %s5788_s19, 7  ;;  %p255_p6 = scmp.lt.s32.totalorder %s4901_s25, 15  ;;  %v4949_v42 = vld [vmem:[%s5718_s1] ss:$0 sm:$0xff] }
  0x20   : > { %312 = vst [vmem:[#allocation2 + $0x8] sm:$0x1] %v311_v40  ;;  %339 = vst [vmem:[#allocation2 + $0x74] sm:$0x1] %v338_v41  ;;  %s4940_s29 = scalar_lea.vmem %s5717_s0, %s4114_s26  ;;  %s3888_s30 = sshll.u32 %s5788_s19, 5  ;;  %vm646_vm5 = vcmask 1043456  }
  0x21   : > { %s256_s6 = scalar_select %p255_p6, %s4901_s25, 15  ;;  %v4970_v51 = vld [vmem:[%s5719_s2] ss:$0 sm:$0xff]  ;;  %vm483_vm6 = vsmask.f32 4368  ;;  %vm4999_vm7 = vmand %vm646_vm5, %vm308_vm3 }
  0x22   : > { %p265_p7 = scmp.lt.s32.totalorder %s4796_s18, 1  ;;  %s4116_s8 = sshll.u32 %s4796_s18, 6  ;;  %v648_v35 = vld [vmem:[#allocation2 + $0xc] sm:$0xf]  ;;  %vm5005_vm8 = vmor %vm276_vm1, %vm483_vm6  ;;  %v652_v40 = vld [vmem:[#allocation2 + $0x14] sm:$0x1] }
  0x23   : > { %s3887_s7 = sshll.u32 %s256_s6, 1  ;;  %s4952_s12 = scalar_lea.vmem %s4940_s29, %s4116_s8 }
  0x24   : > { %s259_s9 = sadd.s32 %s3888_s30, %s3887_s7  ;;  %v4156_v43 = vld [vmem:[%s4952_s12] sm:$0xff]   ;;  %v4235_v44 = vld [vmem:[%s4952_s12 + $0x8] sm:$0xff]   ;;  %v4236_v45 = vld [vmem:[%s4952_s12 + $0x10] sm:$0xff]   ;;  %s3890_s17 = sshll.u32 %s5788_s19, 1 }
  0x25   : > { %s3889_s13 = sshll.u32 %s259_s9, 2  ;;  %v4157_v46 = vunpack.c.l.bf16 %v4156_v43  ;;  %v4158_v47 = vunpack.c.h.bf16 %v4156_v43  ;;  %v4161_v48 = vunpack.c.l.bf16 %v4235_v44  ;;  %v4162_v49 = vunpack.c.h.bf16 %v4235_v44  ;;  %v4237_v50 = vld [vmem:[%s4952_s12 + $0x18] sm:$0xff]   ;;  %p3913_p8 = scmp.ne.s32.totalorder %s4796_s18, 0 }
  0x26   : > { %s4960_s16 = scalar_lea.vmem %s5721_s4, %s3889_s13  ;;  %v4165_v52 = vunpack.c.l.bf16 %v4236_v45  ;;  %v4166_v53 = vunpack.c.h.bf16 %v4236_v45  ;;  %v4169_v54 = vunpack.c.l.bf16 %v4237_v50  ;;  %v4170_v55 = vunpack.c.h.bf16 %v4237_v50  ;;  %v655_v50 = vld [vmem:[#allocation2 + $0x18] sm:$0xf] }
  0x27   : > { %s266_s26 = scalar_select %p265_p7, %s4796_s18, 1  ;;  %v381_v56 = vmul.f32 %v4157_v46, %v4949_v42  ;;  %v382_v57 = vmul.f32 %v4158_v47, %v4949_v42  ;;  %v383_v58 = vmul.f32 %v4161_v48, %v4949_v42  ;;  %v384_v59 = vmul.f32 %v4162_v49, %v4949_v42 }
  0x28   : > { %v385_v60 = vmul.f32 %v4165_v52, %v4949_v42  ;;  %v386_v61 = vmul.f32 %v4166_v53, %v4949_v42  ;;  %v387_v62 = vmul.f32 %v4169_v54, %v4949_v42  ;;  %v388_v63 = vmul.f32 %v4170_v55, %v4949_v42  ;;  %v659_v52 = vld [vmem:[#allocation2 + $0x20] sm:$0x1] }
  0x29   : > { %s268_s19 = sadd.s32 %s3890_s17, %s266_s26  ;;  %v403_v0 = vadd.f32 %v4970_v51, %v381_v56  ;;  %v404_v2 = vadd.f32 %v4970_v51, %v382_v57  ;;  %v405_v3 = vadd.f32 %v4970_v51, %v383_v58  ;;  %v406_v4 = vadd.f32 %v4970_v51, %v384_v59 }
  0x2a   : > { %s3891_s30 = sshll.u32 %s268_s19, 1  ;;  %v407_v5 = vadd.f32 %v4970_v51, %v385_v60  ;;  %v408_v6 = vadd.f32 %v4970_v51, %v386_v61  ;;  %v409_v7 = vadd.f32 %v4970_v51, %v387_v62  ;;  %v410_v8 = vadd.f32 %v4970_v51, %v388_v63 }
  0x2b   : > { %s4987_s8 = scalar_lea.vmem %s5722_s5, %s3891_s30  ;;  %v419_v9 = vmax.f32 %v403_v0, 0.0  ;;  %v420_v10 = vmax.f32 %v404_v2, 0.0  ;;  %v421_v11 = vmax.f32 %v405_v3, 0.0  ;;  %v422_v12 = vmax.f32 %v406_v4, 0.0  ;;  %v662_v0 = vld [vmem:[#allocation2 + $0x24] sm:$0xf] }
  0x2c   : > { %v423_v13 = vmax.f32 %v407_v5, 0.0  ;;  %v424_v14 = vmax.f32 %v408_v6, 0.0  ;;  %v425_v15 = vmax.f32 %v409_v7, 0.0  ;;  %v426_v16 = vmax.f32 %v410_v8, 0.0  ;;  %v4238_v3 = vld [vmem:[%s4952_s12 + $0x20] sm:$0xff]  }
  0x2d   : > { %v4117_v17 = vpack.c.bf16 %v419_v9, %v419_v9  ;;  %v4118_v18 = vpack.c.bf16 %v420_v10, %v420_v10  ;;  %v4119_v19 = vpack.c.bf16 %v421_v11, %v421_v11  ;;  %v4120_v20 = vpack.c.bf16 %v422_v12, %v422_v12  ;;  %v666_v6 = vld [vmem:[#allocation2 + $0x2c] sm:$0x1] }
  0x2e   : > { %v4121_v21 = vpack.c.bf16 %v423_v13, %v423_v13  ;;  %v4122_v22 = vpack.c.bf16 %v424_v14, %v424_v14  ;;  %v4993_v23 = vpack.c.bf16 %v425_v15, %v425_v15  ;;  %v4995_v24 = vpack.c.bf16 %v426_v16, %v426_v16  ;;  %v4239_v9 = vld [vmem:[%s4952_s12 + $0x28] sm:$0xff]  }
  0x2f   : > { %v486_v25 = vshrl.u32 %v4117_v17, 16  ;;  %v489_v26 = vshll.u32 %v4117_v17, 16  ;;  %v494_v27 = vshrl.u32 %v4118_v18, 16  ;;  %v497_v28 = vshll.u32 %v4118_v18, 16 }
  0x30   : > { %v503_v29 = vshrl.u32 %v4119_v19, 16  ;;  %v506_v30 = vshll.u32 %v4119_v19, 16  ;;  %v511_v31 = vshrl.u32 %v4120_v20, 16  ;;  %v514_v32 = vshll.u32 %v4120_v20, 16  ;;  %v669_v20 = vld [vmem:[#allocation2 + $0x30] sm:$0xf] }
  0x31   : > { %v488_v33 = vrot.slane %v486_v25, 7  ;;  %v496_v36 = vrot.slane %v494_v27, 7  ;;  %v520_v37 = vshrl.u32 %v4121_v21, 16  ;;  %v523_v38 = vshll.u32 %v4121_v21, 16 }
  0x32   : > { %v505_v41 = vrot.slane %v503_v29, 7  ;;  %v513_v43 = vrot.slane %v511_v31, 7  ;;  %v528_v44 = vshrl.u32 %v4122_v22, 16  ;;  %v531_v45 = vshll.u32 %v4122_v22, 16 }
  0x33   : > { %v491_v46 = vor.u32 %v489_v26, %v488_v33  ;;  %v492_v47 = vrot.slane %v488_v33, 4  ;;  %v499_v48 = vor.u32 %v497_v28, %v496_v36  ;;  %v501_v49 = vrot.slane %v496_v36, 4  ;;  %v673_v26 = vld [vmem:[#allocation2 + $0x38] sm:$0x1] }
  0x34   : > { %v508_v53 = vor.u32 %v506_v30, %v505_v41  ;;  %v509_v54 = vrot.slane %v505_v41, 4  ;;  %v516_v55 = vor.u32 %v514_v32, %v513_v43  ;;  %v518_v56 = vrot.slane %v513_v43, 4 }
  0x35   : > { %v649_v57 = vsel %vm4999_vm7, %v491_v46, %v648_v35  ;;  %v500_v58 = vsel %vm5005_vm8, %v492_v47, %v499_v48  ;;  %v653_v59 = vsel %vm4880_vm2, %v501_v49, %v652_v40  ;;  %v522_v60 = vrot.slane %v520_v37, 7 }
  0x36   : > { %650 = vst [vmem:[#allocation2 + $0xc] sm:$0xf] %v649_v57  ;;  %651 = vst [vmem:[#allocation2 + $0x10] sm:$0xf] %v500_v58  ;;  %v656_v61 = vsel %vm4999_vm7, %v508_v53, %v655_v50  ;;  %v517_v62 = vsel %vm5005_vm8, %v509_v54, %v516_v55  ;;  %v660_v63 = vsel %vm4880_vm2, %v518_v56, %v659_v52  ;;  %v530_v2 = vrot.slane %v528_v44, 7 }
  0x37   : > { %654 = vst [vmem:[#allocation2 + $0x14] sm:$0x1] %v653_v59  ;;  %657 = vst [vmem:[#allocation2 + $0x18] sm:$0xf] %v656_v61  ;;  %v525_v4 = vor.u32 %v523_v38, %v522_v60  ;;  %v526_v5 = vrot.slane %v522_v60, 4  ;;  %v537_v7 = vshrl.u32 %v4993_v23, 16  ;;  %v4173_v16 = vunpack.c.l.bf16 %v4238_v3 }
  0x38   : > { %658 = vst [vmem:[#allocation2 + $0x1c] sm:$0xf] %v517_v62  ;;  %661 = vst [vmem:[#allocation2 + $0x20] sm:$0x1] %v660_v63  ;;  %v540_v8 = vshll.u32 %v4993_v23, 16  ;;  %v533_v10 = vor.u32 %v531_v45, %v530_v2  ;;  %v535_v11 = vrot.slane %v530_v2, 4  ;;  %v4174_v17 = vunpack.c.h.bf16 %v4238_v3 }
  0x39   : > { %v545_v12 = vshrl.u32 %v4995_v24, 16  ;;  %v548_v13 = vshll.u32 %v4995_v24, 16  ;;  %v663_v14 = vsel %vm4999_vm7, %v525_v4, %v662_v0  ;;  %v539_v15 = vrot.slane %v537_v7, 7  ;;  %v4240_v23 = vld [vmem:[%s4952_s12 + $0x30] sm:$0xff]   ;;  %v4241_v38 = vld [vmem:[%s4952_s12 + $0x38] sm:$0xff]  }
  0x3a   : > { %664 = vst [vmem:[#allocation2 + $0x24] sm:$0xf] %v663_v14  ;;  %v534_v18 = vsel %vm5005_vm8, %v526_v5, %v533_v10  ;;  %v667_v19 = vsel %vm4880_vm2, %v535_v11, %v666_v6  ;;  %v4177_v22 = vunpack.c.l.bf16 %v4239_v9  ;;  %v389_v27 = vmul.f32 %v4173_v16, %v4949_v42 }
  0x3b   : > { %v547_v21 = vrot.slane %v545_v12, 7  ;;  %665 = vst [vmem:[#allocation2 + $0x28] sm:$0xf] %v534_v18  ;;  %668 = vst [vmem:[#allocation2 + $0x2c] sm:$0x1] %v667_v19  ;;  %v542_v24 = vor.u32 %v540_v8, %v539_v15  ;;  %v543_v25 = vrot.slane %v539_v15, 4  ;;  %v390_v28 = vmul.f32 %v4174_v17, %v4949_v42 }
  0x3c   : > { %v391_v31 = vmul.f32 %v4177_v22, %v4949_v42  ;;  %v4178_v32 = vunpack.c.h.bf16 %v4239_v9  ;;  %v411_v35 = vadd.f32 %v4970_v51, %v389_v27  ;;  %v4181_v37 = vunpack.c.l.bf16 %v4240_v23  ;;  %v676_v8 = vld [vmem:[#allocation2 + $0x3c] sm:$0xf]  ;;  %v680_v12 = vld [vmem:[#allocation2 + $0x44] sm:$0x1] }
  0x3d   : > { %v550_v29 = vor.u32 %v548_v13, %v547_v21  ;;  %v552_v30 = vrot.slane %v547_v21, 4  ;;  %v670_v33 = vsel %vm4999_vm7, %v542_v24, %v669_v20  ;;  %v412_v36 = vadd.f32 %v4970_v51, %v390_v28  ;;  %v683_v21 = vld [vmem:[#allocation2 + $0x48] sm:$0xf] }
  0x3e   : > { %671 = vst [vmem:[#allocation2 + $0x30] sm:$0xf] %v670_v33  ;;  %v413_v43 = vadd.f32 %v4970_v51, %v391_v31  ;;  %v392_v44 = vmul.f32 %v4178_v32, %v4949_v42  ;;  %v427_v45 = vmax.f32 %v411_v35, 0.0  ;;  %v393_v47 = vmul.f32 %v4181_v37, %v4949_v42 }
  0x3f   : > { %v551_v40 = vsel %vm5005_vm8, %v543_v25, %v550_v29  ;;  %v674_v41 = vsel %vm4880_vm2, %v552_v30, %v673_v26  ;;  %v428_v46 = vmax.f32 %v412_v36, 0.0  ;;  %v4182_v48 = vunpack.c.h.bf16 %v4240_v23  ;;  %v687_v29 = vld [vmem:[#allocation2 + $0x50] sm:$0x1]  ;;  %v690_v36 = vld [vmem:[#allocation2 + $0x54] sm:$0xf] }
  0x40   : > { %672 = vst [vmem:[#allocation2 + $0x34] sm:$0xf] %v551_v40  ;;  %675 = vst [vmem:[#allocation2 + $0x38] sm:$0x1] %v674_v41  ;;  %v429_v49 = vmax.f32 %v413_v43, 0.0  ;;  %v414_v50 = vadd.f32 %v4970_v51, %v392_v44  ;;  %v4185_v52 = vunpack.c.l.bf16 %v4241_v38  ;;  %v4186_v53 = vunpack.c.h.bf16 %v4241_v38 }
  0x41   : > { %v4125_v54 = vpack.c.bf16 %v427_v45, %v427_v45  ;;  %v4126_v55 = vpack.c.bf16 %v428_v46, %v428_v46  ;;  %v415_v56 = vadd.f32 %v4970_v51, %v393_v47  ;;  %v394_v57 = vmul.f32 %v4182_v48, %v4949_v42 }
  0x42   : > { %v4127_v58 = vpack.c.bf16 %v429_v49, %v429_v49  ;;  %v430_v59 = vmax.f32 %v414_v50, 0.0  ;;  %v395_v60 = vmul.f32 %v4185_v52, %v4949_v42  ;;  %v396_v61 = vmul.f32 %v4186_v53, %v4949_v42 }
  0x43   : > { %v554_v62 = vshrl.u32 %v4125_v54, 16  ;;  %v557_v63 = vshll.u32 %v4125_v54, 16  ;;  %v562_v0 = vshrl.u32 %v4126_v55, 16  ;;  %v565_v2 = vshll.u32 %v4126_v55, 16 }
  0x44   : > { %v571_v3 = vshrl.u32 %v4127_v58, 16  ;;  %v574_v4 = vshll.u32 %v4127_v58, 16  ;;  %v4128_v5 = vpack.c.bf16 %v430_v59, %v430_v59  ;;  %v431_v6 = vmax.f32 %v415_v56, 0.0  ;;  %v694_v58 = vld [vmem:[#allocation2 + $0x5c] sm:$0x1] }
  0x45   : > { %v556_v7 = vrot.slane %v554_v62, 7  ;;  %v564_v9 = vrot.slane %v562_v0, 7  ;;  %v416_v10 = vadd.f32 %v4970_v51, %v394_v57  ;;  %v417_v11 = vadd.f32 %v4970_v51, %v395_v60  ;;  %v697_v59 = vld [vmem:[#allocation2 + $0x60] sm:$0xf] }
  0x46   : > { %v573_v13 = vrot.slane %v571_v3, 7  ;;  %v579_v14 = vshrl.u32 %v4128_v5, 16  ;;  %v582_v15 = vshll.u32 %v4128_v5, 16  ;;  %v4129_v16 = vpack.c.bf16 %v431_v6, %v431_v6 }
  0x47   : > { %v559_v17 = vor.u32 %v557_v63, %v556_v7  ;;  %v560_v18 = vrot.slane %v556_v7, 4  ;;  %v567_v19 = vor.u32 %v565_v2, %v564_v9  ;;  %v569_v20 = vrot.slane %v564_v9, 4  ;;  %v701_v7 = vld [vmem:[#allocation2 + $0x68] sm:$0x1] }
  0x48   : > { %v576_v22 = vor.u32 %v574_v4, %v573_v13  ;;  %v577_v23 = vrot.slane %v573_v13, 4  ;;  %v581_v24 = vrot.slane %v579_v14, 7  ;;  %v588_v25 = vshrl.u32 %v4129_v16, 16 }
  0x49   : > { %v677_v26 = vsel %vm4999_vm7, %v559_v17, %v676_v8  ;;  %v568_v27 = vsel %vm5005_vm8, %v560_v18, %v567_v19  ;;  %v681_v28 = vsel %vm4880_vm2, %v569_v20, %v680_v12  ;;  %v591_v30 = vshll.u32 %v4129_v16, 16 }
  0x4a   : > { %678 = vst [vmem:[#allocation2 + $0x3c] sm:$0xf] %v677_v26  ;;  %679 = vst [vmem:[#allocation2 + $0x40] sm:$0xf] %v568_v27  ;;  %v684_v31 = vsel %vm4999_vm7, %v576_v22, %v683_v21  ;;  %v584_v32 = vor.u32 %v582_v15, %v581_v24  ;;  %v586_v33 = vrot.slane %v581_v24, 4  ;;  %v590_v35 = vrot.slane %v588_v25, 7 }
  0x4b   : > { %682 = vst [vmem:[#allocation2 + $0x44] sm:$0x1] %v681_v28  ;;  %685 = vst [vmem:[#allocation2 + $0x48] sm:$0xf] %v684_v31  ;;  %v432_v37 = vmax.f32 %v416_v10, 0.0  ;;  %v433_v38 = vmax.f32 %v417_v11, 0.0  ;;  %v418_v40 = vadd.f32 %v4970_v51, %v396_v61 }
  0x4c   : > { %v585_v41 = vsel %vm5005_vm8, %v577_v23, %v584_v32  ;;  %v688_v43 = vsel %vm4880_vm2, %v586_v33, %v687_v29  ;;  %v593_v44 = vor.u32 %v591_v30, %v590_v35  ;;  %v594_v55 = vrot.slane %v590_v35, 4 }
  0x4d   : > { %686 = vst [vmem:[#allocation2 + $0x4c] sm:$0xf] %v585_v41  ;;  %689 = vst [vmem:[#allocation2 + $0x50] sm:$0x1] %v688_v43  ;;  %v4130_v45 = vpack.c.bf16 %v432_v37, %v432_v37  ;;  %v4131_v46 = vpack.c.bf16 %v433_v38, %v433_v38  ;;  %v434_v47 = vmax.f32 %v418_v40, 0.0 }
  0x4e   : > { %v691_v48 = vsel %vm4999_vm7, %v593_v44, %v690_v36 }
  0x4f   : > { %692 = vst [vmem:[#allocation2 + $0x54] sm:$0xf] %v691_v48  ;;  %v596_v49 = vshrl.u32 %v4130_v45, 16  ;;  %v599_v50 = vshll.u32 %v4130_v45, 16  ;;  %v605_v52 = vshrl.u32 %v4131_v46, 16  ;;  %v608_v53 = vshll.u32 %v4131_v46, 16 }
  0x50   : > { %v4132_v54 = vpack.c.bf16 %v434_v47, %v434_v47 }
  0x51   : > { %v598_v56 = vrot.slane %v596_v49, 7  ;;  %v607_v57 = vrot.slane %v605_v52, 7 }
  0x52   : > { %v613_v60 = vshrl.u32 %v4132_v54, 16  ;;  %v616_v61 = vshll.u32 %v4132_v54, 16 }
  0x53   : > { %v601_v62 = vor.u32 %v599_v50, %v598_v56  ;;  %v603_v63 = vrot.slane %v598_v56, 4  ;;  %v610_v0 = vor.u32 %v608_v53, %v607_v57  ;;  %v611_v2 = vrot.slane %v607_v57, 4 }
  0x54   : > { %v615_v3 = vrot.slane %v613_v60, 7 }
  0x55   : > { %v602_v4 = vsel %vm5005_vm8, %v594_v55, %v601_v62  ;;  %v695_v5 = vsel %vm4880_vm2, %v603_v63, %v694_v58  ;;  %v698_v6 = vsel %vm4999_vm7, %v610_v0, %v697_v59  ;;  %707 = sbr.rel (%p3913_p8) target bundleno = 93 (0x5d), region = 40 }
  0x56   : > { %693 = vst [vmem:[#allocation2 + $0x58] sm:$0xf] %v602_v4  ;;  %696 = vst [vmem:[#allocation2 + $0x5c] sm:$0x1] %v695_v5  ;;  %v618_v8 = vor.u32 %v616_v61, %v615_v3  ;;  %v620_v9 = vrot.slane %v615_v3, 4 }
  0x57   : > { %699 = vst [vmem:[#allocation2 + $0x60] sm:$0xf] %v698_v6 }
  0x58   : > { %v619_v10 = vsel %vm5005_vm8, %v611_v2, %v618_v8  ;;  %v702_v11 = vsel %vm4880_vm2, %v620_v9, %v701_v7 }
  0x59   : > { %700 = vst [vmem:[#allocation2 + $0x64] sm:$0xf] %v619_v10  ;;  %703 = vst [vmem:[#allocation2 + $0x68] sm:$0x1] %v702_v11 }
  0x5a   : > { %v708_v12 = vld [vmem:[#allocation2] sm:$0xf]  ;;  %v712_v13 = vld [vmem:[#allocation2 + $0x8] sm:$0x1]  ;;  %v4814_v15 = vmov 0  }
  0x5b   : > { %v709_v14 = vsel %vm4999_vm7, 0, %v708_v12  ;;  %711 = vst [vmem:[#allocation2 + $0x4] sm:$0xf] %v4814_v15  ;;  %v713_v16 = vsel %vm4880_vm2, 0, %v712_v13 }
  0x5c   : > { %710 = vst [vmem:[#allocation2] sm:$0xf] %v709_v14  ;;  %714 = vst [vmem:[#allocation2 + $0x8] sm:$0x1] %v713_v16 }
  0x5d PF: > { %p3914_p9 = scmp.le.s32.totalorder %s4796_s18, 0 }
  0x5e   : > { %s3915_s9 = sadd.s32 (!%p3914_p9), 4294967295, %s4901_s25 }
  0x5f   : > { %718 = sbr.rel (%p3914_p9) target bundleno = 120 (0x78), region = 44  ;;  %s4133_s10 = sshll.u32 (!%p3914_p9), %s3915_s9, 3 }
  0x60   : > { %s722_s11 = scalar_lea.vmem (!%p3914_p9), %s4940_s29, %s4133_s10 }
  0x64   : > { %v4188_v17 = vld [vmem:[%s722_s11] sm:$0xff]   ;;  %v763_v36 = vld [vmem:[#allocation2 + $0x8] sm:$0x1] }
  0x65   : > { %v4189_v18 = vunpack.c.l.bf16 %v4188_v17  ;;  %v4190_v19 = vunpack.c.h.bf16 %v4188_v17  ;;  %v759_v35 = vld [vmem:[#allocation2] sm:$0xf] }
  0x67   : > { %v727_v20 = vmul.f32 %v4189_v18, %v4949_v42  ;;  %v728_v21 = vmul.f32 %v4190_v19, %v4949_v42 }
  0x69   : > { %v729_v22 = vadd.f32 %v4970_v51, %v727_v20  ;;  %v730_v23 = vadd.f32 %v4970_v51, %v728_v21 }
  0x6b   : > { %v731_v24 = vmax.f32 %v729_v22, 0.0  ;;  %v732_v25 = vmax.f32 %v730_v23, 0.0 }
  0x6d   : > { %v4134_v26 = vpack.c.bf16 %v731_v24, %v731_v24  ;;  %v4135_v27 = vpack.c.bf16 %v732_v25, %v732_v25 }
  0x6f   : > { %v740_v28 = vshrl.u32 %v4134_v26, 16  ;;  %v743_v29 = vshll.u32 %v4134_v26, 16  ;;  %v748_v30 = vshrl.u32 %v4135_v27, 16  ;;  %v751_v31 = vshll.u32 %v4135_v27, 16 }
  0x71   : > { %v742_v32 = vrot.slane %v740_v28, 7  ;;  %v750_v33 = vrot.slane %v748_v30, 7 }
  0x73   : > { %v745_v37 = vor.u32 %v743_v29, %v742_v32  ;;  %v746_v38 = vrot.slane %v742_v32, 4  ;;  %v753_v40 = vor.u32 %v751_v31, %v750_v33  ;;  %v755_v41 = vrot.slane %v750_v33, 4 }
  0x75   : > { %v760_v43 = vsel %vm4999_vm7, %v745_v37, %v759_v35  ;;  %v754_v44 = vsel %vm5005_vm8, %v746_v38, %v753_v40  ;;  %v764_v45 = vsel %vm4880_vm2, %v755_v41, %v763_v36 }
  0x76   : > { %761 = vst [vmem:[#allocation2] sm:$0xf] %v760_v43  ;;  %762 = vst [vmem:[#allocation2 + $0x4] sm:$0xf] %v754_v44 }
  0x77   : > { %765 = vst [vmem:[#allocation2 + $0x8] sm:$0x1] %v764_v45 }
  0x78 PF: > { %p3920_p10 = scmp.ne.s32.totalorder %s4796_s18, 1 }
  0x7a   : > { %769 = sbr.rel (%p3920_p10) target bundleno = 130 (0x82), region = 48 }
  0x7f   : > { %v771_v46 = vld [vmem:[#allocation2 + $0x6c] sm:$0xf]  ;;  %v775_v47 = vld [vmem:[#allocation2 + $0x74] sm:$0x1]  ;;  %v4815_v49 = vmov 0  }
  0x80   : > { %v772_v48 = vsel %vm4999_vm7, 0, %v771_v46  ;;  %774 = vst [vmem:[#allocation2 + $0x70] sm:$0xf] %v4815_v49  ;;  %v776_v50 = vsel %vm4880_vm2, 0, %v775_v47 }
  0x81   : > { %773 = vst [vmem:[#allocation2 + $0x6c] sm:$0xf] %v772_v48  ;;  %777 = vst [vmem:[#allocation2 + $0x74] sm:$0x1] %v776_v50 }
  0x82 PF: > { %p3921_p11 = scmp.ge.s32.totalorder %s4796_s18, 1 }
  0x84   : > { %781 = sbr.rel (%p3921_p11) target bundleno = 157 (0x9d), region = 52 }
  0x89   : > { %v4242_v52 = vld [vmem:[%s4952_s12 + $0x40] sm:$0xff]   ;;  %v823_v6 = vld [vmem:[#allocation2 + $0x6c] sm:$0xf]  ;;  %v827_v7 = vld [vmem:[#allocation2 + $0x74] sm:$0x1] }
  0x8a   : > { %v4193_v53 = vunpack.c.l.bf16 %v4242_v52  ;;  %v4194_v54 = vunpack.c.h.bf16 %v4242_v52 }
  0x8c   : > { %v790_v55 = vmul.f32 %v4193_v53, %v4949_v42  ;;  %v791_v56 = vmul.f32 %v4194_v54, %v4949_v42 }
  0x8e   : > { %v792_v57 = vadd.f32 %v4970_v51, %v790_v55  ;;  %v793_v58 = vadd.f32 %v4970_v51, %v791_v56 }
  0x90   : > { %v794_v59 = vmax.f32 %v792_v57, 0.0  ;;  %v795_v60 = vmax.f32 %v793_v58, 0.0 }
  0x92   : > { %v4137_v61 = vpack.c.bf16 %v794_v59, %v794_v59  ;;  %v4138_v62 = vpack.c.bf16 %v795_v60, %v795_v60 }
  0x94   : > { %v803_v63 = vshrl.u32 %v4137_v61, 16  ;;  %v806_v0 = vshll.u32 %v4137_v61, 16  ;;  %v811_v2 = vshrl.u32 %v4138_v62, 16  ;;  %v814_v3 = vshll.u32 %v4138_v62, 16 }
  0x96   : > { %v805_v4 = vrot.slane %v803_v63, 7  ;;  %v813_v5 = vrot.slane %v811_v2, 7 }
  0x98   : > { %v808_v8 = vor.u32 %v806_v0, %v805_v4  ;;  %v809_v9 = vrot.slane %v805_v4, 4  ;;  %v816_v10 = vor.u32 %v814_v3, %v813_v5  ;;  %v818_v42 = vrot.slane %v813_v5, 4 }
  0x9a   : > { %v824_v11 = vsel %vm4999_vm7, %v808_v8, %v823_v6  ;;  %v817_v51 = vsel %vm5005_vm8, %v809_v9, %v816_v10  ;;  %v828_v12 = vsel %vm4880_vm2, %v818_v42, %v827_v7 }
  0x9b   : > { %825 = vst [vmem:[#allocation2 + $0x6c] sm:$0xf] %v824_v11  ;;  %826 = vst [vmem:[#allocation2 + $0x70] sm:$0xf] %v817_v51 }
  0x9c   : > { %829 = vst [vmem:[#allocation2 + $0x74] sm:$0x1] %v828_v12 }
  0x9d PF: > { %v4612_v13 = vld [vmem:[%s5720_s3 + $0x78] sm:$0xff]   ;;  %v4616_v39 = vld [vmem:[%s5720_s3 + $0x70] sm:$0xff]   ;;  %v4620_v18 = vld [vmem:[%s5720_s3 + $0x68] sm:$0xff]   ;;  %vm1161_vm9 = vcmask 1042432   ;;  %vm1162_vm10 = vcmask 1046532  }
  0x9e   : > { %v4613_v14 = vld [vmem:[%s5720_s3 + $0xf8] sm:$0xff]   ;;  %4250 = vmatprep.subr.bf16.mxu0 %v4612_v13  ;;  %v4617_v15 = vld [vmem:[%s5720_s3 + $0xf0] sm:$0xff]   ;;  %v4621_v19 = vld [vmem:[%s5720_s3 + $0xe8] sm:$0xff]   ;;  %vm886_vm11 = vsmask.f32 3328 }
  0x9f   : > { %v4614_v34 = vld [vmem:[%s5720_s3 + $0x38] sm:$0xff]   ;;  %4314 = vmatprep.subr.bf16.mxu1 %v4613_v14  ;;  %v4618_v16 = vld [vmem:[%s5720_s3 + $0x30] sm:$0xff]   ;;  %v4622_v20 = vld [vmem:[%s5720_s3 + $0x28] sm:$0xff]   ;;  %vm887_vm12 = vsmask.f32 7440 }
  0xa0   : > { %v4615_v1 = vld [vmem:[%s5720_s3 + $0xb8] sm:$0xff]   ;;  %4251 = vmatpush3.bf16.msra.mxu0 %v4614_v34  ;;  %v4619_v17 = vld [vmem:[%s5720_s3 + $0xb0] sm:$0xff]   ;;  %v4623_v21 = vld [vmem:[%s5720_s3 + $0xa8] sm:$0xff]  }
  0xa1   : > { %4315 = vmatpush3.bf16.msra.mxu1 %v4615_v1  ;;  %4252 = vmatprep.subr.bf16.mxu0 %v4616_v39  ;;  %v4624_v22 = vld [vmem:[%s5720_s3 + $0x60] sm:$0xff]   ;;  %v4628_v26 = vld [vmem:[%s5720_s3 + $0x58] sm:$0xff]   ;;  %v4632_v30 = vld [vmem:[%s5720_s3 + $0x50] sm:$0xff]  }
  0xa2   : > { %4316 = vmatprep.subr.bf16.mxu1 %v4617_v15  ;;  %v4625_v23 = vld [vmem:[%s5720_s3 + $0xe0] sm:$0xff]   ;;  %v4629_v27 = vld [vmem:[%s5720_s3 + $0xd8] sm:$0xff]   ;;  %v4633_v31 = vld [vmem:[%s5720_s3 + $0xd0] sm:$0xff]  }
  0xa3   : > { %v4626_v24 = vld [vmem:[%s5720_s3 + $0x20] sm:$0xff]   ;;  %v4630_v28 = vld [vmem:[%s5720_s3 + $0x18] sm:$0xff]   ;;  %v4634_v32 = vld [vmem:[%s5720_s3 + $0x10] sm:$0xff]  }
  0xa4   : > { %4253 = vmatpush3.bf16.msra.mxu0 %v4618_v16  ;;  %v4627_v25 = vld [vmem:[%s5720_s3 + $0xa0] sm:$0xff]   ;;  %v4631_v29 = vld [vmem:[%s5720_s3 + $0x98] sm:$0xff]   ;;  %v4635_v33 = vld [vmem:[%s5720_s3 + $0x90] sm:$0xff]  }
  0xa5   : > { %4317 = vmatpush3.bf16.msra.mxu1 %v4619_v17  ;;  %4254 = vmatprep.subr.bf16.mxu0 %v4620_v18  ;;  %v4636_v35 = vld [vmem:[%s5720_s3 + $0x48] sm:$0xff]   ;;  %v4640_v40 = vld [vmem:[%s5720_s3 + $0x40] sm:$0xff]   ;;  %v4650_v54 = vld [vmem:[%s5720_s3 + $0x178] sm:$0xff]  }
  0xa6   : > { %4318 = vmatprep.subr.bf16.mxu1 %v4621_v19  ;;  %v4637_v36 = vld [vmem:[%s5720_s3 + $0xc8] sm:$0xff]   ;;  %v4641_v41 = vld [vmem:[%s5720_s3 + $0xc0] sm:$0xff]   ;;  %vm5217_vm13 = vmor %vm1161_vm9, %vm1162_vm10 }
  0xa7   : > { %v4638_v37 = vld [vmem:[%s5720_s3 + $0x8] sm:$0xff]   ;;  %v4642_v43 = vld [vmem:[%s5720_s3] sm:$0xff]   ;;  %v1253_v7 = vld [vmem:[#allocation2 + $0x10] sm:$0xf] }
  0xa8   : > { %4255 = vmatpush3.bf16.msra.mxu0 %v4622_v20  ;;  %v4639_v38 = vld [vmem:[%s5720_s3 + $0x88] sm:$0xff]   ;;  %v4643_v44 = vld [vmem:[%s5720_s3 + $0x80] sm:$0xff]   ;;  %vm5223_vm14 = vmor %vm886_vm11, %vm887_vm12  ;;  %1269 = vst [vmem:[#allocation3 + $0x30] sm:$0xf] %v1253_v7 }
  0xa9   : > { %4319 = vmatpush3.bf16.msra.mxu1 %v4623_v21  ;;  %4256 = vmatprep.subr.bf16.mxu0 %v4624_v22  ;;  %v830_v45 = vld [vmem:[#allocation2] sm:$0xf]  ;;  %v831_v46 = vld [vmem:[#allocation2 + $0x4] sm:$0xf]  ;;  %v864_v49 = vld [vmem:[#allocation2 + $0x8] sm:$0x1] }
  0xaa   : > { %4320 = vmatprep.subr.bf16.mxu1 %v4625_v23  ;;  %v862_v47 = vld [vmem:[#allocation2] sm:$0xf]  ;;  %846 = vst [vmem:[#allocation3] sm:$0xf] %v830_v45  ;;  %847 = vst [vmem:[#allocation3 + $0x24] sm:$0xf] %v831_v46 }
  0xab   : > { %v863_v48 = vld [vmem:[#allocation2 + $0x4] sm:$0xf]  ;;  %v890_v50 = vshrl.u32 %v862_v47, 16  ;;  %v893_v52 = vshll.u32 %v862_v47, 16  ;;  %v909_v56 = vshll.u32 %v864_v49, 16  ;;  %v4665_v46 = vld [vmem:[%s5720_s3 + $0x1f8] sm:$0xff]  }
  0xac   : > { %4257 = vmatpush3.bf16.msra.mxu0 %v4626_v24  ;;  %v899_v53 = vshll.u32 %v863_v48, 16  ;;  %v903_v55 = vshrl.u32 %v863_v48, 16  ;;  %v1113_v57 = vld [vmem:[#allocation2] sm:$0xe]  ;;  %v1114_v58 = vld [vmem:[#allocation2 + $0x4] sm:$0xf] }
  0xad   : > { %4321 = vmatpush3.bf16.msra.mxu1 %v4627_v25  ;;  %4258 = vmatprep.subr.bf16.mxu0 %v4628_v26  ;;  %v892_v59 = vrot.slane %v890_v50, 4  ;;  %v895_v60 = vrot.slane %v893_v52, 5  ;;  %v1115_v62 = vld [vmem:[#allocation2 + $0x8] sm:$0x1]  ;;  %v3928_v0 = vrot.slane %v1113_v57, 9  ;;  %v1166_v3 = vrot.slane %v1114_v58, 5 }
  0xae   : > { %4322 = vmatprep.subr.bf16.mxu1 %v4629_v27  ;;  %v901_v61 = vrot.slane %v899_v53, 5  ;;  %v905_v2 = vrot.slane %v903_v55, 4  ;;  %v1169_v4 = vrot.slane %v1115_v62, 5  ;;  %v1252_v5 = vld [vmem:[#allocation2 + $0xc] sm:$0xf]  ;;  %v911_v10 = vrot.slane %v909_v56, 5 }
  0xaf   : > { %v896_v6 = vor.u32 %v895_v60, %v892_v59  ;;  %1268 = vst [vmem:[#allocation3 + $0xc] sm:$0xf] %v1252_v5  ;;  %v1167_v42 = vsel %vm5217_vm13, %v3928_v0, %v1166_v3  ;;  %v1168_v11 = vrot.slane %v1166_v3, 4  ;;  %v832_v12 = vld [vmem:[#allocation2 + $0xc] sm:$0xf]  ;;  %v4651_v49 = vld [vmem:[%s5720_s3 + $0x138] sm:$0xff]  }
  0xb0   : > { %4259 = vmatpush3.bf16.msra.mxu0 %v4630_v28  ;;  %v906_v9 = vor.u32 %v905_v2, %v901_v61  ;;  %1236 = vst [vmem:[#allocation3 + $0x8] sm:$0xf] %v1167_v42  ;;  %v833_v13 = vld [vmem:[#allocation2 + $0x10] sm:$0xf]  ;;  %848 = vst [vmem:[#allocation3 + $0x48] sm:$0xf] %v832_v12 }
  0xb1   : > { %4323 = vmatpush3.bf16.msra.mxu1 %v4631_v29  ;;  %4260 = vmatprep.subr.bf16.mxu0 %v4632_v30  ;;  %v897_v51 = vrot.slane %v896_v6, 4  ;;  %v1170_v34 = vsel %vm5217_vm13, %v1168_v11, %v1169_v4  ;;  %849 = vst [vmem:[#allocation3 + $0x6c] sm:$0xf] %v833_v13  ;;  %v865_v1 = vld [vmem:[#allocation2 + $0xc] sm:$0xf]  ;;  %v4657_v60 = vld [vmem:[%s5720_s3 + $0x170] sm:$0xff]  }
  0xb2   : > { %4324 = vmatprep.subr.bf16.mxu1 %v4633_v31  ;;  %v907_v14 = vrot.slane %v906_v9, 4  ;;  %v866_v39 = vld [vmem:[#allocation2 + $0x10] sm:$0xf]  ;;  %1237 = vst [vmem:[#allocation3 + $0x2c] sm:$0xf] %v1170_v34  ;;  %v914_v17 = vshrl.u32 %v865_v1, 16 }
  0xb3   : > { %v902_v15 = vsel %vm5223_vm14, %v897_v51, %v901_v61  ;;  %v867_v16 = vld [vmem:[#allocation2 + $0x14] sm:$0x1]  ;;  %v917_v18 = vshll.u32 %v865_v1, 16  ;;  %v923_v19 = vshll.u32 %v866_v39, 16  ;;  %v927_v21 = vshrl.u32 %v866_v39, 16  ;;  %v4664_v12 = vld [vmem:[%s5720_s3 + $0x168] sm:$0xff]  }
  0xb4   : > { %4261 = vmatpush3.bf16.msra.mxu0 %v4634_v32  ;;  %v912_v20 = vsel %vm5223_vm14, %v907_v14, %v911_v10  ;;  %1097 = vst [vmem:[#allocation3 + $0x4] sm:$0xf] %v902_v15  ;;  %v933_v22 = vshll.u32 %v867_v16, 16  ;;  %v1116_v23 = vld [vmem:[#allocation2 + $0xc] sm:$0xe]  ;;  %v916_v25 = vrot.slane %v914_v17, 4 }
  0xb5   : > { %4325 = vmatpush3.bf16.msra.mxu1 %v4635_v33  ;;  %4262 = vmatprep.subr.bf16.mxu0 %v4636_v35  ;;  %v1117_v24 = vld [vmem:[#allocation2 + $0x10] sm:$0xf]  ;;  %1098 = vst [vmem:[#allocation3 + $0x28] sm:$0xf] %v912_v20  ;;  %v919_v26 = vrot.slane %v917_v18, 5  ;;  %v925_v27 = vrot.slane %v923_v19, 5 }
  0xb6   : > { %4326 = vmatprep.subr.bf16.mxu1 %v4637_v36  ;;  %v1118_v28 = vld [vmem:[#allocation2 + $0x14] sm:$0x1]  ;;  %v3929_v29 = vrot.slane %v1116_v23, 9  ;;  %v929_v30 = vrot.slane %v927_v21, 4  ;;  %v935_v31 = vrot.slane %v933_v22, 5  ;;  %v1173_v32 = vrot.slane %v1117_v24, 5 }
  0xb7   : > { %v1176_v33 = vrot.slane %v1118_v28, 5  ;;  %v1254_v35 = vld [vmem:[#allocation2 + $0x18] sm:$0xf]  ;;  %v920_v36 = vor.u32 %v919_v26, %v916_v25  ;;  %v835_v45 = vld [vmem:[#allocation2 + $0x1c] sm:$0xf]  ;;  %v4658_v3 = vld [vmem:[%s5720_s3 + $0x130] sm:$0xff]  }
  0xb8   : > { %4263 = vmatpush3.bf16.msra.mxu0 %v4638_v37  ;;  %v1255_v37 = vld [vmem:[#allocation2 + $0x1c] sm:$0xf]  ;;  %1270 = vst [vmem:[#allocation3 + $0x54] sm:$0xf] %v1254_v35  ;;  %v4649_v48 = vld [vmem:[#allocation3 + $0xc] ss:$36 sps:$4 sm:$0xff]  }
  0xb9   : > { %4327 = vmatpush3.bf16.msra.mxu1 %v4639_v38  ;;  %4264 = vmatprep.subr.bf16.mxu0 %v4640_v40  ;;  %v930_v38 = vor.u32 %v929_v30, %v925_v27  ;;  %v1174_v40 = vsel %vm5217_vm13, %v3929_v29, %v1173_v32  ;;  %1271 = vst [vmem:[#allocation3 + $0x78] sm:$0xf] %v1255_v37  ;;  %v4647_v47 = vld [vmem:[#allocation3 + $0x8] ss:$36 sps:$4 sm:$0xff]   ;;  %851 = vst [vmem:[#allocation3 + $0xb4] sm:$0xf] %v835_v45 }
  0xba   : > { %4328 = vmatprep.subr.bf16.mxu1 %v4641_v41  ;;  %v1175_v41 = vrot.slane %v1173_v32, 4  ;;  %1238 = vst [vmem:[#allocation3 + $0x50] sm:$0xf] %v1174_v40  ;;  %v869_v55 = vld [vmem:[#allocation2 + $0x1c] sm:$0xf]  ;;  %3238 = vmatprep.mubr.bf16.mxu1 %v4649_v48  ;;  %v4666_v21 = vld [vmem:[%s5720_s3 + $0x128] sm:$0xff]  }
  0xbb   : > { %v931_v50 = vrot.slane %v930_v38, 4  ;;  %v4644_v56 = vld [vmem:[#allocation3] ss:$36 sps:$4 sm:$0xff]   ;;  %v870_v61 = vld [vmem:[#allocation2 + $0x20] sm:$0x1]  ;;  %v947_v0 = vshll.u32 %v869_v55, 16 }
  0xbc   : > { %4265 = vmatpush3.bf16.msra.mxu0 %v4642_v43  ;;  %v921_v43 = vrot.slane %v920_v36, 4  ;;  %v1177_v52 = vsel %vm5217_vm13, %v1175_v41, %v1176_v33  ;;  %v4646_v57 = vld [vmem:[#allocation3 + $0x4] ss:$36 sps:$4 sm:$0xff]   ;;  %v951_v2 = vshrl.u32 %v869_v55, 16  ;;  %v957_v5 = vshll.u32 %v870_v61, 16 }
  0xbd   : > { %4329 = vmatpush3.bf16.msra.mxu1 %v4643_v44  ;;  %4378 = vmatprep.subr.bf16.mxu0 %v4650_v54  ;;  %v834_v44 = vld [vmem:[#allocation2 + $0x18] sm:$0xf]  ;;  %1239 = vst [vmem:[#allocation3 + $0x74] sm:$0xf] %v1177_v52  ;;  %v936_v58 = vsel %vm5223_vm14, %v931_v50, %v935_v31  ;;  %v1120_v7 = vld [vmem:[#allocation2 + $0x1c] sm:$0xf] }
  0xbe   : > { %850 = vst [vmem:[#allocation3 + $0x90] sm:$0xf] %v834_v44  ;;  %v926_v53 = vsel %vm5223_vm14, %v921_v43, %v925_v27  ;;  %v868_v54 = vld [vmem:[#allocation2 + $0x18] sm:$0xf]  ;;  %4442 = vmatprep.subr.bf16.mxu1 %v4665_v46  ;;  %1100 = vst [vmem:[#allocation3 + $0x70] sm:$0xf] %v936_v58  ;;  %3141 = vmatprep.mubr.bf16.mxu0 %v4646_v57 }
  0xbf   : > { %1099 = vst [vmem:[#allocation3 + $0x4c] sm:$0xf] %v926_v53  ;;  %v938_v59 = vshrl.u32 %v868_v54, 16  ;;  %v941_v62 = vshll.u32 %v868_v54, 16  ;;  %v1119_v6 = vld [vmem:[#allocation2 + $0x18] sm:$0xe]  ;;  %3142 = vmatmul.mubr.bf16.vlgmr.msra.gmra.mxu0 %v4644_v56 }
  0xc0   : > { %3239 = vmatmul.mubr.bf16.vlgmr.msra.gmra.mxu1 %v4647_v47  ;;  %v949_v10 = vrot.slane %v947_v0, 5  ;;  %v953_v42 = vrot.slane %v951_v2, 4  ;;  %v1121_v11 = vld [vmem:[#allocation2 + $0x20] sm:$0x1]  ;;  %v3930_v51 = vrot.slane %v1119_v6, 9  ;;  %4379 = vmatpush3.bf16.msra.mxu0 %v4651_v49  ;;  %v959_v13 = vrot.slane %v957_v5, 5 }
  0xc1   : > { %v940_v4 = vrot.slane %v938_v59, 4  ;;  %v943_v9 = vrot.slane %v941_v62, 5  ;;  %v1180_v14 = vrot.slane %v1120_v7, 5  ;;  %v1183_v34 = vrot.slane %v1121_v11, 5  ;;  %v1256_v1 = vld [vmem:[#allocation2 + $0x24] sm:$0xf]  ;;  %4380 = vmatprep.subr.bf16.mxu0 %v4657_v60 }
  0xc2   : > { %v954_v15 = vor.u32 %v953_v42, %v949_v10  ;;  %v1257_v16 = vld [vmem:[#allocation2 + $0x28] sm:$0xf]  ;;  %1272 = vst [vmem:[#allocation3 + $0x9c] sm:$0xf] %v1256_v1  ;;  %v4654_v17 = vld [vmem:[#allocation3 + $0x54] ss:$36 sps:$4 sm:$0xff]  }
  0xc3   : > { %v944_v39 = vor.u32 %v943_v9, %v940_v4  ;;  %v1181_v19 = vsel %vm5217_vm13, %v3930_v51, %v1180_v14  ;;  %v1182_v20 = vrot.slane %v1180_v14, 4  ;;  %1273 = vst [vmem:[#allocation3 + $0xc0] sm:$0xf] %v1257_v16  ;;  %v4667_v25 = vld [vmem:[%s5720_s3 + $0x1b8] sm:$0xff]   ;;  %3246 = vmatprep.mubr.bf16.mxu1 %v4654_v17  ;;  %v836_v32 = vld [vmem:[#allocation2 + $0x24] sm:$0xf] }
  0xc4   : > { %v4656_v18 = vld [vmem:[#allocation3 + $0x50] ss:$36 sps:$4 sm:$0xff]   ;;  %v955_v24 = vrot.slane %v954_v15, 4  ;;  %1240 = vst [vmem:[#allocation3 + $0x98] sm:$0xf] %v1181_v19  ;;  %4381 = vmatpush3.bf16.msra.mxu0 %v4658_v3  ;;  %4443 = vmatpush3.bf16.msra.mxu1 %v4667_v25  ;;  %v4673_v54 = vld [vmem:[%s5720_s3 + $0x160] sm:$0xff]  }
  0xc5   : > { %v945_v23 = vrot.slane %v944_v39, 4  ;;  %v2100_v26 = vld [vmem:[#allocation3 + $0x6c] sm:$0xff]  ;;  %v1184_v28 = vsel %vm5217_vm13, %v1182_v20, %v1183_v34  ;;  %4382 = vmatprep.subr.bf16.mxu0 %v4664_v12  ;;  %852 = vst [vmem:[#allocation3 + $0xd8] sm:$0xf] %v836_v32  ;;  %v873_v37 = vld [vmem:[#allocation2 + $0x2c] sm:$0x1] }
  0xc6   : > { %v2095_v22 = vld [vmem:[#allocation3 + $0x48] sm:$0xff]  ;;  %v960_v31 = vsel %vm5223_vm14, %v955_v24, %v959_v13  ;;  %1241 = vst [vmem:[#allocation3 + $0xbc] sm:$0xf] %v1184_v28  ;;  %v837_v33 = vld [vmem:[#allocation2 + $0x28] sm:$0xf]  ;;  %v981_v45 = vshll.u32 %v873_v37, 16 }
  0xc7   : > { %v4652_v27 = vld [vmem:[#allocation3 + $0x4c] ss:$36 sps:$4 sm:$0xff]   ;;  %v3961_v29 = vcombine.low %v2095_v22, %v2100_v26  ;;  %v950_v30 = vsel %vm5223_vm14, %v945_v23, %v949_v10  ;;  %1102 = vst [vmem:[#allocation3 + $0xb8] sm:$0xf] %v960_v31  ;;  %853 = vst [vmem:[#allocation3 + $0xfc] sm:$0xf] %v837_v33 }
  0xc8   : > { %3247 = vmatmul.mubr.bf16.gmra.mxu1 %v4656_v18  ;;  %3149 = vmatprep.mubr.bf16.mxu0 %v4652_v27  ;;  %1101 = vst [vmem:[#allocation3 + $0x94] sm:$0xf] %v950_v30  ;;  %v871_v35 = vld [vmem:[#allocation2 + $0x24] sm:$0xf]  ;;  %v872_v36 = vld [vmem:[#allocation2 + $0x28] sm:$0xf] }
  0xc9   : > { %3150 = vmatmul.mubr.bf16.gmra.mxu0 %v3961_v29  ;;  %v962_v38 = vshrl.u32 %v871_v35, 16  ;;  %v965_v40 = vshll.u32 %v871_v35, 16  ;;  %v971_v41 = vshll.u32 %v872_v36, 16  ;;  %v975_v43 = vshrl.u32 %v872_v36, 16  ;;  %v1122_v44 = vld [vmem:[#allocation2 + $0x24] sm:$0xe] }
  0xca   : > { %4383 = vmatpush3.bf16.msra.mxu0 %v4666_v21  ;;  %v1123_v46 = vld [vmem:[#allocation2 + $0x28] sm:$0xf]  ;;  %v1124_v47 = vld [vmem:[#allocation2 + $0x2c] sm:$0x1]  ;;  %v3931_v48 = vrot.slane %v1122_v44, 9  ;;  %v4674_v58 = vld [vmem:[%s5720_s3 + $0x1f0] sm:$0xff]  }
  0xcb   : > { %v964_v49 = vrot.slane %v962_v38, 4  ;;  %v967_v50 = vrot.slane %v965_v40, 5  ;;  %v973_v52 = vrot.slane %v971_v41, 5  ;;  %v977_v53 = vrot.slane %v975_v43, 4  ;;  %v1258_v57 = vld [vmem:[#allocation2 + $0x30] sm:$0xf]  ;;  %4384 = vmatprep.subr.bf16.mxu0 %v4673_v54  ;;  %4444 = vmatprep.subr.bf16.mxu1 %v4674_v58 }
  0xcc   : > { %v1187_v55 = vrot.slane %v1123_v46, 5  ;;  %v1190_v56 = vrot.slane %v1124_v47, 5  ;;  %v4661_v59 = vld [vmem:[#allocation3 + $0x9c] ss:$36 sps:$4 sm:$0xff]   ;;  %v983_v0 = vrot.slane %v981_v45, 5  ;;  %v4675_v13 = vld [vmem:[%s5720_s3 + $0x120] sm:$0xff]  }
  0xcd   : > { %v4663_v60 = vld [vmem:[#allocation3 + $0x98] ss:$36 sps:$4 sm:$0xff]   ;;  %v968_v61 = vor.u32 %v967_v50, %v964_v49  ;;  %v978_v62 = vor.u32 %v977_v53, %v973_v52  ;;  %1274 = vst [vmem:[#allocation3 + $0xe4] sm:$0xf] %v1258_v57  ;;  %3254 = vmatprep.mubr.bf16.mxu1 %v4661_v59  ;;  %v876_v16 = vld [vmem:[#allocation2 + $0x38] sm:$0x1] }
  0xce   : > { %v2110_v3 = vld [vmem:[#allocation3 + $0xb4] sm:$0xff]  ;;  %v1188_v5 = vsel %vm5217_vm13, %v3931_v48, %v1187_v55  ;;  %v1189_v6 = vrot.slane %v1187_v55, 4  ;;  %v1259_v42 = vld [vmem:[#allocation2 + $0x34] sm:$0xf]  ;;  %4385 = vmatpush3.bf16.msra.mxu0 %v4675_v13  ;;  %v1005_v21 = vshll.u32 %v876_v16, 16  ;;  %v4682_v23 = vld [vmem:[%s5720_s3 + $0x158] sm:$0xff]  }
  0xcf   : > { %v2105_v2 = vld [vmem:[#allocation3 + $0x90] sm:$0xff]  ;;  %v969_v9 = vrot.slane %v968_v61, 4  ;;  %v979_v10 = vrot.slane %v978_v62, 4  ;;  %1242 = vst [vmem:[#allocation3 + $0xe0] sm:$0xf] %v1188_v5  ;;  %v4676_v14 = vld [vmem:[%s5720_s3 + $0x1b0] sm:$0xff]   ;;  %4386 = vmatprep.subr.bf16.mxu0 %v4682_v23 }
  0xd0   : > { %v4659_v4 = vld [vmem:[#allocation3 + $0x94] ss:$36 sps:$4 sm:$0xff]   ;;  %v3970_v7 = vcombine.low %v2105_v2, %v2110_v3  ;;  %3255 = vmatmul.mubr.bf16.gmra.mxu1 %v4663_v60  ;;  %v1191_v11 = vsel %vm5217_vm13, %v1189_v6, %v1190_v56  ;;  %1275 = vst [vmem:[#allocation3 + $0x108] sm:$0xf] %v1259_v42  ;;  %v839_v1 = vld [vmem:[#allocation2 + $0x34] sm:$0xf] }
  0xd1   : > { %3157 = vmatprep.mubr.bf16.mxu0 %v4659_v4  ;;  %v974_v51 = vsel %vm5223_vm14, %v969_v9, %v973_v52  ;;  %v984_v12 = vsel %vm5223_vm14, %v979_v10, %v983_v0  ;;  %1243 = vst [vmem:[#allocation3 + $0x104] sm:$0xf] %v1191_v11  ;;  %v838_v34 = vld [vmem:[#allocation2 + $0x30] sm:$0xf]  ;;  %4445 = vmatpush3.bf16.msra.mxu1 %v4676_v14  ;;  %855 = vst [vmem:[#allocation3 + $0x144] sm:$0xf] %v839_v1 }
  0xd2   : > { %3158 = vmatmul.mubr.bf16.gmra.mxu0 %v3970_v7  ;;  %1103 = vst [vmem:[#allocation3 + $0xdc] sm:$0xf] %v974_v51  ;;  %1104 = vst [vmem:[#allocation3 + $0x100] sm:$0xf] %v984_v12  ;;  %v874_v39 = vld [vmem:[#allocation2 + $0x30] sm:$0xf] }
  0xd3   : > { %854 = vst [vmem:[#allocation3 + $0x120] sm:$0xf] %v838_v34  ;;  %v875_v15 = vld [vmem:[#allocation2 + $0x34] sm:$0xf]  ;;  %v986_v17 = vshrl.u32 %v874_v39, 16  ;;  %v989_v18 = vshll.u32 %v874_v39, 16 }
  0xd4   : > { %v995_v19 = vshll.u32 %v875_v15, 16  ;;  %v999_v20 = vshrl.u32 %v875_v15, 16  ;;  %v1125_v22 = vld [vmem:[#allocation2 + $0x30] sm:$0xe]  ;;  %v1126_v26 = vld [vmem:[#allocation2 + $0x34] sm:$0xf] }
  0xd5   : > { %v988_v24 = vrot.slane %v986_v17, 4  ;;  %v991_v25 = vrot.slane %v989_v18, 5  ;;  %v3932_v27 = vrot.slane %v1125_v22, 9  ;;  %v1127_v30 = vld [vmem:[#allocation2 + $0x38] sm:$0x1]  ;;  %v1194_v31 = vrot.slane %v1126_v26, 5 }
  0xd6   : > { %v997_v28 = vrot.slane %v995_v19, 5  ;;  %v1001_v29 = vrot.slane %v999_v20, 4  ;;  %v1197_v36 = vrot.slane %v1127_v30, 5  ;;  %v1007_v43 = vrot.slane %v1005_v21, 5  ;;  %v1260_v48 = vld [vmem:[#allocation2 + $0x3c] sm:$0xf] }
  0xd7   : > { %v4670_v32 = vld [vmem:[#allocation3 + $0xe4] ss:$36 sps:$4 sm:$0xff]   ;;  %v992_v35 = vor.u32 %v991_v25, %v988_v24  ;;  %v1195_v44 = vsel %vm5217_vm13, %v3932_v27, %v1194_v31  ;;  %v1196_v45 = vrot.slane %v1194_v31, 4  ;;  %v4683_v50 = vld [vmem:[%s5720_s3 + $0x1e8] sm:$0xff]   ;;  %1276 = vst [vmem:[#allocation3 + $0x12c] sm:$0xf] %v1260_v48 }
  0xd8   : > { %v4672_v33 = vld [vmem:[#allocation3 + $0xe0] ss:$36 sps:$4 sm:$0xff]   ;;  %v1002_v41 = vor.u32 %v1001_v29, %v997_v28  ;;  %3262 = vmatprep.mubr.bf16.mxu1 %v4670_v32  ;;  %1244 = vst [vmem:[#allocation3 + $0x128] sm:$0xf] %v1195_v44  ;;  %v1261_v49 = vld [vmem:[#allocation2 + $0x40] sm:$0xf]  ;;  %4446 = vmatprep.subr.bf16.mxu1 %v4683_v50 }
  0xd9   : > { %v2115_v37 = vld [vmem:[#allocation3 + $0xd8] sm:$0xff]  ;;  %v993_v47 = vrot.slane %v992_v35, 4  ;;  %3263 = vmatmul.mubr.bf16.gmra.mxu1 %v4672_v33  ;;  %v1198_v53 = vsel %vm5217_vm13, %v1196_v45, %v1197_v36  ;;  %1277 = vst [vmem:[#allocation3 + $0x150] sm:$0xf] %v1261_v49  ;;  %v4684_v54 = vld [vmem:[%s5720_s3 + $0x118] sm:$0xff]   ;;  %v4685_v57 = vld [vmem:[%s5720_s3 + $0x1a8] sm:$0xff]  }
  0xda   : > { %v2120_v38 = vld [vmem:[#allocation3 + $0xfc] sm:$0xff]  ;;  %v1003_v52 = vrot.slane %v1002_v41, 4  ;;  %1245 = vst [vmem:[#allocation3 + $0x14c] sm:$0xf] %v1198_v53  ;;  %4387 = vmatpush3.bf16.msra.mxu0 %v4684_v54  ;;  %v840_v58 = vld [vmem:[#allocation2 + $0x3c] sm:$0xf]  ;;  %4447 = vmatpush3.bf16.msra.mxu1 %v4685_v57 }
  0xdb   : > { %v4668_v40 = vld [vmem:[#allocation3 + $0xdc] ss:$36 sps:$4 sm:$0xff]   ;;  %v3979_v46 = vcombine.low %v2115_v37, %v2120_v38  ;;  %v998_v55 = vsel %vm5223_vm14, %v993_v47, %v997_v28  ;;  %v841_v59 = vld [vmem:[#allocation2 + $0x40] sm:$0xf]  ;;  %856 = vst [vmem:[#allocation3 + $0x168] sm:$0xf] %v840_v58 }
  0xdc   : > { %3165 = vmatprep.mubr.bf16.mxu0 %v4668_v40  ;;  %v1008_v56 = vsel %vm5223_vm14, %v1003_v52, %v1007_v43  ;;  %1105 = vst [vmem:[#allocation3 + $0x124] sm:$0xf] %v998_v55  ;;  %857 = vst [vmem:[#allocation3 + $0x18c] sm:$0xf] %v841_v59  ;;  %v877_v60 = vld [vmem:[#allocation2 + $0x3c] sm:$0xf] }
  0xdd   : > { %3166 = vmatmul.mubr.bf16.gmra.mxu0 %v3979_v46  ;;  %1106 = vst [vmem:[#allocation3 + $0x148] sm:$0xf] %v1008_v56  ;;  %v878_v61 = vld [vmem:[#allocation2 + $0x40] sm:$0xf]  ;;  %v879_v62 = vld [vmem:[#allocation2 + $0x44] sm:$0x1] }
  0xde   : > { %v1010_v0 = vshrl.u32 %v877_v60, 16  ;;  %v1013_v2 = vshll.u32 %v877_v60, 16  ;;  %v1019_v3 = vshll.u32 %v878_v61, 16  ;;  %v1023_v4 = vshrl.u32 %v878_v61, 16  ;;  %v1128_v5 = vld [vmem:[#allocation2 + $0x3c] sm:$0xe] }
  0xdf   : > { %v1029_v6 = vshll.u32 %v879_v62, 16  ;;  %v1129_v7 = vld [vmem:[#allocation2 + $0x40] sm:$0xf]  ;;  %v1130_v9 = vld [vmem:[#allocation2 + $0x44] sm:$0x1]  ;;  %v3933_v10 = vrot.slane %v1128_v5, 9 }
  0xe0   : > { %v1012_v42 = vrot.slane %v1010_v0, 4  ;;  %v1015_v11 = vrot.slane %v1013_v2, 5  ;;  %v1021_v51 = vrot.slane %v1019_v3, 5  ;;  %v1025_v12 = vrot.slane %v1023_v4, 4  ;;  %v4691_v13 = vld [vmem:[%s5720_s3 + $0x150] sm:$0xff]   ;;  %v4692_v19 = vld [vmem:[%s5720_s3 + $0x1e0] sm:$0xff]  }
  0xe1   : > { %v4679_v14 = vld [vmem:[#allocation3 + $0x12c] ss:$36 sps:$4 sm:$0xff]   ;;  %v1031_v16 = vrot.slane %v1029_v6, 5  ;;  %v1201_v17 = vrot.slane %v1129_v7, 5  ;;  %4388 = vmatprep.subr.bf16.mxu0 %v4691_v13  ;;  %v1204_v22 = vrot.slane %v1130_v9, 5  ;;  %4448 = vmatprep.subr.bf16.mxu1 %v4692_v19  ;;  %v4693_v29 = vld [vmem:[%s5720_s3 + $0x110] sm:$0xff]  }
  0xe2   : > { %v4681_v34 = vld [vmem:[#allocation3 + $0x128] ss:$36 sps:$4 sm:$0xff]   ;;  %v1016_v39 = vor.u32 %v1015_v11, %v1012_v42  ;;  %v1026_v15 = vor.u32 %v1025_v12, %v1021_v51  ;;  %v1262_v18 = vld [vmem:[#allocation2 + $0x48] sm:$0xf]  ;;  %3270 = vmatprep.mubr.bf16.mxu1 %v4679_v14  ;;  %v1263_v23 = vld [vmem:[#allocation2 + $0x4c] sm:$0xf]  ;;  %4389 = vmatpush3.bf16.msra.mxu0 %v4693_v29 }
  0xe3   : > { %v2125_v1 = vld [vmem:[#allocation3 + $0x120] sm:$0xff]  ;;  %1278 = vst [vmem:[#allocation3 + $0x174] sm:$0xf] %v1262_v18  ;;  %3271 = vmatmul.mubr.bf16.gmra.mxu1 %v4681_v34  ;;  %v1202_v27 = vsel %vm5217_vm13, %v3933_v10, %v1201_v17  ;;  %1279 = vst [vmem:[#allocation3 + $0x198] sm:$0xf] %v1263_v23  ;;  %v1203_v28 = vrot.slane %v1201_v17, 4 }
  0xe4   : > { %v2130_v20 = vld [vmem:[#allocation3 + $0x144] sm:$0xff]  ;;  %v1017_v25 = vrot.slane %v1016_v39, 4  ;;  %v1027_v26 = vrot.slane %v1026_v15, 4  ;;  %1246 = vst [vmem:[#allocation3 + $0x170] sm:$0xf] %v1202_v27  ;;  %v4700_v49 = vld [vmem:[%s5720_s3 + $0x148] sm:$0xff]  }
  0xe5   : > { %v4677_v21 = vld [vmem:[#allocation3 + $0x124] ss:$36 sps:$4 sm:$0xff]   ;;  %v3988_v24 = vcombine.low %v2125_v1, %v2130_v20  ;;  %v1205_v32 = vsel %vm5217_vm13, %v1203_v28, %v1204_v22  ;;  %v842_v35 = vld [vmem:[#allocation2 + $0x48] sm:$0xf]  ;;  %v843_v36 = vld [vmem:[#allocation2 + $0x4c] sm:$0xf]  ;;  %4390 = vmatprep.subr.bf16.mxu0 %v4700_v49 }
  0xe6   : > { %3173 = vmatprep.mubr.bf16.mxu0 %v4677_v21  ;;  %v1022_v30 = vsel %vm5223_vm14, %v1017_v25, %v1021_v51  ;;  %v1032_v31 = vsel %vm5223_vm14, %v1027_v26, %v1031_v16  ;;  %v4694_v33 = vld [vmem:[%s5720_s3 + $0x1a0] sm:$0xff]   ;;  %1247 = vst [vmem:[#allocation3 + $0x194] sm:$0xf] %v1205_v32  ;;  %858 = vst [vmem:[#allocation3 + $0x1b0] sm:$0xf] %v842_v35  ;;  %v4701_v59 = vld [vmem:[%s5720_s3 + $0x1d8] sm:$0xff]  }
  0xe7   : > { %3174 = vmatmul.mubr.bf16.gmra.mxu0 %v3988_v24  ;;  %1107 = vst [vmem:[#allocation3 + $0x16c] sm:$0xf] %v1022_v30  ;;  %1108 = vst [vmem:[#allocation3 + $0x190] sm:$0xf] %v1032_v31  ;;  %v880_v37 = vld [vmem:[#allocation2 + $0x48] sm:$0xf]  ;;  %4449 = vmatpush3.bf16.msra.mxu1 %v4694_v33 }
  0xe8   : > { %v881_v38 = vld [vmem:[#allocation2 + $0x4c] sm:$0xf]  ;;  %859 = vst [vmem:[#allocation3 + $0x1d4] sm:$0xf] %v843_v36  ;;  %v882_v40 = vld [vmem:[#allocation2 + $0x50] sm:$0x1]  ;;  %4450 = vmatprep.subr.bf16.mxu1 %v4701_v59 }
  0xe9   : > { %v1034_v41 = vshrl.u32 %v880_v37, 16  ;;  %v1037_v43 = vshll.u32 %v880_v37, 16  ;;  %v1043_v44 = vshll.u32 %v881_v38, 16  ;;  %v1047_v45 = vshrl.u32 %v881_v38, 16  ;;  %v1131_v47 = vld [vmem:[#allocation2 + $0x48] sm:$0xe] }
  0xea   : > { %v1053_v46 = vshll.u32 %v882_v40, 16  ;;  %v1132_v48 = vld [vmem:[#allocation2 + $0x4c] sm:$0xf]  ;;  %v1133_v55 = vld [vmem:[#allocation2 + $0x50] sm:$0x1]  ;;  %v3934_v56 = vrot.slane %v1131_v47, 9 }
  0xeb   : > { %v1036_v50 = vrot.slane %v1034_v41, 4  ;;  %v1039_v52 = vrot.slane %v1037_v43, 5  ;;  %v1045_v53 = vrot.slane %v1043_v44, 5  ;;  %v1049_v54 = vrot.slane %v1047_v45, 4  ;;  %v1264_v62 = vld [vmem:[#allocation2 + $0x54] sm:$0xf] }
  0xec   : > { %v1208_v57 = vrot.slane %v1132_v48, 5  ;;  %v1211_v58 = vrot.slane %v1133_v55, 5  ;;  %v1265_v0 = vld [vmem:[#allocation2 + $0x58] sm:$0xf]  ;;  %v1055_v5 = vrot.slane %v1053_v46, 5  ;;  %v4702_v13 = vld [vmem:[%s5720_s3 + $0x108] sm:$0xff]  }
  0xed   : > { %v1040_v60 = vor.u32 %v1039_v52, %v1036_v50  ;;  %v1050_v61 = vor.u32 %v1049_v54, %v1045_v53  ;;  %1280 = vst [vmem:[#allocation3 + $0x1bc] sm:$0xf] %v1264_v62  ;;  %1281 = vst [vmem:[#allocation3 + $0x1e0] sm:$0xf] %v1265_v0  ;;  %v4688_v9 = vld [vmem:[#allocation3 + $0x174] ss:$36 sps:$4 sm:$0xff]   ;;  %4391 = vmatpush3.bf16.msra.mxu0 %v4702_v13 }
  0xee   : > { %v2135_v2 = vld [vmem:[#allocation3 + $0x168] sm:$0xff]  ;;  %v1209_v6 = vsel %vm5217_vm13, %v3934_v56, %v1208_v57  ;;  %v1210_v7 = vrot.slane %v1208_v57, 4  ;;  %v4690_v42 = vld [vmem:[#allocation3 + $0x170] ss:$36 sps:$4 sm:$0xff]   ;;  %3278 = vmatprep.mubr.bf16.mxu1 %v4688_v9  ;;  %v4703_v1 = vld [vmem:[%s5720_s3 + $0x198] sm:$0xff]  }
  0xef   : > { %v2140_v3 = vld [vmem:[#allocation3 + $0x18c] sm:$0xff]  ;;  %v1041_v11 = vrot.slane %v1040_v60, 4  ;;  %1248 = vst [vmem:[#allocation3 + $0x1b8] sm:$0xf] %v1209_v6  ;;  %v1051_v51 = vrot.slane %v1050_v61, 4  ;;  %3279 = vmatmul.mubr.bf16.gmra.mxu1 %v4690_v42  ;;  %v4704_v39 = vld [vmem:[%s5720_s3 + $0x1d0] sm:$0xff]  }
  0xf0   : > { %v4686_v4 = vld [vmem:[#allocation3 + $0x16c] ss:$36 sps:$4 sm:$0xff]   ;;  %v3997_v10 = vcombine.low %v2135_v2, %v2140_v3  ;;  %v1212_v12 = vsel %vm5217_vm13, %v1210_v7, %v1211_v58  ;;  %4451 = vmatpush3.bf16.msra.mxu1 %v4703_v1  ;;  %v4705_v15 = vld [vmem:[%s5720_s3 + $0x190] sm:$0xff]   ;;  %v845_v17 = vld [vmem:[#allocation2 + $0x58] sm:$0xf] }
  0xf1   : > { %3181 = vmatprep.mubr.bf16.mxu0 %v4686_v4  ;;  %v1046_v14 = vsel %vm5223_vm14, %v1041_v11, %v1045_v53  ;;  %1249 = vst [vmem:[#allocation3 + $0x1dc] sm:$0xf] %v1212_v12  ;;  %v1056_v34 = vsel %vm5223_vm14, %v1051_v51, %v1055_v5  ;;  %4452 = vmatprep.subr.bf16.mxu1 %v4704_v39  ;;  %v844_v16 = vld [vmem:[#allocation2 + $0x54] sm:$0xf]  ;;  %861 = vst [vmem:[#allocation3 + $0x21c] sm:$0xf] %v845_v17 }
  0xf2   : > { %3182 = vmatmul.mubr.bf16.gmra.mxu0 %v3997_v10  ;;  %1109 = vst [vmem:[#allocation3 + $0x1b4] sm:$0xf] %v1046_v14  ;;  %1110 = vst [vmem:[#allocation3 + $0x1d8] sm:$0xf] %v1056_v34  ;;  %v883_v18 = vld [vmem:[#allocation2 + $0x54] sm:$0xf] }
  0xf3   : > { %860 = vst [vmem:[#allocation3 + $0x1f8] sm:$0xf] %v844_v16  ;;  %v884_v19 = vld [vmem:[#allocation2 + $0x58] sm:$0xf]  ;;  %v885_v20 = vld [vmem:[#allocation2 + $0x5c] sm:$0x1] }
  0xf4   : > { %v1058_v21 = vshrl.u32 %v883_v18, 16  ;;  %v1061_v22 = vshll.u32 %v883_v18, 16  ;;  %v1067_v23 = vshll.u32 %v884_v19, 16  ;;  %v1071_v24 = vshrl.u32 %v884_v19, 16  ;;  %v1134_v26 = vld [vmem:[#allocation2 + $0x54] sm:$0xe]  ;;  %4453 = vmatpush3.bf16.msra.mxu1 %v4705_v15 }
  0xf5   : > { %v1077_v25 = vshll.u32 %v885_v20, 16  ;;  %v4697_v27 = vld [vmem:[#allocation3 + $0x1bc] ss:$36 sps:$4 sm:$0xff]   ;;  %v4711_v36 = vld [vmem:[%s5720_s3 + $0x140] sm:$0xff]   ;;  %v3935_v41 = vrot.slane %v1134_v26, 9  ;;  %v4712_v49 = vld [vmem:[%s5720_s3 + $0x1c8] sm:$0xff]  }
  0xf6   : > { %v1060_v29 = vrot.slane %v1058_v21, 4  ;;  %v1063_v31 = vrot.slane %v1061_v22, 5  ;;  %v1069_v32 = vrot.slane %v1067_v23, 5  ;;  %v1073_v33 = vrot.slane %v1071_v24, 4  ;;  %3286 = vmatprep.mubr.bf16.mxu1 %v4697_v27  ;;  %v1135_v40 = vld [vmem:[#allocation2 + $0x58] sm:$0xf]  ;;  %4392 = vmatprep.subr.bf16.mxu0 %v4711_v36 }
  0xf7   : > { %v1079_v35 = vrot.slane %v1077_v25, 5  ;;  %v1136_v46 = vld [vmem:[#allocation2 + $0x5c] sm:$0x1]  ;;  %v1215_v47 = vrot.slane %v1135_v40, 5  ;;  %v1266_v48 = vld [vmem:[#allocation2 + $0x60] sm:$0xf]  ;;  %4454 = vmatprep.subr.bf16.mxu1 %v4712_v49 }
  0xf8   : > { %v4699_v28 = vld [vmem:[#allocation3 + $0x1b8] ss:$36 sps:$4 sm:$0xff]   ;;  %v1064_v44 = vor.u32 %v1063_v31, %v1060_v29  ;;  %v1074_v45 = vor.u32 %v1073_v33, %v1069_v32  ;;  %v1218_v50 = vrot.slane %v1136_v46, 5  ;;  %v1267_v52 = vld [vmem:[#allocation2 + $0x64] sm:$0xf]  ;;  %v4714_v58 = vld [vmem:[%s5720_s3 + $0x188] sm:$0xff]  }
  0xf9   : > { %v2145_v30 = vld [vmem:[#allocation3 + $0x1b0] sm:$0xff]  ;;  %3287 = vmatmul.mubr.bf16.gmra.mxu1 %v4699_v28  ;;  %1282 = vst [vmem:[#allocation3 + $0x204] sm:$0xf] %v1266_v48  ;;  %v4713_v53 = vld [vmem:[%s5720_s3 + $0x100] sm:$0xff]   ;;  %v1216_v56 = vsel %vm5217_vm13, %v3935_v41, %v1215_v47  ;;  %v1217_v57 = vrot.slane %v1215_v47, 4  ;;  %v5387_v39 = vld [vmem:[%s5720_s3 + $0x238] sm:$0xff]  }
  0xfa   : > { %v2150_v37 = vld [vmem:[#allocation3 + $0x1d4] sm:$0xff]  ;;  %v1065_v54 = vrot.slane %v1064_v44, 4  ;;  %v1075_v55 = vrot.slane %v1074_v45, 4  ;;  %1283 = vst [vmem:[#allocation3 + $0x228] sm:$0xf] %v1267_v52  ;;  %4393 = vmatpush3.bf16.msra.mxu0 %v4713_v53  ;;  %4455 = vmatpush3.bf16.msra.mxu1 %v4714_v58  ;;  %v4715_v62 = vld [vmem:[%s5720_s3 + $0x1c0] sm:$0xff]  }
  0xfb   : > { %v4695_v38 = vld [vmem:[#allocation3 + $0x1b4] ss:$36 sps:$4 sm:$0xff]   ;;  %v4006_v43 = vcombine.low %v2145_v30, %v2150_v37  ;;  %1250 = vst [vmem:[#allocation3 + $0x200] sm:$0xf] %v1216_v56  ;;  %v1219_v61 = vsel %vm5217_vm13, %v1217_v57, %v1218_v50  ;;  %v4716_v0 = vld [vmem:[%s5720_s3 + $0x180] sm:$0xff]   ;;  %4456 = vmatprep.subr.bf16.mxu1 %v4715_v62  ;;  %4522 = vmatprep.subr.bf16.mxu0 %v5387_v39 }
  0xfc   : > { %3189 = vmatprep.mubr.bf16.mxu0 %v4695_v38  ;;  %v1070_v59 = vsel %vm5223_vm14, %v1065_v54, %v1069_v32  ;;  %v1080_v60 = vsel %vm5223_vm14, %v1075_v55, %v1079_v35  ;;  %1251 = vst [vmem:[#allocation3 + $0x224] sm:$0xf] %v1219_v61  ;;  %v1284_v2 = vld [vmem:[#allocation2 + $0xc] sm:$0xf]  ;;  %v1285_v3 = vld [vmem:[#allocation2 + $0x10] sm:$0xf] }
  0xfd   : > { %3190 = vmatmul.mubr.bf16.gmra.mxu0 %v4006_v43  ;;  %1111 = vst [vmem:[#allocation3 + $0x1fc] sm:$0xf] %v1070_v59  ;;  %1112 = vst [vmem:[#allocation3 + $0x220] sm:$0xf] %v1080_v60  ;;  %v1286_v4 = vld [vmem:[#allocation2 + $0x14] sm:$0x1] }
  0xfe   : > { %4457 = vmatpush3.bf16.msra.mxu1 %v4716_v0  ;;  %v1309_v5 = vshrl.u32 %v1284_v2, 16  ;;  %v1312_v6 = vshll.u32 %v1284_v2, 16  ;;  %v1318_v7 = vshll.u32 %v1285_v3, 16  ;;  %v1322_v9 = vshrl.u32 %v1285_v3, 16  ;;  %v1532_v10 = vld [vmem:[#allocation2 + $0xc] sm:$0xe] }
  0xff   : > { %v1328_v42 = vshll.u32 %v1286_v4, 16  ;;  %v1533_v11 = vld [vmem:[#allocation2 + $0x10] sm:$0xf]  ;;  %v1534_v51 = vld [vmem:[#allocation2 + $0x14] sm:$0x1]  ;;  %v3936_v12 = vrot.slane %v1532_v10, 9  ;;  %4554 = vmatprep.subr.bf16.mxu1 %v5387_v39 }
 0x100   : > { %v1311_v13 = vrot.slane %v1309_v5, 4  ;;  %v1314_v14 = vrot.slane %v1312_v6, 5  ;;  %v1320_v34 = vrot.slane %v1318_v7, 5  ;;  %v1324_v1 = vrot.slane %v1322_v9, 4  ;;  %v1669_v17 = vld [vmem:[#allocation2 + $0x18] sm:$0xf] }
 0x101   : > { %v1582_v15 = vrot.slane %v1533_v11, 5  ;;  %v1585_v16 = vrot.slane %v1534_v51, 5  ;;  %v1330_v23 = vrot.slane %v1328_v42, 5  ;;  %1685 = vst [vmem:[#allocation3 + $0x18] sm:$0xf] %v1669_v17 }
 0x102   : > { %v1315_v21 = vor.u32 %v1314_v14, %v1311_v13  ;;  %v1325_v22 = vor.u32 %v1324_v1, %v1320_v34  ;;  %v4708_v24 = vld [vmem:[#allocation3 + $0x204] ss:$36 sps:$4 sm:$0xff]   ;;  %v1701_v32 = vld [vmem:[#allocation2 + $0x18] sm:$0xf]  ;;  %v1671_v11 = vld [vmem:[#allocation2 + $0x24] sm:$0xf] }
 0x103   : > { %v4710_v26 = vld [vmem:[#allocation3 + $0x200] ss:$36 sps:$4 sm:$0xff]   ;;  %v1583_v27 = vsel %vm5217_vm13, %v3936_v12, %v1582_v15  ;;  %v1584_v28 = vrot.slane %v1582_v15, 4  ;;  %3294 = vmatprep.mubr.bf16.mxu1 %v4708_v24  ;;  %v1703_v36 = vld [vmem:[#allocation2 + $0x20] sm:$0x1]  ;;  %v1726_v37 = vshrl.u32 %v1701_v32, 16 }
 0x104   : > { %v2155_v18 = vld [vmem:[#allocation3 + $0x1f8] sm:$0xff]  ;;  %v1316_v29 = vrot.slane %v1315_v21, 4  ;;  %v1326_v30 = vrot.slane %v1325_v22, 4  ;;  %1652 = vst [vmem:[#allocation3 + $0x14] sm:$0xf] %v1583_v27  ;;  %v1729_v38 = vshll.u32 %v1701_v32, 16  ;;  %3295 = vmatmul.mubr.bf16.gmra.mxu1 %v4710_v26 }
 0x105   : > { %v2160_v19 = vld [vmem:[#allocation3 + $0x21c] sm:$0xff]  ;;  %v1670_v31 = vld [vmem:[#allocation2 + $0x1c] sm:$0xf]  ;;  %v1586_v33 = vsel %vm5217_vm13, %v1584_v28, %v1585_v16  ;;  %v1728_v45 = vrot.slane %v1726_v37, 4  ;;  %v1745_v47 = vshll.u32 %v1703_v36, 16 }
 0x106   : > { %v4706_v20 = vld [vmem:[#allocation3 + $0x1fc] ss:$36 sps:$4 sm:$0xff]   ;;  %v4015_v25 = vcombine.low %v2155_v18, %v2160_v19  ;;  %1686 = vst [vmem:[#allocation3 + $0x3c] sm:$0xf] %v1670_v31  ;;  %v1702_v35 = vld [vmem:[#allocation2 + $0x1c] sm:$0xf]  ;;  %v1321_v40 = vsel %vm5223_vm14, %v1316_v29, %v1320_v34  ;;  %v1331_v41 = vsel %vm5223_vm14, %v1326_v30, %v1330_v23 }
 0x107   : > { %3197 = vmatprep.mubr.bf16.mxu0 %v4706_v20  ;;  %1653 = vst [vmem:[#allocation3 + $0x38] sm:$0xf] %v1586_v33  ;;  %v1735_v43 = vshll.u32 %v1702_v35, 16  ;;  %v1739_v44 = vshrl.u32 %v1702_v35, 16  ;;  %1516 = vst [vmem:[#allocation3 + $0x10] sm:$0xf] %v1321_v40 }
 0x108   : > { %3198 = vmatmul.mubr.bf16.gmra.mxu0 %v4015_v25  ;;  %1517 = vst [vmem:[#allocation3 + $0x34] sm:$0xf] %v1331_v41  ;;  %v1731_v46 = vrot.slane %v1729_v38, 5  ;;  %v1287_v48 = vld [vmem:[#allocation2 + $0x18] sm:$0xf]  ;;  %v1747_v55 = vrot.slane %v1745_v47, 5 }
 0x109   : > { %v1737_v49 = vrot.slane %v1735_v43, 5  ;;  %v1741_v50 = vrot.slane %v1739_v44, 4  ;;  %v1288_v52 = vld [vmem:[#allocation2 + $0x1c] sm:$0xf]  ;;  %v1289_v53 = vld [vmem:[#allocation2 + $0x20] sm:$0x1] }
 0x10a   : > { %v1732_v54 = vor.u32 %v1731_v46, %v1728_v45  ;;  %v1333_v56 = vshrl.u32 %v1287_v48, 16  ;;  %v1336_v57 = vshll.u32 %v1287_v48, 16  ;;  %v1535_v58 = vld [vmem:[#allocation2 + $0x18] sm:$0xe]  ;;  %v1342_v60 = vshll.u32 %v1288_v52, 16  ;;  %v5406_v20 = vld [vmem:[%s5720_s3 + $0x230] sm:$0xff]  }
 0x10b   : > { %v1742_v59 = vor.u32 %v1741_v50, %v1737_v49  ;;  %v1346_v61 = vshrl.u32 %v1288_v52, 16  ;;  %v1352_v62 = vshll.u32 %v1289_v53, 16  ;;  %v1536_v0 = vld [vmem:[#allocation2 + $0x1c] sm:$0xf]  ;;  %v1537_v5 = vld [vmem:[#allocation2 + $0x20] sm:$0x1] }
 0x10c   : > { %v1733_v2 = vrot.slane %v1732_v54, 4  ;;  %v1335_v3 = vrot.slane %v1333_v56, 4  ;;  %v1338_v4 = vrot.slane %v1336_v57, 5  ;;  %v3937_v6 = vrot.slane %v1535_v58, 9  ;;  %v1672_v34 = vld [vmem:[#allocation2 + $0x28] sm:$0xf] }
 0x10d   : > { %v1743_v7 = vrot.slane %v1742_v59, 4  ;;  %v1344_v9 = vrot.slane %v1342_v60, 5  ;;  %v1348_v10 = vrot.slane %v1346_v61, 4  ;;  %v1354_v42 = vrot.slane %v1352_v62, 5  ;;  %1687 = vst [vmem:[#allocation3 + $0x60] sm:$0xf] %v1671_v11 }
 0x10e   : > { %v1738_v51 = vsel %vm5223_vm14, %v1733_v2, %v1737_v49  ;;  %v1339_v12 = vor.u32 %v1338_v4, %v1335_v3  ;;  %v1589_v13 = vrot.slane %v1536_v0, 5  ;;  %v1592_v14 = vrot.slane %v1537_v5, 5  ;;  %v1704_v1 = vld [vmem:[#allocation2 + $0x24] sm:$0xf]  ;;  %1688 = vst [vmem:[#allocation3 + $0x84] sm:$0xf] %v1672_v34 }
 0x10f   : > { %v4717_v15 = vld [vmem:[#allocation3 + $0x10] ss:$36 sps:$4 sm:$0xff]   ;;  %v1748_v16 = vsel %vm5223_vm14, %v1743_v7, %v1747_v55  ;;  %1933 = vst [vmem:[#allocation3 + $0x1c] sm:$0xf] %v1738_v51  ;;  %v1349_v17 = vor.u32 %v1348_v10, %v1344_v9  ;;  %v1750_v18 = vshrl.u32 %v1704_v1, 16  ;;  %v1753_v19 = vshll.u32 %v1704_v1, 16 }
 0x110   : > { %v4719_v21 = vld [vmem:[#allocation3 + $0x14] ss:$36 sps:$4 sm:$0xff]   ;;  %1934 = vst [vmem:[#allocation3 + $0x40] sm:$0xf] %v1748_v16  ;;  %v1340_v22 = vrot.slane %v1339_v12, 4  ;;  %v1590_v23 = vsel %vm5217_vm13, %v3937_v6, %v1589_v13  ;;  %v1591_v24 = vrot.slane %v1589_v13, 4 }
 0x111   : > { %v1705_v25 = vld [vmem:[#allocation2 + $0x28] sm:$0xf]  ;;  %v1350_v26 = vrot.slane %v1349_v17, 4  ;;  %1654 = vst [vmem:[#allocation3 + $0x5c] sm:$0xf] %v1590_v23  ;;  %v1752_v28 = vrot.slane %v1750_v18, 4  ;;  %3335 = vmatprep.mubr.bf16.mxu0 %v4719_v21 }
 0x112   : > { %v1706_v27 = vld [vmem:[#allocation2 + $0x2c] sm:$0x1]  ;;  %v1755_v29 = vrot.slane %v1753_v19, 5  ;;  %v1759_v30 = vshll.u32 %v1705_v25, 16  ;;  %v1345_v31 = vsel %vm5223_vm14, %v1340_v22, %v1344_v9  ;;  %v1593_v32 = vsel %vm5217_vm13, %v1591_v24, %v1592_v14  ;;  %3336 = vmatmul.mubr.bf16.vlgmr.msra.gmra.mxu0 %v4717_v15  ;;  %v1290_v40 = vld [vmem:[#allocation2 + $0x24] sm:$0xf] }
 0x113   : > { %v1763_v33 = vshrl.u32 %v1705_v25, 16  ;;  %v1769_v35 = vshll.u32 %v1706_v27, 16  ;;  %v1355_v36 = vsel %vm5223_vm14, %v1350_v26, %v1354_v42  ;;  %1518 = vst [vmem:[#allocation3 + $0x58] sm:$0xf] %v1345_v31  ;;  %1655 = vst [vmem:[#allocation3 + $0x80] sm:$0xf] %v1593_v32  ;;  %4523 = vmatpush3.bf16.msra.mxu0 %v5387_v39 }
 0x114   : > { %v1756_v37 = vor.u32 %v1755_v29, %v1752_v28  ;;  %v1761_v38 = vrot.slane %v1759_v30, 5  ;;  %v1291_v41 = vld [vmem:[#allocation2 + $0x28] sm:$0xf]  ;;  %1519 = vst [vmem:[#allocation3 + $0x7c] sm:$0xf] %v1355_v36  ;;  %v1357_v47 = vshrl.u32 %v1290_v40, 16  ;;  %4524 = vmatprep.subr.bf16.mxu0 %v5406_v20 }
 0x115   : > { %v5419_v43 = vld [vmem:[%s5720_s3 + $0x228] sm:$0xff]   ;;  %v1765_v44 = vrot.slane %v1763_v33, 4  ;;  %v1771_v45 = vrot.slane %v1769_v35, 5  ;;  %v1360_v48 = vshll.u32 %v1290_v40, 16  ;;  %v1366_v50 = vshll.u32 %v1291_v41, 16  ;;  %v5429_v7 = vld [vmem:[%s5720_s3 + $0x220] sm:$0xff]  }
 0x116   : > { %v1292_v46 = vld [vmem:[#allocation2 + $0x2c] sm:$0x1]  ;;  %v1757_v49 = vrot.slane %v1756_v37, 4  ;;  %v1370_v52 = vshrl.u32 %v1291_v41, 16  ;;  %v1538_v54 = vld [vmem:[#allocation2 + $0x24] sm:$0xe] }
 0x117   : > { %v1376_v53 = vshll.u32 %v1292_v46, 16  ;;  %v1766_v55 = vor.u32 %v1765_v44, %v1761_v38  ;;  %v1359_v56 = vrot.slane %v1357_v47, 4  ;;  %v1362_v57 = vrot.slane %v1360_v48, 5  ;;  %v1539_v58 = vld [vmem:[#allocation2 + $0x28] sm:$0xf]  ;;  %4525 = vmatpush3.bf16.msra.mxu0 %v5406_v20  ;;  %v5447_v29 = vld [vmem:[%s5720_s3 + $0x218] sm:$0xff]  }
 0x118   : > { %v3938_v59 = vrot.slane %v1538_v54, 9  ;;  %v4720_v60 = vld [vmem:[#allocation3 + $0x18] ss:$36 sps:$4 sm:$0xff]   ;;  %v1762_v62 = vsel %vm5223_vm14, %v1757_v49, %v1761_v38  ;;  %v1368_v0 = vrot.slane %v1366_v50, 5  ;;  %v1372_v4 = vrot.slane %v1370_v52, 4  ;;  %4526 = vmatprep.subr.bf16.mxu0 %v5419_v43 }
 0x119   : > { %v4722_v61 = vld [vmem:[#allocation3 + $0x1c] ss:$36 sps:$4 sm:$0xff]   ;;  %v1767_v2 = vrot.slane %v1766_v55, 4  ;;  %1935 = vst [vmem:[#allocation3 + $0x64] sm:$0xf] %v1762_v62  ;;  %v1363_v3 = vor.u32 %v1362_v57, %v1359_v56  ;;  %v1378_v5 = vrot.slane %v1376_v53, 5 }
 0x11a   : > { %v1540_v6 = vld [vmem:[#allocation2 + $0x2c] sm:$0x1]  ;;  %3432 = vmatprep.mubr.bf16.mxu1 %v4722_v61  ;;  %v1596_v9 = vrot.slane %v1539_v58, 5  ;;  %v1673_v42 = vld [vmem:[#allocation2 + $0x30] sm:$0xf]  ;;  %v1373_v14 = vor.u32 %v1372_v4, %v1368_v0 }
 0x11b   : > { %v1599_v10 = vrot.slane %v1540_v6, 5  ;;  %v1674_v11 = vld [vmem:[#allocation2 + $0x34] sm:$0xf]  ;;  %3433 = vmatmul.mubr.bf16.vlgmr.msra.gmra.mxu1 %v4720_v60  ;;  %v1772_v12 = vsel %vm5223_vm14, %v1767_v2, %v1771_v45  ;;  %v1364_v13 = vrot.slane %v1363_v3, 4  ;;  %1689 = vst [vmem:[#allocation3 + $0xa8] sm:$0xf] %v1673_v42  ;;  %4527 = vmatpush3.bf16.msra.mxu0 %v5419_v43 }
 0x11c   : > { %v2097_v51 = vld [vmem:[#allocation3 + $0x58] sm:$0xff]  ;;  %1690 = vst [vmem:[#allocation3 + $0xcc] sm:$0xf] %v1674_v11  ;;  %1936 = vst [vmem:[#allocation3 + $0x88] sm:$0xf] %v1772_v12  ;;  %v1597_v17 = vsel %vm5217_vm13, %v3938_v59, %v1596_v9  ;;  %v1598_v18 = vrot.slane %v1596_v9, 4  ;;  %4562 = vmatpush3.bf16.msra.mxu1 %v5387_v39  ;;  %4528 = vmatprep.subr.bf16.mxu0 %v5429_v7 }
 0x11d   : > { %v1707_v34 = vld [vmem:[#allocation2 + $0x30] sm:$0xf]  ;;  %v1708_v1 = vld [vmem:[#allocation2 + $0x34] sm:$0xf]  ;;  %v1709_v19 = vld [vmem:[#allocation2 + $0x38] sm:$0x1]  ;;  %v1369_v22 = vsel %vm5223_vm14, %v1364_v13, %v1368_v0  ;;  %4555 = vmatprep.subr.bf16.mxu1 %v5406_v20 }
 0x11e   : > { %v2102_v15 = vld [vmem:[#allocation3 + $0x7c] sm:$0xff]  ;;  %v1374_v23 = vrot.slane %v1373_v14, 4  ;;  %1656 = vst [vmem:[#allocation3 + $0xa4] sm:$0xf] %v1597_v17  ;;  %v1774_v24 = vshrl.u32 %v1707_v34, 16  ;;  %v1600_v25 = vsel %vm5217_vm13, %v1598_v18, %v1599_v10  ;;  %v1777_v26 = vshll.u32 %v1707_v34, 16 }
 0x11f   : > { %v4724_v16 = vld [vmem:[#allocation3 + $0x5c] ss:$36 sps:$4 sm:$0xff]   ;;  %v3965_v21 = vcombine.low %v2097_v51, %v2102_v15  ;;  %1520 = vst [vmem:[#allocation3 + $0xa0] sm:$0xf] %v1369_v22  ;;  %v1783_v27 = vshll.u32 %v1708_v1, 16  ;;  %v1787_v28 = vshrl.u32 %v1708_v1, 16  ;;  %4529 = vmatpush3.bf16.msra.mxu0 %v5429_v7 }
 0x120   : > { %3343 = vmatprep.mubr.bf16.mxu0 %v4724_v16  ;;  %v1293_v39 = vld [vmem:[#allocation2 + $0x30] sm:$0xf]  ;;  %v1379_v30 = vsel %vm5223_vm14, %v1374_v23, %v1378_v5  ;;  %1657 = vst [vmem:[#allocation3 + $0xc8] sm:$0xf] %v1600_v25  ;;  %v1776_v31 = vrot.slane %v1774_v24, 4  ;;  %v1793_v32 = vshll.u32 %v1709_v19, 16  ;;  %4563 = vmatpush3.bf16.msra.mxu1 %v5406_v20 }
 0x121   : > { %3344 = vmatmul.mubr.bf16.gmra.mxu0 %v3965_v21  ;;  %v1294_v33 = vld [vmem:[#allocation2 + $0x34] sm:$0xf]  ;;  %v1295_v35 = vld [vmem:[#allocation2 + $0x38] sm:$0x1]  ;;  %1521 = vst [vmem:[#allocation3 + $0xc4] sm:$0xf] %v1379_v30  ;;  %4556 = vmatprep.subr.bf16.mxu1 %v5419_v43 }
 0x122   : > { %v1779_v36 = vrot.slane %v1777_v26, 5  ;;  %v1785_v37 = vrot.slane %v1783_v27, 5  ;;  %v1789_v38 = vrot.slane %v1787_v28, 4  ;;  %v1381_v40 = vshrl.u32 %v1293_v39, 16  ;;  %v1541_v47 = vld [vmem:[#allocation2 + $0x30] sm:$0xe]  ;;  %4530 = vmatprep.subr.bf16.mxu0 %v5447_v29 }
 0x123   : > { %v1795_v41 = vrot.slane %v1793_v32, 5  ;;  %v1384_v44 = vshll.u32 %v1293_v39, 16  ;;  %v1390_v45 = vshll.u32 %v1294_v33, 16  ;;  %v1394_v46 = vshrl.u32 %v1294_v33, 16  ;;  %v5457_v48 = vld [vmem:[%s5720_s3 + $0x210] sm:$0xff]   ;;  %4531 = vmatpush3.bf16.msra.mxu0 %v5447_v29  ;;  %v5470_v12 = vld [vmem:[%s5720_s3 + $0x208] sm:$0xff]  }
 0x124   : > { %v1780_v49 = vor.u32 %v1779_v36, %v1776_v31  ;;  %v1790_v50 = vor.u32 %v1789_v38, %v1785_v37  ;;  %v1383_v52 = vrot.slane %v1381_v40, 4  ;;  %v1400_v53 = vshll.u32 %v1295_v35, 16  ;;  %v1542_v54 = vld [vmem:[#allocation2 + $0x34] sm:$0xf]  ;;  %v1543_v20 = vld [vmem:[#allocation2 + $0x38] sm:$0x1]  ;;  %4564 = vmatpush3.bf16.msra.mxu1 %v5419_v43  ;;  %4532 = vmatprep.subr.bf16.mxu0 %v5457_v48 }
 0x125   : > { %v4726_v55 = vld [vmem:[#allocation3 + $0x64] ss:$36 sps:$4 sm:$0xff]   ;;  %v1386_v57 = vrot.slane %v1384_v44, 5  ;;  %v1392_v60 = vrot.slane %v1390_v45, 5  ;;  %v1396_v61 = vrot.slane %v1394_v46, 4  ;;  %v3939_v4 = vrot.slane %v1541_v47, 9  ;;  %4557 = vmatprep.subr.bf16.mxu1 %v5429_v7 }
 0x126   : > { %v4728_v56 = vld [vmem:[#allocation3 + $0x60] ss:$36 sps:$4 sm:$0xff]   ;;  %v1781_v58 = vrot.slane %v1780_v49, 4  ;;  %v1791_v59 = vrot.slane %v1790_v50, 4  ;;  %3440 = vmatprep.mubr.bf16.mxu1 %v4726_v55  ;;  %v1402_v3 = vrot.slane %v1400_v53, 5  ;;  %v1603_v5 = vrot.slane %v1542_v54, 5 }
 0x127   : > { %v1675_v62 = vld [vmem:[#allocation2 + $0x3c] sm:$0xf]  ;;  %v1387_v2 = vor.u32 %v1386_v57, %v1383_v52  ;;  %v1676_v6 = vld [vmem:[#allocation2 + $0x40] sm:$0xf]  ;;  %3441 = vmatmul.mubr.bf16.gmra.mxu1 %v4728_v56  ;;  %v1397_v42 = vor.u32 %v1396_v61, %v1392_v60  ;;  %v1606_v11 = vrot.slane %v1543_v20, 5  ;;  %4533 = vmatpush3.bf16.msra.mxu0 %v5457_v48 }
 0x128   : > { %v2107_v0 = vld [vmem:[#allocation3 + $0xa0] sm:$0xff]  ;;  %1691 = vst [vmem:[#allocation3 + $0xf0] sm:$0xf] %v1675_v62  ;;  %v1786_v9 = vsel %vm5223_vm14, %v1781_v58, %v1785_v37  ;;  %v1796_v10 = vsel %vm5223_vm14, %v1791_v59, %v1795_v41  ;;  %1692 = vst [vmem:[#allocation3 + $0x114] sm:$0xf] %v1676_v6  ;;  %v1604_v1 = vsel %vm5217_vm13, %v3939_v4, %v1603_v5  ;;  %v1605_v15 = vrot.slane %v1603_v5, 4 }
 0x129   : > { %v1710_v43 = vld [vmem:[#allocation2 + $0x3c] sm:$0xf]  ;;  %v1711_v51 = vld [vmem:[#allocation2 + $0x40] sm:$0xf]  ;;  %1937 = vst [vmem:[#allocation3 + $0xac] sm:$0xf] %v1786_v9  ;;  %4565 = vmatpush3.bf16.msra.mxu1 %v5429_v7  ;;  %4534 = vmatprep.subr.bf16.mxu0 %v5470_v12 }
 0x12a   : > { %v2112_v13 = vld [vmem:[#allocation3 + $0xc4] sm:$0xff]  ;;  %1938 = vst [vmem:[#allocation3 + $0xd0] sm:$0xf] %v1796_v10  ;;  %v1388_v34 = vrot.slane %v1387_v2, 4  ;;  %v1798_v16 = vshrl.u32 %v1710_v43, 16  ;;  %v1398_v18 = vrot.slane %v1397_v42, 4  ;;  %v1607_v24 = vsel %vm5217_vm13, %v1605_v15, %v1606_v11  ;;  %4558 = vmatprep.subr.bf16.mxu1 %v5447_v29 }
 0x12b   : > { %v4730_v14 = vld [vmem:[#allocation3 + $0xa4] ss:$36 sps:$4 sm:$0xff]   ;;  %v3974_v17 = vcombine.low %v2107_v0, %v2112_v13  ;;  %1658 = vst [vmem:[#allocation3 + $0xec] sm:$0xf] %v1604_v1  ;;  %v1712_v19 = vld [vmem:[#allocation2 + $0x44] sm:$0x1]  ;;  %4535 = vmatpush3.bf16.msra.mxu0 %v5470_v12 }
 0x12c   : > { %v1801_v21 = vshll.u32 %v1710_v43, 16  ;;  %v1807_v22 = vshll.u32 %v1711_v51, 16  ;;  %3351 = vmatprep.mubr.bf16.mxu0 %v4730_v14  ;;  %v1393_v23 = vsel %vm5223_vm14, %v1388_v34, %v1392_v60  ;;  %v1800_v25 = vrot.slane %v1798_v16, 4  ;;  %1659 = vst [vmem:[#allocation3 + $0x110] sm:$0xf] %v1607_v24  ;;  %v5487_v31 = vld [vmem:[%s5720_s3 + $0x200] sm:$0xff]  }
 0x12d   : > { %v1811_v26 = vshrl.u32 %v1711_v51, 16  ;;  %3352 = vmatmul.mubr.bf16.gmra.mxu0 %v3974_v17  ;;  %v1403_v27 = vsel %vm5223_vm14, %v1398_v18, %v1402_v3  ;;  %1522 = vst [vmem:[#allocation3 + $0xe8] sm:$0xf] %v1393_v23  ;;  %v1817_v7 = vshll.u32 %v1712_v19, 16  ;;  %v1296_v30 = vld [vmem:[#allocation2 + $0x3c] sm:$0xf]  ;;  %4566 = vmatpush3.bf16.msra.mxu1 %v5447_v29 }
 0x12e   : > { %v1803_v28 = vrot.slane %v1801_v21, 5  ;;  %v1809_v39 = vrot.slane %v1807_v22, 5  ;;  %1523 = vst [vmem:[#allocation3 + $0x10c] sm:$0xf] %v1403_v27  ;;  %v1297_v33 = vld [vmem:[#allocation2 + $0x40] sm:$0xf]  ;;  %4559 = vmatprep.subr.bf16.mxu1 %v5457_v48  ;;  %4536 = vmatprep.subr.bf16.mxu0 %v5487_v31 }
 0x12f   : > { %v1813_v32 = vrot.slane %v1811_v26, 4  ;;  %v1298_v35 = vld [vmem:[#allocation2 + $0x44] sm:$0x1]  ;;  %v1405_v36 = vshrl.u32 %v1296_v30, 16  ;;  %v1819_v38 = vrot.slane %v1817_v7, 5  ;;  %v1408_v40 = vshll.u32 %v1296_v30, 16  ;;  %4537 = vmatpush3.bf16.msra.mxu0 %v5487_v31 }
 0x130   : > { %v1804_v37 = vor.u32 %v1803_v28, %v1800_v25  ;;  %v1414_v41 = vshll.u32 %v1297_v33, 16  ;;  %v1544_v44 = vld [vmem:[#allocation2 + $0x3c] sm:$0xe]  ;;  %v1418_v47 = vshrl.u32 %v1297_v33, 16  ;;  %v1424_v49 = vshll.u32 %v1298_v35, 16 }
 0x131   : > { %v1814_v45 = vor.u32 %v1813_v32, %v1809_v39  ;;  %v1407_v46 = vrot.slane %v1405_v36, 4  ;;  %v1545_v50 = vld [vmem:[#allocation2 + $0x40] sm:$0xf]  ;;  %v4732_v52 = vld [vmem:[#allocation3 + $0xac] ss:$36 sps:$4 sm:$0xff]   ;;  %v1410_v54 = vrot.slane %v1408_v40, 5  ;;  %4567 = vmatpush3.bf16.msra.mxu1 %v5457_v48 }
 0x132   : > { %v1805_v53 = vrot.slane %v1804_v37, 4  ;;  %v4734_v20 = vld [vmem:[#allocation3 + $0xa8] ss:$36 sps:$4 sm:$0xff]   ;;  %v1416_v56 = vrot.slane %v1414_v41, 5  ;;  %v1420_v57 = vrot.slane %v1418_v47, 4  ;;  %v1426_v58 = vrot.slane %v1424_v49, 5  ;;  %3448 = vmatprep.mubr.bf16.mxu1 %v4732_v52  ;;  %4560 = vmatprep.subr.bf16.mxu1 %v5470_v12 }
 0x133   : > { %v1815_v55 = vrot.slane %v1814_v45, 4  ;;  %v1411_v59 = vor.u32 %v1410_v54, %v1407_v46  ;;  %v1546_v60 = vld [vmem:[#allocation2 + $0x44] sm:$0x1]  ;;  %v3940_v61 = vrot.slane %v1544_v44, 9  ;;  %v1610_v62 = vrot.slane %v1545_v50, 5  ;;  %3449 = vmatmul.mubr.bf16.gmra.mxu1 %v4734_v20 }
 0x134   : > { %v1810_v29 = vsel %vm5223_vm14, %v1805_v53, %v1809_v39  ;;  %v1677_v0 = vld [vmem:[#allocation2 + $0x48] sm:$0xf]  ;;  %v2117_v2 = vld [vmem:[#allocation3 + $0xe8] sm:$0xff]  ;;  %v1421_v4 = vor.u32 %v1420_v57, %v1416_v56  ;;  %v1613_v5 = vrot.slane %v1546_v60, 5  ;;  %v1678_v6 = vld [vmem:[#allocation2 + $0x4c] sm:$0xf] }
 0x135   : > { %v1820_v3 = vsel %vm5223_vm14, %v1815_v55, %v1819_v38  ;;  %1939 = vst [vmem:[#allocation3 + $0xf4] sm:$0xf] %v1810_v29  ;;  %1693 = vst [vmem:[#allocation3 + $0x138] sm:$0xf] %v1677_v0  ;;  %v1713_v9 = vld [vmem:[#allocation2 + $0x48] sm:$0xf]  ;;  %v1611_v48 = vsel %vm5217_vm13, %v3940_v61, %v1610_v62  ;;  %4568 = vmatpush3.bf16.msra.mxu1 %v5470_v12 }
 0x136   : > { %v2122_v10 = vld [vmem:[#allocation3 + $0x10c] sm:$0xff]  ;;  %1940 = vst [vmem:[#allocation3 + $0x118] sm:$0xf] %v1820_v3  ;;  %v1412_v11 = vrot.slane %v1411_v59, 4  ;;  %v1612_v43 = vrot.slane %v1610_v62, 4  ;;  %v1822_v51 = vshrl.u32 %v1713_v9, 16  ;;  %4561 = vmatprep.subr.bf16.mxu1 %v5487_v31 }
 0x137   : > { %v4736_v42 = vld [vmem:[#allocation3 + $0xec] ss:$36 sps:$4 sm:$0xff]   ;;  %1694 = vst [vmem:[#allocation3 + $0x15c] sm:$0xf] %v1678_v6  ;;  %v3983_v13 = vcombine.low %v2117_v2, %v2122_v10  ;;  %v1422_v14 = vrot.slane %v1421_v4, 4  ;;  %v1825_v15 = vshll.u32 %v1713_v9, 16 }
 0x138   : > { %1660 = vst [vmem:[#allocation3 + $0x134] sm:$0xf] %v1611_v48  ;;  %v1714_v34 = vld [vmem:[#allocation2 + $0x4c] sm:$0xf]  ;;  %v1715_v1 = vld [vmem:[#allocation2 + $0x50] sm:$0x1]  ;;  %3359 = vmatprep.mubr.bf16.mxu0 %v4736_v42  ;;  %v1417_v16 = vsel %vm5223_vm14, %v1412_v11, %v1416_v56  ;;  %v1614_v17 = vsel %vm5217_vm13, %v1612_v43, %v1613_v5 }
 0x139   : > { %v1824_v18 = vrot.slane %v1822_v51, 4  ;;  %v1831_v19 = vshll.u32 %v1714_v34, 16  ;;  %3360 = vmatmul.mubr.bf16.gmra.mxu0 %v3983_v13  ;;  %v1427_v21 = vsel %vm5223_vm14, %v1422_v14, %v1426_v58  ;;  %1524 = vst [vmem:[#allocation3 + $0x130] sm:$0xf] %v1417_v16  ;;  %1661 = vst [vmem:[#allocation3 + $0x158] sm:$0xf] %v1614_v17  ;;  %4569 = vmatpush3.bf16.msra.mxu1 %v5487_v31 }
 0x13a   : > { %v1827_v22 = vrot.slane %v1825_v15, 5  ;;  %v1835_v23 = vshrl.u32 %v1714_v34, 16  ;;  %v1841_v24 = vshll.u32 %v1715_v1, 16  ;;  %v1299_v25 = vld [vmem:[#allocation2 + $0x48] sm:$0xf] }
 0x13b   : > { %1525 = vst [vmem:[#allocation3 + $0x154] sm:$0xf] %v1427_v21  ;;  %v1833_v26 = vrot.slane %v1831_v19, 5  ;;  %v1300_v27 = vld [vmem:[#allocation2 + $0x4c] sm:$0xf]  ;;  %v1429_v39 = vshrl.u32 %v1299_v25, 16 }
 0x13c   : > { %v1301_v28 = vld [vmem:[#allocation2 + $0x50] sm:$0x1]  ;;  %v1828_v7 = vor.u32 %v1827_v22, %v1824_v18  ;;  %v1837_v30 = vrot.slane %v1835_v23, 4  ;;  %v1843_v12 = vrot.slane %v1841_v24, 5  ;;  %v1432_v32 = vshll.u32 %v1299_v25, 16 }
 0x13d   : > { %v1547_v33 = vld [vmem:[#allocation2 + $0x48] sm:$0xe]  ;;  %v1431_v35 = vrot.slane %v1429_v39, 4  ;;  %v1438_v36 = vshll.u32 %v1300_v27, 16  ;;  %v1442_v37 = vshrl.u32 %v1300_v27, 16  ;;  %v1448_v38 = vshll.u32 %v1301_v28, 16 }
 0x13e   : > { %v4738_v40 = vld [vmem:[#allocation3 + $0xf4] ss:$36 sps:$4 sm:$0xff]   ;;  %v1829_v44 = vrot.slane %v1828_v7, 4  ;;  %v1838_v45 = vor.u32 %v1837_v30, %v1833_v26  ;;  %v1434_v46 = vrot.slane %v1432_v32, 5  ;;  %v3941_v55 = vrot.slane %v1547_v33, 9 }
 0x13f   : > { %v4740_v41 = vld [vmem:[#allocation3 + $0xf0] ss:$36 sps:$4 sm:$0xff]   ;;  %v1440_v47 = vrot.slane %v1438_v36, 5  ;;  %v1444_v49 = vrot.slane %v1442_v37, 4  ;;  %v1450_v50 = vrot.slane %v1448_v38, 5  ;;  %3456 = vmatprep.mubr.bf16.mxu1 %v4738_v40 }
 0x140   : > { %v1548_v52 = vld [vmem:[#allocation2 + $0x4c] sm:$0xf]  ;;  %v1834_v53 = vsel %vm5223_vm14, %v1829_v44, %v1833_v26  ;;  %v1839_v54 = vrot.slane %v1838_v45, 4  ;;  %v1549_v20 = vld [vmem:[#allocation2 + $0x50] sm:$0x1]  ;;  %3457 = vmatmul.mubr.bf16.gmra.mxu1 %v4740_v41  ;;  %v1435_v31 = vor.u32 %v1434_v46, %v1431_v35 }
 0x141   : > { %v1617_v56 = vrot.slane %v1548_v52, 5  ;;  %v2127_v57 = vld [vmem:[#allocation3 + $0x130] sm:$0xff]  ;;  %1941 = vst [vmem:[#allocation3 + $0x13c] sm:$0xf] %v1834_v53  ;;  %v1445_v58 = vor.u32 %v1444_v49, %v1440_v47  ;;  %v1620_v29 = vrot.slane %v1549_v20, 5 }
 0x142   : > { %v1679_v59 = vld [vmem:[#allocation2 + $0x54] sm:$0xf]  ;;  %v1680_v60 = vld [vmem:[#allocation2 + $0x58] sm:$0xf]  ;;  %v2132_v61 = vld [vmem:[#allocation3 + $0x154] sm:$0xff]  ;;  %v1844_v0 = vsel %vm5223_vm14, %v1839_v54, %v1843_v12  ;;  %v1436_v6 = vrot.slane %v1435_v31, 4 }
 0x143   : > { %v4742_v62 = vld [vmem:[#allocation3 + $0x134] ss:$36 sps:$4 sm:$0xff]   ;;  %v1618_v2 = vsel %vm5217_vm13, %v3941_v55, %v1617_v56  ;;  %v1619_v3 = vrot.slane %v1617_v56, 4  ;;  %1695 = vst [vmem:[#allocation3 + $0x180] sm:$0xf] %v1679_v59  ;;  %v3992_v5 = vcombine.low %v2127_v57, %v2132_v61  ;;  %v1446_v9 = vrot.slane %v1445_v58, 4 }
 0x144   : > { %1696 = vst [vmem:[#allocation3 + $0x1a4] sm:$0xf] %v1680_v60  ;;  %v1716_v4 = vld [vmem:[#allocation2 + $0x54] sm:$0xf]  ;;  %1942 = vst [vmem:[#allocation3 + $0x160] sm:$0xf] %v1844_v0  ;;  %3367 = vmatprep.mubr.bf16.mxu0 %v4742_v62  ;;  %v1441_v13 = vsel %vm5223_vm14, %v1436_v6, %v1440_v47 }
 0x145   : > { %1662 = vst [vmem:[#allocation3 + $0x17c] sm:$0xf] %v1618_v2  ;;  %v1717_v10 = vld [vmem:[#allocation2 + $0x58] sm:$0xf]  ;;  %v1718_v42 = vld [vmem:[#allocation2 + $0x5c] sm:$0x1]  ;;  %v1621_v11 = vsel %vm5217_vm13, %v1619_v3, %v1620_v29  ;;  %3368 = vmatmul.mubr.bf16.gmra.mxu0 %v3992_v5  ;;  %v1451_v14 = vsel %vm5223_vm14, %v1446_v9, %v1450_v50 }
 0x146   : > { %v1846_v48 = vshrl.u32 %v1716_v4, 16  ;;  %v1849_v43 = vshll.u32 %v1716_v4, 16  ;;  %v1855_v51 = vshll.u32 %v1717_v10, 16  ;;  %1663 = vst [vmem:[#allocation3 + $0x1a0] sm:$0xf] %v1621_v11  ;;  %v1859_v34 = vshrl.u32 %v1717_v10, 16 }
 0x147   : > { %v1865_v1 = vshll.u32 %v1718_v42, 16  ;;  %v1302_v15 = vld [vmem:[#allocation2 + $0x54] sm:$0xf]  ;;  %1526 = vst [vmem:[#allocation3 + $0x178] sm:$0xf] %v1441_v13 }
 0x148   : > { %1527 = vst [vmem:[#allocation3 + $0x19c] sm:$0xf] %v1451_v14  ;;  %v1848_v16 = vrot.slane %v1846_v48, 4  ;;  %v1851_v17 = vrot.slane %v1849_v43, 5  ;;  %v1857_v18 = vrot.slane %v1855_v51, 5  ;;  %v1453_v21 = vshrl.u32 %v1302_v15, 16 }
 0x149   : > { %v1303_v19 = vld [vmem:[#allocation2 + $0x58] sm:$0xf]  ;;  %v1861_v22 = vrot.slane %v1859_v34, 4  ;;  %v1867_v23 = vrot.slane %v1865_v1, 5  ;;  %v1304_v24 = vld [vmem:[#allocation2 + $0x5c] sm:$0x1] }
 0x14a   : > { %v1456_v25 = vshll.u32 %v1302_v15, 16  ;;  %v1462_v26 = vshll.u32 %v1303_v19, 16  ;;  %v1852_v27 = vor.u32 %v1851_v17, %v1848_v16  ;;  %v1455_v28 = vrot.slane %v1453_v21, 4  ;;  %v1550_v30 = vld [vmem:[#allocation2 + $0x54] sm:$0xe] }
 0x14b   : > { %v1466_v39 = vshrl.u32 %v1303_v19, 16  ;;  %v1472_v7 = vshll.u32 %v1304_v24, 16  ;;  %v1862_v12 = vor.u32 %v1861_v22, %v1857_v18  ;;  %v1551_v35 = vld [vmem:[#allocation2 + $0x58] sm:$0xf]  ;;  %v1552_v36 = vld [vmem:[#allocation2 + $0x5c] sm:$0x1] }
 0x14c   : > { %v1458_v32 = vrot.slane %v1456_v25, 5  ;;  %v1464_v33 = vrot.slane %v1462_v26, 5  ;;  %v4744_v37 = vld [vmem:[#allocation3 + $0x13c] ss:$36 sps:$4 sm:$0xff]   ;;  %v1853_v40 = vrot.slane %v1852_v27, 4  ;;  %v3942_v49 = vrot.slane %v1550_v30, 9 }
 0x14d   : > { %v4746_v38 = vld [vmem:[#allocation3 + $0x138] ss:$36 sps:$4 sm:$0xff]   ;;  %v1863_v41 = vrot.slane %v1862_v12, 4  ;;  %v1468_v45 = vrot.slane %v1466_v39, 4  ;;  %v1681_v46 = vld [vmem:[#allocation2 + $0x60] sm:$0xf]  ;;  %3464 = vmatprep.mubr.bf16.mxu1 %v4744_v37 }
 0x14e   : > { %v1459_v44 = vor.u32 %v1458_v32, %v1455_v28  ;;  %v1858_v47 = vsel %vm5223_vm14, %v1853_v40, %v1857_v18  ;;  %v1624_v50 = vrot.slane %v1551_v35, 5  ;;  %v1627_v52 = vrot.slane %v1552_v36, 5  ;;  %v1682_v53 = vld [vmem:[#allocation2 + $0x64] sm:$0xf]  ;;  %1697 = vst [vmem:[#allocation3 + $0x1c8] sm:$0xf] %v1681_v46  ;;  %3465 = vmatmul.mubr.bf16.gmra.mxu1 %v4746_v38 }
 0x14f   : > { %v2137_v54 = vld [vmem:[#allocation3 + $0x178] sm:$0xff]  ;;  %v1868_v56 = vsel %vm5223_vm14, %v1863_v41, %v1867_v23  ;;  %1943 = vst [vmem:[#allocation3 + $0x184] sm:$0xf] %v1858_v47  ;;  %v1469_v31 = vor.u32 %v1468_v45, %v1464_v33  ;;  %v1474_v58 = vrot.slane %v1472_v7, 5  ;;  %1698 = vst [vmem:[#allocation3 + $0x1ec] sm:$0xf] %v1682_v53 }
 0x150   : > { %v2142_v20 = vld [vmem:[#allocation3 + $0x19c] sm:$0xff]  ;;  %v1460_v57 = vrot.slane %v1459_v44, 4  ;;  %1944 = vst [vmem:[#allocation3 + $0x1a8] sm:$0xf] %v1868_v56  ;;  %v1625_v59 = vsel %vm5217_vm13, %v3942_v49, %v1624_v50  ;;  %v1626_v60 = vrot.slane %v1624_v50, 4 }
 0x151   : > { %v4748_v55 = vld [vmem:[#allocation3 + $0x17c] ss:$36 sps:$4 sm:$0xff]   ;;  %v4001_v29 = vcombine.low %v2137_v54, %v2142_v20  ;;  %v1719_v61 = vld [vmem:[#allocation2 + $0x60] sm:$0xf]  ;;  %v1720_v62 = vld [vmem:[#allocation2 + $0x64] sm:$0xf] }
 0x152   : > { %3375 = vmatprep.mubr.bf16.mxu0 %v4748_v55  ;;  %v1465_v0 = vsel %vm5223_vm14, %v1460_v57, %v1464_v33  ;;  %v1470_v2 = vrot.slane %v1469_v31, 4  ;;  %1664 = vst [vmem:[#allocation3 + $0x1c4] sm:$0xf] %v1625_v59  ;;  %v1721_v3 = vld [vmem:[#allocation2 + $0x68] sm:$0x1]  ;;  %v1870_v4 = vshrl.u32 %v1719_v61, 16  ;;  %v1628_v6 = vsel %vm5217_vm13, %v1626_v60, %v1627_v52 }
 0x153   : > { %v1873_v5 = vshll.u32 %v1719_v61, 16  ;;  %3376 = vmatmul.mubr.bf16.gmra.mxu0 %v4001_v29  ;;  %1528 = vst [vmem:[#allocation3 + $0x1c0] sm:$0xf] %v1465_v0  ;;  %v1879_v9 = vshll.u32 %v1720_v62, 16  ;;  %v1883_v10 = vshrl.u32 %v1720_v62, 16  ;;  %v1889_v42 = vshll.u32 %v1721_v3, 16 }
 0x154   : > { %v1475_v11 = vsel %vm5223_vm14, %v1470_v2, %v1474_v58  ;;  %1665 = vst [vmem:[#allocation3 + $0x1e8] sm:$0xf] %v1628_v6  ;;  %v1872_v48 = vrot.slane %v1870_v4, 4  ;;  %v1305_v51 = vld [vmem:[#allocation2 + $0x60] sm:$0xf] }
 0x155   : > { %v1875_v43 = vrot.slane %v1873_v5, 5  ;;  %1529 = vst [vmem:[#allocation3 + $0x1e4] sm:$0xf] %v1475_v11  ;;  %v1881_v13 = vrot.slane %v1879_v9, 5  ;;  %v1885_v14 = vrot.slane %v1883_v10, 4  ;;  %v1477_v1 = vshrl.u32 %v1305_v51, 16 }
 0x156   : > { %v1306_v34 = vld [vmem:[#allocation2 + $0x64] sm:$0xf]  ;;  %v1307_v16 = vld [vmem:[#allocation2 + $0x68] sm:$0x1]  ;;  %v1480_v17 = vshll.u32 %v1305_v51, 16  ;;  %v1891_v22 = vrot.slane %v1889_v42, 5 }
 0x157   : > { %v1876_v15 = vor.u32 %v1875_v43, %v1872_v48  ;;  %v1486_v18 = vshll.u32 %v1306_v34, 16  ;;  %v1490_v19 = vshrl.u32 %v1306_v34, 16  ;;  %v1886_v21 = vor.u32 %v1885_v14, %v1881_v13  ;;  %v1553_v25 = vld [vmem:[#allocation2 + $0x60] sm:$0xe]  ;;  %v4752_v27 = vld [vmem:[#allocation3 + $0x180] ss:$36 sps:$4 sm:$0xff]  }
 0x158   : > { %v1479_v23 = vrot.slane %v1477_v1, 4  ;;  %v1496_v24 = vshll.u32 %v1307_v16, 16  ;;  %v4750_v26 = vld [vmem:[#allocation3 + $0x184] ss:$36 sps:$4 sm:$0xff]   ;;  %v1482_v7 = vrot.slane %v1480_v17, 5  ;;  %v3943_v38 = vrot.slane %v1553_v25, 9 }
 0x159   : > { %v1877_v28 = vrot.slane %v1876_v15, 4  ;;  %v1887_v39 = vrot.slane %v1886_v21, 4  ;;  %v1488_v30 = vrot.slane %v1486_v18, 5  ;;  %v1492_v12 = vrot.slane %v1490_v19, 4  ;;  %v1554_v32 = vld [vmem:[#allocation2 + $0x64] sm:$0xf]  ;;  %3472 = vmatprep.mubr.bf16.mxu1 %v4750_v26 }
 0x15a   : > { %v2147_v33 = vld [vmem:[#allocation3 + $0x1c0] sm:$0xff]  ;;  %v1498_v36 = vrot.slane %v1496_v24, 5  ;;  %v1555_v37 = vld [vmem:[#allocation2 + $0x68] sm:$0x1]  ;;  %v1631_v40 = vrot.slane %v1554_v32, 5  ;;  %3473 = vmatmul.mubr.bf16.gmra.mxu1 %v4752_v27  ;;  %v1483_v44 = vor.u32 %v1482_v7, %v1479_v23 }
 0x15b   : > { %v1882_v35 = vsel %vm5223_vm14, %v1877_v28, %v1881_v13  ;;  %v1892_v41 = vsel %vm5223_vm14, %v1887_v39, %v1891_v22  ;;  %v1493_v45 = vor.u32 %v1492_v12, %v1488_v30  ;;  %v1634_v46 = vrot.slane %v1555_v37, 5  ;;  %v1683_v47 = vld [vmem:[#allocation2 + $0x6c] sm:$0xf]  ;;  %v1684_v49 = vld [vmem:[#allocation2 + $0x70] sm:$0xf] }
 0x15c   : > { %1945 = vst [vmem:[#allocation3 + $0x1cc] sm:$0xf] %v1882_v35  ;;  %v2152_v50 = vld [vmem:[#allocation3 + $0x1e4] sm:$0xff]  ;;  %1946 = vst [vmem:[#allocation3 + $0x1f0] sm:$0xf] %v1892_v41  ;;  %v1632_v53 = vsel %vm5217_vm13, %v3943_v38, %v1631_v40  ;;  %v1633_v54 = vrot.slane %v1631_v40, 4 }
 0x15d   : > { %v4754_v52 = vld [vmem:[#allocation3 + $0x1c4] ss:$36 sps:$4 sm:$0xff]   ;;  %1699 = vst [vmem:[#allocation3 + $0x210] sm:$0xf] %v1683_v47  ;;  %1700 = vst [vmem:[#allocation3 + $0x234] sm:$0xf] %v1684_v49  ;;  %v4010_v55 = vcombine.low %v2147_v33, %v2152_v50 }
 0x15e   : > { %v1722_v20 = vld [vmem:[#allocation2 + $0x6c] sm:$0xf]  ;;  %v1484_v56 = vrot.slane %v1483_v44, 4  ;;  %v1494_v57 = vrot.slane %v1493_v45, 4  ;;  %1666 = vst [vmem:[#allocation3 + $0x20c] sm:$0xf] %v1632_v53  ;;  %3383 = vmatprep.mubr.bf16.mxu0 %v4754_v52  ;;  %v1635_v29 = vsel %vm5217_vm13, %v1633_v54, %v1634_v46 }
 0x15f   : > { %v1723_v31 = vld [vmem:[#allocation2 + $0x70] sm:$0xf]  ;;  %v1724_v58 = vld [vmem:[#allocation2 + $0x74] sm:$0x1]  ;;  %v1894_v59 = vshrl.u32 %v1722_v20, 16  ;;  %v1897_v60 = vshll.u32 %v1722_v20, 16  ;;  %3384 = vmatmul.mubr.bf16.gmra.mxu0 %v4010_v55 }
 0x160   : > { %v1903_v61 = vshll.u32 %v1723_v31, 16  ;;  %v1489_v62 = vsel %vm5223_vm14, %v1484_v56, %v1488_v30  ;;  %v1499_v0 = vsel %vm5223_vm14, %v1494_v57, %v1498_v36  ;;  %1667 = vst [vmem:[#allocation3 + $0x230] sm:$0xf] %v1635_v29  ;;  %v1907_v2 = vshrl.u32 %v1723_v31, 16  ;;  %v1949_v4 = vld [vmem:[#allocation2 + $0x18] sm:$0xe] }
 0x161   : > { %v1913_v3 = vshll.u32 %v1724_v58, 16  ;;  %1530 = vst [vmem:[#allocation3 + $0x208] sm:$0xf] %v1489_v62  ;;  %1531 = vst [vmem:[#allocation3 + $0x22c] sm:$0xf] %v1499_v0  ;;  %v1896_v5 = vrot.slane %v1894_v59, 4 }
 0x162   : > { %v1899_v6 = vrot.slane %v1897_v60, 5  ;;  %v1905_v9 = vrot.slane %v1903_v61, 5  ;;  %v1950_v10 = vld [vmem:[#allocation2 + $0x1c] sm:$0xf]  ;;  %v3944_v42 = vrot.slane %v1949_v4, 9  ;;  %v1909_v11 = vrot.slane %v1907_v2, 4 }
 0x163   : > { %v1915_v48 = vrot.slane %v1913_v3, 5  ;;  %v1951_v43 = vld [vmem:[#allocation2 + $0x20] sm:$0x1]  ;;  %v1999_v51 = vrot.slane %v1950_v10, 5  ;;  %v1961_v34 = vld [vmem:[#allocation2 + $0x48] sm:$0xe] }
 0x164   : > { %v1900_v13 = vor.u32 %v1899_v6, %v1896_v5  ;;  %v2002_v14 = vrot.slane %v1951_v43, 5  ;;  %v1962_v1 = vld [vmem:[#allocation2 + $0x4c] sm:$0xf]  ;;  %v4756_v15 = vld [vmem:[#allocation3 + $0x1cc] ss:$36 sps:$4 sm:$0xff]   ;;  %v1910_v17 = vor.u32 %v1909_v11, %v1905_v9  ;;  %v3948_v23 = vrot.slane %v1961_v34, 9 }
 0x165   : > { %v4758_v16 = vld [vmem:[#allocation3 + $0x1c8] ss:$36 sps:$4 sm:$0xff]   ;;  %v2000_v18 = vsel %vm5217_vm13, %v3944_v42, %v1999_v51  ;;  %v2001_v19 = vrot.slane %v1999_v51, 4  ;;  %v1963_v22 = vld [vmem:[#allocation2 + $0x50] sm:$0x1]  ;;  %v2027_v24 = vrot.slane %v1962_v1, 5  ;;  %3480 = vmatprep.mubr.bf16.mxu1 %v4756_v15 }
 0x166   : > { %v1901_v21 = vrot.slane %v1900_v13, 4  ;;  %2069 = vst [vmem:[#allocation3 + $0x20] sm:$0xf] %v2000_v18  ;;  %v1911_v25 = vrot.slane %v1910_v17, 4  ;;  %v2030_v27 = vrot.slane %v1963_v22, 5  ;;  %3481 = vmatmul.mubr.bf16.gmra.mxu1 %v4758_v16 }
 0x167   : > { %v2003_v26 = vsel %vm5217_vm13, %v2001_v19, %v2002_v14  ;;  %v1952_v28 = vld [vmem:[#allocation2 + $0x24] sm:$0xe]  ;;  %v1953_v39 = vld [vmem:[#allocation2 + $0x28] sm:$0xf]  ;;  %v2028_v30 = vsel %vm5217_vm13, %v3948_v23, %v2027_v24  ;;  %v2029_v12 = vrot.slane %v2027_v24, 4 }
 0x168   : > { %v1906_v7 = vsel %vm5223_vm14, %v1901_v21, %v1905_v9  ;;  %2070 = vst [vmem:[#allocation3 + $0x44] sm:$0xf] %v2003_v26  ;;  %v1954_v32 = vld [vmem:[#allocation2 + $0x2c] sm:$0x1]  ;;  %v3945_v33 = vrot.slane %v1952_v28, 9  ;;  %v2157_v36 = vld [vmem:[#allocation3 + $0x208] sm:$0xff]  ;;  %v1916_v40 = vsel %vm5223_vm14, %v1911_v25, %v1915_v48 }
 0x169   : > { %v1964_v35 = vld [vmem:[#allocation2 + $0x54] sm:$0xe]  ;;  %v2162_v37 = vld [vmem:[#allocation3 + $0x22c] sm:$0xff]  ;;  %1947 = vst [vmem:[#allocation3 + $0x214] sm:$0xf] %v1906_v7  ;;  %v2006_v41 = vrot.slane %v1953_v39, 5  ;;  %v2031_v46 = vsel %vm5217_vm13, %v2029_v12, %v2030_v27 }
 0x16a   : > { %v4760_v38 = vld [vmem:[#allocation3 + $0x20c] ss:$36 sps:$4 sm:$0xff]   ;;  %2077 = vst [vmem:[#allocation3 + $0x140] sm:$0xf] %v2028_v30  ;;  %v2009_v44 = vrot.slane %v1954_v32, 5  ;;  %v4019_v45 = vcombine.low %v2157_v36, %v2162_v37  ;;  %v3949_v50 = vrot.slane %v1964_v35, 9 }
 0x16b   : > { %1948 = vst [vmem:[#allocation3 + $0x238] sm:$0xf] %v1916_v40  ;;  %v1965_v47 = vld [vmem:[#allocation2 + $0x58] sm:$0xf]  ;;  %v1966_v49 = vld [vmem:[#allocation2 + $0x5c] sm:$0x1]  ;;  %3391 = vmatprep.mubr.bf16.mxu0 %v4760_v38  ;;  %v2007_v52 = vsel %vm5217_vm13, %v3945_v33, %v2006_v41 }
 0x16c   : > { %2078 = vst [vmem:[#allocation3 + $0x164] sm:$0xf] %v2031_v46  ;;  %v2008_v53 = vrot.slane %v2006_v41, 4  ;;  %v2034_v8 = vrot.slane %v1965_v47, 5  ;;  %v2037_v54 = vrot.slane %v1966_v49, 5  ;;  %3392 = vmatmul.mubr.bf16.gmra.mxu0 %v4019_v45 }
 0x16d   : > { %v1955_v20 = vld [vmem:[#allocation2 + $0x30] sm:$0xe]  ;;  %2071 = vst [vmem:[#allocation3 + $0x68] sm:$0xf] %v2007_v52  ;;  %v1956_v55 = vld [vmem:[#allocation2 + $0x34] sm:$0xf] }
 0x16e   : > { %v1957_v56 = vld [vmem:[#allocation2 + $0x38] sm:$0x1]  ;;  %v3946_v57 = vrot.slane %v1955_v20, 9  ;;  %v2010_v31 = vsel %vm5217_vm13, %v2008_v53, %v2009_v44  ;;  %v2035_v58 = vsel %vm5217_vm13, %v3949_v50, %v2034_v8  ;;  %v2036_v29 = vrot.slane %v2034_v8, 4  ;;  %v1967_v60 = vld [vmem:[#allocation2 + $0x60] sm:$0xe] }
 0x16f   : > { %v2013_v59 = vrot.slane %v1956_v55, 5  ;;  %2072 = vst [vmem:[#allocation3 + $0x8c] sm:$0xf] %v2010_v31  ;;  %2079 = vst [vmem:[#allocation3 + $0x188] sm:$0xf] %v2035_v58  ;;  %v2016_v61 = vrot.slane %v1957_v56, 5 }
 0x170   : > { %v1968_v62 = vld [vmem:[#allocation2 + $0x64] sm:$0xf]  ;;  %v1969_v0 = vld [vmem:[#allocation2 + $0x68] sm:$0x1]  ;;  %v3950_v2 = vrot.slane %v1967_v60, 9  ;;  %v2038_v4 = vsel %vm5217_vm13, %v2036_v29, %v2037_v54 }
 0x171   : > { %v4766_v3 = vld [vmem:[#allocation3 + $0x20] ss:$36 sps:$4 sm:$0xff]   ;;  %v2014_v5 = vsel %vm5217_vm13, %v3946_v57, %v2013_v59  ;;  %v2015_v6 = vrot.slane %v2013_v59, 4  ;;  %v2041_v9 = vrot.slane %v1968_v62, 5  ;;  %2080 = vst [vmem:[#allocation3 + $0x1ac] sm:$0xf] %v2038_v4 }
 0x172   : > { %2073 = vst [vmem:[#allocation3 + $0xb0] sm:$0xf] %v2014_v5  ;;  %v2044_v10 = vrot.slane %v1969_v0, 5  ;;  %v1958_v42 = vld [vmem:[#allocation2 + $0x3c] sm:$0xe]  ;;  %4538 = vmatprep.mubr.bf16.mxu0 %v4766_v3 }
 0x173   : > { %v4762_v11 = vld [vmem:[#allocation3 + $0x214] ss:$36 sps:$4 sm:$0xff]   ;;  %v2017_v43 = vsel %vm5217_vm13, %v2015_v6, %v2016_v61  ;;  %v2042_v51 = vsel %vm5217_vm13, %v3950_v2, %v2041_v9  ;;  %v2043_v13 = vrot.slane %v2041_v9, 4  ;;  %v4767_v14 = vld [vmem:[#allocation3 + $0x140] ss:$36 sps:$4 sm:$0xff]   ;;  %v3947_v16 = vrot.slane %v1958_v42, 9 }
 0x174   : > { %v4764_v48 = vld [vmem:[#allocation3 + $0x210] ss:$36 sps:$4 sm:$0xff]   ;;  %2074 = vst [vmem:[#allocation3 + $0xd4] sm:$0xf] %v2017_v43  ;;  %2081 = vst [vmem:[#allocation3 + $0x1d0] sm:$0xf] %v2042_v51  ;;  %3488 = vmatprep.mubr.bf16.mxu1 %v4762_v11 }
 0x175   : > { %v1959_v34 = vld [vmem:[#allocation2 + $0x40] sm:$0xf]  ;;  %v2045_v1 = vsel %vm5217_vm13, %v2043_v13, %v2044_v10  ;;  %v1960_v15 = vld [vmem:[#allocation2 + $0x44] sm:$0x1]  ;;  %3489 = vmatmul.mubr.bf16.gmra.mxu1 %v4764_v48  ;;  %v1970_v19 = vld [vmem:[#allocation2 + $0x6c] sm:$0xe] }
 0x176   : > { %v2020_v17 = vrot.slane %v1959_v34, 5  ;;  %2082 = vst [vmem:[#allocation3 + $0x1f4] sm:$0xf] %v2045_v1  ;;  %v2023_v18 = vrot.slane %v1960_v15, 5  ;;  %v1971_v21 = vld [vmem:[#allocation2 + $0x70] sm:$0xf]  ;;  %4546 = vmatprep.mubr.bf16.mxu1 %v4767_v14 }
 0x177   : > { %v4768_v22 = vld [vmem:[#allocation3 + $0x68] ss:$36 sps:$4 sm:$0xff]   ;;  %v1972_v25 = vld [vmem:[#allocation2 + $0x74] sm:$0x1]  ;;  %v3951_v26 = vrot.slane %v1970_v19, 9  ;;  %v2048_v27 = vrot.slane %v1971_v21, 5 }
 0x178   : > { %v2021_v23 = vsel %vm5217_vm13, %v3947_v16, %v2020_v17  ;;  %v2022_v24 = vrot.slane %v2020_v17, 4  ;;  %4539 = vmatmul.mubr.bf16.vlgmr.msra.gmra.mxu0 %v4768_v22  ;;  %v4769_v28 = vld [vmem:[#allocation3 + $0x188] ss:$36 sps:$4 sm:$0xff]   ;;  %v2051_v12 = vrot.slane %v1972_v25, 5 }
 0x179   : > { %2075 = vst [vmem:[#allocation3 + $0xf8] sm:$0xf] %v2021_v23  ;;  %v2049_v7 = vsel %vm5217_vm13, %v3951_v26, %v2048_v27  ;;  %v2050_v30 = vrot.slane %v2048_v27, 4 }
 0x17a   : > { %v2024_v39 = vsel %vm5217_vm13, %v2022_v24, %v2023_v18  ;;  %2083 = vst [vmem:[#allocation3 + $0x218] sm:$0xf] %v2049_v7 }
 0x17b   : > { %v4770_v32 = vld [vmem:[#allocation3 + $0xb0] ss:$36 sps:$4 sm:$0xff]   ;;  %2076 = vst [vmem:[#allocation3 + $0x11c] sm:$0xf] %v2024_v39  ;;  %v2052_v33 = vsel %vm5217_vm13, %v2050_v30, %v2051_v12 }
 0x17c   : > { %4542 = vmatprep.mubr.bf16.mxu0 %v4770_v32  ;;  %2084 = vst [vmem:[#allocation3 + $0x23c] sm:$0xf] %v2052_v33 }
 0x17d   : > { %v4771_v35 = vld [vmem:[#allocation3 + $0x1d0] ss:$36 sps:$4 sm:$0xff]   ;;  %4547 = vmatmul.mubr.bf16.vlgmr.msra.gmra.mxu1 %v4769_v28 }
 0x17e   : > { %4550 = vmatprep.mubr.bf16.mxu1 %v4771_v35 }
 0x17f   : > { %v4266_v40 = vpop.f32.mrf.mxu0 }
 0x180   : > { %v4330_v38 = vpop.f32.mrf.mxu1 }
 0x181   : > { %v4267_v45 = vpop.f32.mrf.mxu0 }
 0x182   : > { %v4772_v36 = vld [vmem:[#allocation3 + $0xf8] ss:$36 sps:$4 sm:$0xff]   ;;  %v4331_v41 = vpop.f32.mrf.mxu1  ;;  %v4268_v47 = vadd.f32 %v4267_v45, %v4266_v40 }
 0x183   : > { %4543 = vmatmul.mubr.bf16.gmra.mxu0 %v4772_v36  ;;  %v4773_v37 = vld [vmem:[#allocation3 + $0x218] ss:$36 sps:$4 sm:$0xff]   ;;  %v4332_v44 = vadd.f32 %v4331_v41, %v4330_v38  ;;  %v4269_v49 = vpop.f32.mrf.mxu0 }
 0x184   : > { %v4333_v46 = vpop.f32.mrf.mxu1 }
 0x185   : > { %4551 = vmatmul.mubr.bf16.gmra.mxu1 %v4773_v37  ;;  %v5584_v63 = vadd.f32 %v4332_v44, %v4268_v47  ;;  %v4270_v53 = vpop.f32.mrf.mxu0 }
 0x186   : > { %v4334_v50 = vpop.f32.mrf.mxu1  ;;  %v4271_v54 = vadd.f32 %v4270_v53, %v4269_v49 }
 0x187   : > { %v4335_v52 = vadd.f32 %v4334_v50, %v4333_v46 }
 0x188   : > { %v4336_v8 = vpop.f32.mrf.mxu1 }
 0x189   : > { %v4272_v20 = vpop.f32.mrf.mxu0  ;;  %v5586_v56 = vadd.f32 %v4335_v52, %v4271_v54 }
 0x18a   : > { %v4337_v55 = vpop.f32.mrf.mxu1 }
 0x18b   : > { %v4338_v57 = vadd.f32 %v4337_v55, %v4336_v8  ;;  %v4273_v31 = vpop.f32.mrf.mxu0 }
 0x18c   : > { %v4339_v58 = vpop.f32.mrf.mxu1  ;;  %v4274_v29 = vadd.f32 %v4273_v31, %v4272_v20 }
 0x18d   : > { %v4275_v59 = vpop.f32.mrf.mxu0 }
 0x18e   : > { %v4340_v60 = vpop.f32.mrf.mxu1  ;;  %v5588_v61 = vadd.f32 %v4338_v57, %v4274_v29 }
 0x18f   : > { %v4341_v62 = vadd.f32 %v4340_v60, %v4339_v58  ;;  %v4276_v0 = vpop.f32.mrf.mxu0 }
 0x190   : > { %v4277_v2 = vadd.f32 %v4276_v0, %v4275_v59  ;;  %v4342_v3 = vpop.f32.mrf.mxu1 }
 0x192   : > { %v5590_v4 = vadd.f32 %v4341_v62, %v4277_v2  ;;  %v4278_v5 = vpop.f32.mrf.mxu0  ;;  %v4343_v6 = vpop.f32.mrf.mxu1 }
 0x193   : > { %v4344_v10 = vadd.f32 %v4343_v6, %v4342_v3 }
 0x194   : > { %v4279_v9 = vpop.f32.mrf.mxu0  ;;  %v4345_v11 = vpop.f32.mrf.mxu1 }
 0x195   : > { %v4280_v42 = vadd.f32 %v4279_v9, %v4278_v5 }
 0x196   : > { %v4281_v48 = vpop.f32.mrf.mxu0  ;;  %v4346_v51 = vpop.f32.mrf.mxu1 }
 0x197   : > { %v5592_v43 = vadd.f32 %v4344_v10, %v4280_v42  ;;  %v4347_v14 = vadd.f32 %v4346_v51, %v4345_v11 }
 0x198   : > { %v4282_v13 = vpop.f32.mrf.mxu0 }
 0x199   : > { %v4283_v34 = vadd.f32 %v4282_v13, %v4281_v48  ;;  %v4348_v15 = vpop.f32.mrf.mxu1 }
 0x19b   : > { %v5594_v1 = vadd.f32 %v4347_v14, %v4283_v34  ;;  %v4349_v17 = vpop.f32.mrf.mxu1 }
 0x19c   : > { %v4350_v19 = vadd.f32 %v4349_v17, %v4348_v15 }
 0x19d   : > { %v4284_v16 = vpop.f32.mrf.mxu0  ;;  %v4351_v22 = vpop.f32.mrf.mxu1 }
 0x19f   : > { %v4285_v18 = vpop.f32.mrf.mxu0  ;;  %v4352_v25 = vpop.f32.mrf.mxu1 }
 0x1a0   : > { %v4286_v21 = vadd.f32 %v4285_v18, %v4284_v16  ;;  %v4353_v27 = vadd.f32 %v4352_v25, %v4351_v22 }
 0x1a1   : > { %v4287_v23 = vpop.f32.mrf.mxu0 }
 0x1a2   : > { %v5596_v24 = vadd.f32 %v4350_v19, %v4286_v21 }
 0x1a3   : > { %v4288_v26 = vpop.f32.mrf.mxu0  ;;  %v4354_v7 = vpop.f32.mrf.mxu1 }
 0x1a4   : > { %5735 = vst [vmem:[#allocation4_spill] sm:$0xff] %v5596_v24  ;;  %v4289_v28 = vadd.f32 %v4288_v26, %v4287_v23 }
 0x1a5   : > { %v4355_v12 = vpop.f32.mrf.mxu1 }
 0x1a6   : > { %v5598_v39 = vadd.f32 %v4353_v27, %v4289_v28  ;;  %v4356_v32 = vadd.f32 %v4355_v12, %v4354_v7 }
 0x1a7   : > { %v4290_v30 = vpop.f32.mrf.mxu0  ;;  %v4357_v35 = vpop.f32.mrf.mxu1 }
 0x1a8   : > { %5736 = vst [vmem:[#allocation5_spill] sm:$0xff] %v5598_v39 }
 0x1a9   : > { %v4291_v33 = vpop.f32.mrf.mxu0  ;;  %v4358_v38 = vpop.f32.mrf.mxu1 }
 0x1aa   : > { %v4292_v36 = vadd.f32 %v4291_v33, %v4290_v30  ;;  %v4359_v41 = vadd.f32 %v4358_v38, %v4357_v35 }
 0x1ab   : > { %v4293_v37 = vpop.f32.mrf.mxu0 }
 0x1ac   : > { %v5600_v40 = vadd.f32 %v4356_v32, %v4292_v36 }
 0x1ad   : > { %v4294_v44 = vpop.f32.mrf.mxu0 }
 0x1ae   : > { %5737 = vst [vmem:[#allocation6_spill] sm:$0xff] %v5600_v40  ;;  %v4295_v45 = vadd.f32 %v4294_v44, %v4293_v37 }
 0x1af   : > { %v4360_v49 = vpop.f32.mrf.mxu1 }
 0x1b0   : > { %v5602_v46 = vadd.f32 %v4359_v41, %v4295_v45 }
 0x1b1   : > { %v4361_v53 = vpop.f32.mrf.mxu1 }
 0x1b2   : > { %5738 = vst [vmem:[#allocation7_spill] sm:$0xff] %v5602_v46  ;;  %v4296_v47 = vpop.f32.mrf.mxu0  ;;  %v4362_v8 = vadd.f32 %v4361_v53, %v4360_v49 }
 0x1b3   : > { %v4363_v20 = vpop.f32.mrf.mxu1 }
 0x1b4   : > { %v4297_v50 = vpop.f32.mrf.mxu0 }
 0x1b5   : > { %v4298_v52 = vadd.f32 %v4297_v50, %v4296_v47  ;;  %v4364_v58 = vpop.f32.mrf.mxu1 }
 0x1b6   : > { %v4299_v54 = vpop.f32.mrf.mxu0  ;;  %v4365_v29 = vadd.f32 %v4364_v58, %v4363_v20 }
 0x1b7   : > { %v5604_v55 = vadd.f32 %v4362_v8, %v4298_v52 }
 0x1b8   : > { %v4300_v57 = vpop.f32.mrf.mxu0 }
 0x1b9   : > { %5739 = vst [vmem:[#allocation8_spill] sm:$0xff] %v5604_v55  ;;  %v4301_v31 = vadd.f32 %v4300_v57, %v4299_v54  ;;  %v4366_v60 = vpop.f32.mrf.mxu1 }
 0x1bb   : > { %v5606_v59 = vadd.f32 %v4365_v29, %v4301_v31  ;;  %v4367_v0 = vpop.f32.mrf.mxu1 }
 0x1bc   : > { %v4368_v2 = vadd.f32 %v4367_v0, %v4366_v60 }
 0x1bd   : > { %5740 = vst [vmem:[#allocation9_spill] sm:$0xff] %v5606_v59  ;;  %v4302_v62 = vpop.f32.mrf.mxu0  ;;  %v4369_v5 = vpop.f32.mrf.mxu1 }
 0x1bf   : > { %v4303_v3 = vpop.f32.mrf.mxu0  ;;  %v4370_v10 = vpop.f32.mrf.mxu1 }
 0x1c0   : > { %v4304_v6 = vadd.f32 %v4303_v3, %v4302_v62  ;;  %v4371_v11 = vadd.f32 %v4370_v10, %v4369_v5 }
 0x1c1   : > { %v4305_v9 = vpop.f32.mrf.mxu0 }
 0x1c2   : > { %v5608_v42 = vadd.f32 %v4368_v2, %v4304_v6 }
 0x1c3   : > { %v4306_v48 = vpop.f32.mrf.mxu0 }
 0x1c4   : > { %5741 = vst [vmem:[#allocation10_spill] sm:$0xff] %v5608_v42  ;;  %v4307_v51 = vadd.f32 %v4306_v48, %v4305_v9  ;;  %v4372_v34 = vpop.f32.mrf.mxu1 }
 0x1c6   : > { %v5610_v13 = vadd.f32 %v4371_v11, %v4307_v51  ;;  %v4373_v17 = vpop.f32.mrf.mxu1 }
 0x1c7   : > { %v4374_v18 = vadd.f32 %v4373_v17, %v4372_v34 }
 0x1c8   : > { %5742 = vst [vmem:[#allocation11_spill] sm:$0xff] %v5610_v13  ;;  %v4308_v14 = vpop.f32.mrf.mxu0  ;;  %v4375_v21 = vpop.f32.mrf.mxu1 }
 0x1ca   : > { %v4309_v15 = vpop.f32.mrf.mxu0  ;;  %v4376_v26 = vpop.f32.mrf.mxu1 }
 0x1cb   : > { %v4310_v16 = vadd.f32 %v4309_v15, %v4308_v14  ;;  %v4377_v27 = vadd.f32 %v4376_v26, %v4375_v21 }
 0x1cc   : > { %v4311_v19 = vpop.f32.mrf.mxu0 }
 0x1cd   : > { %v5612_v22 = vadd.f32 %v4374_v18, %v4310_v16 }
 0x1ce   : > { %v4312_v23 = vpop.f32.mrf.mxu0 }
 0x1cf   : > { %5743 = vst [vmem:[#allocation12_spill] sm:$0xff] %v5612_v22  ;;  %v4313_v25 = vadd.f32 %v4312_v23, %v4311_v19 }
 0x1d1   : > { %v5614_v28 = vadd.f32 %v4377_v27, %v4313_v25 }
 0x1d2   : > { %v4394_v7 = vpop.f32.mrf.mxu0 }
 0x1d3   : > { %5744 = vst [vmem:[#allocation13_spill] sm:$0xff] %v5614_v28 }
 0x1d4   : > { %v4395_v30 = vpop.f32.mrf.mxu0 }
 0x1d5   : > { %v4396_v12 = vadd.f32 %v4395_v30, %v4394_v7 }
 0x1d6   : > { %v4397_v32 = vpop.f32.mrf.mxu0 }
 0x1d7   : > { %v5617_v33 = vadd.f32 %v4396_v12, %v5584_v63 }
 0x1d8   : > { %v4398_v36 = vpop.f32.mrf.mxu0 }
 0x1d9   : > { %v4399_v39 = vadd.f32 %v4398_v36, %v4397_v32 }
 0x1db   : > { %v4458_v35 = vpop.f32.mrf.mxu1 }
 0x1dd   : > { %v4459_v37 = vpop.f32.mrf.mxu1 }
 0x1de   : > { %v4460_v24 = vadd.f32 %v4459_v37, %v4458_v35 }
 0x1df   : > { %v4461_v38 = vpop.f32.mrf.mxu1 }
 0x1e1   : > { %v4400_v41 = vpop.f32.mrf.mxu0  ;;  %v4462_v45 = vpop.f32.mrf.mxu1 }
 0x1e3   : > { %v4401_v44 = vpop.f32.mrf.mxu0 }
 0x1e4   : > { %v4402_v55 = vadd.f32 %v4401_v44, %v4400_v41 }
 0x1e5   : > { %v4403_v47 = vpop.f32.mrf.mxu0 }
 0x1e7   : > { %v4464_v49 = vpop.f32.mrf.mxu1  ;;  %v4404_v50 = vpop.f32.mrf.mxu0 }
 0x1e8   : > { %v4405_v46 = vadd.f32 %v4404_v50, %v4403_v47 }
 0x1e9   : > { %v4465_v52 = vpop.f32.mrf.mxu1 }
 0x1eb   : > { %v4467_v53 = vpop.f32.mrf.mxu1 }
 0x1ed   : > { %v4406_v8 = vpop.f32.mrf.mxu0  ;;  %v4468_v20 = vpop.f32.mrf.mxu1 }
 0x1ef   : > { %v4407_v54 = vpop.f32.mrf.mxu0 }
 0x1f0   : > { %v4408_v40 = vadd.f32 %v4407_v54, %v4406_v8 }
 0x1f1   : > { %v4409_v57 = vpop.f32.mrf.mxu0 }
 0x1f2   : > { %v3354_v32 = vadd.f32 %v4408_v40, %v5592_v43 }
 0x1f3   : > { %v4470_v31 = vpop.f32.mrf.mxu1  ;;  %v4410_v58 = vpop.f32.mrf.mxu0 }
 0x1f4   : > { %v4411_v41 = vadd.f32 %v4410_v58, %v4409_v57 }
 0x1f5   : > { %v4471_v63 = vpop.f32.mrf.mxu1 }
 0x1f6   : > { %v4472_v36 = vadd.f32 %v4471_v63, %v4470_v31  ;;  %v5761_v31 = vld [vmem:[#allocation6_spill] sm:$0xff] }
 0x1f7   : > { %v5619_v29 = vpop.f32.mrf.mxu1 }
 0x1f8   : > { %5745 = vst [vmem:[#allocation14_spill] sm:$0xff] %v5619_v29  ;;  %v5651_v40 = vadd.f32 %v4472_v36, %v3354_v32 }
 0x1f9   : > { %v4412_v60 = vpop.f32.mrf.mxu0  ;;  %v5621_v0 = vpop.f32.mrf.mxu1 }
 0x1fa   : > { %5746 = vst [vmem:[#allocation15_spill] sm:$0xff] %v5621_v0  ;;  %v4463_v0 = vadd.f32 %v4462_v45, %v4461_v38 }
 0x1fb   : > { %v4413_v62 = vpop.f32.mrf.mxu0 }
 0x1fc   : > { %v4414_v47 = vadd.f32 %v4413_v62, %v4412_v60  ;;  %v5763_v60 = vld [vmem:[#allocation8_spill] sm:$0xff] }
 0x1fd   : > { %v4415_v2 = vpop.f32.mrf.mxu0 }
 0x1ff   : > { %v4416_v5 = vpop.f32.mrf.mxu0  ;;  %v5756_v45 = vld [vmem:[#allocation14_spill] sm:$0xff] }
 0x200   : > { %v5623_v3 = vpop.f32.mrf.mxu1 }
 0x201   : > { %5747 = vst [vmem:[#allocation16_spill] sm:$0xff] %v5623_v3 }
 0x202   : > { %v5625_v6 = vpop.f32.mrf.mxu1 }
 0x203   : > { %5748 = vst [vmem:[#allocation17_spill] sm:$0xff] %v5625_v6 }
 0x204   : > { %v5627_v9 = vpop.f32.mrf.mxu1 }
 0x205   : > { %5749 = vst [vmem:[#allocation18_spill] sm:$0xff] %v5627_v9  ;;  %v4418_v10 = vpop.f32.mrf.mxu0 }
 0x206   : > { %v5629_v48 = vpop.f32.mrf.mxu1 }
 0x207   : > { %v4419_v11 = vpop.f32.mrf.mxu0  ;;  %5750 = vst [vmem:[#allocation19_spill] sm:$0xff] %v5629_v48 }
 0x208   : > { %v4420_v50 = vadd.f32 %v4419_v11, %v4418_v10  ;;  %v5759_v57 = vld [vmem:[#allocation16_spill] sm:$0xff] }
 0x209   : > { %v4421_v51 = vpop.f32.mrf.mxu0 }
 0x20b   : > { %v4422_v14 = vpop.f32.mrf.mxu0 }
 0x20c   : > { %v4423_v8 = vadd.f32 %v4422_v14, %v4421_v51  ;;  %v5765_v51 = vld [vmem:[#allocation5_spill] sm:$0xff]  ;;  %v5766_v32 = vld [vmem:[#allocation18_spill] sm:$0xff] }
 0x20e   : > { %v4482_v34 = vpop.f32.mrf.mxu1 }
 0x210   : > { %v4483_v15 = vpop.f32.mrf.mxu1 }
 0x212   : > { %v4485_v17 = vpop.f32.mrf.mxu1 }
 0x213   : > { %v4424_v16 = vpop.f32.mrf.mxu0 }
 0x214   : > { %v4486_v19 = vpop.f32.mrf.mxu1 }
 0x215   : > { %v4425_v18 = vpop.f32.mrf.mxu0  ;;  %v4487_v63 = vadd.f32 %v4486_v19, %v4485_v17 }
 0x216   : > { %v4426_v54 = vadd.f32 %v4425_v18, %v4424_v16 }
 0x217   : > { %v4427_v21 = vpop.f32.mrf.mxu0 }
 0x219   : > { %v4428_v25 = vpop.f32.mrf.mxu0 }
 0x21a   : > { %v4488_v23 = vpop.f32.mrf.mxu1  ;;  %v4429_v37 = vadd.f32 %v4428_v25, %v4427_v21 }
 0x21c   : > { %v4489_v26 = vpop.f32.mrf.mxu1 }
 0x21e   : > { %v4491_v27 = vpop.f32.mrf.mxu1 }
 0x21f   : > { %v4430_v7 = vpop.f32.mrf.mxu0 }
 0x220   : > { %v4492_v12 = vpop.f32.mrf.mxu1 }
 0x221   : > { %v4431_v30 = vpop.f32.mrf.mxu0  ;;  %v4493_v10 = vadd.f32 %v4492_v12, %v4491_v27 }
 0x222   : > { %v4432_v11 = vadd.f32 %v4431_v30, %v4430_v7  ;;  %v5768_v30 = vld [vmem:[#allocation10_spill] sm:$0xff] }
 0x223   : > { %v5631_v13 = vpop.f32.mrf.mxu0 }
 0x224   : > { %5751 = vst [vmem:[#allocation20_spill] sm:$0xff] %v5631_v13  ;;  %v3341_v13 = vadd.f32 %v4399_v39, %v5586_v56  ;;  %v3386_v12 = vadd.f32 %v4432_v11, %v5768_v30 }
 0x225   : > { %v5635_v22 = vpop.f32.mrf.mxu0 }
 0x226   : > { %v5633_v28 = vpop.f32.mrf.mxu1  ;;  %5753 = vst [vmem:[#allocation22_spill] sm:$0xff] %v5635_v22  ;;  %v4466_v22 = vadd.f32 %v4465_v52, %v4464_v49  ;;  %v5757_v49 = vld [vmem:[#allocation15_spill] sm:$0xff] }
 0x227   : > { %5752 = vst [vmem:[#allocation21_spill] sm:$0xff] %v5633_v28  ;;  %v3346_v28 = vadd.f32 %v4402_v55, %v5588_v61  ;;  %v3435_v61 = vadd.f32 %v4460_v24, %v5617_v33  ;;  %v3438_v55 = vadd.f32 %v4463_v0, %v3341_v13  ;;  %v5655_v52 = vadd.f32 %v5757_v49, %v5756_v45 }
 0x228   : > { %v5637_v42 = vpop.f32.mrf.mxu1  ;;  %v3370_v24 = vadd.f32 %v4420_v50, %v5761_v31  ;;  %v4484_v33 = vadd.f32 %v4483_v15, %v4482_v34  ;;  %v4490_v0 = vadd.f32 %v4489_v26, %v4488_v23  ;;  %v5767_v34 = vld [vmem:[#allocation19_spill] sm:$0xff] }
 0x229   : > { %5754 = vst [vmem:[#allocation23_spill] sm:$0xff] %v5637_v42  ;;  %v3349_v42 = vadd.f32 %v4405_v46, %v5590_v4  ;;  %v3443_v56 = vadd.f32 %v4466_v22, %v3346_v28  ;;  %v5649_v4 = vadd.f32 %v4411_v41, %v5594_v1  ;;  %v4417_v46 = vadd.f32 %v4416_v5, %v4415_v2  ;;  %v5760_v22 = vld [vmem:[#allocation17_spill] sm:$0xff]  ;;  %v5762_v1 = vld [vmem:[#allocation7_spill] sm:$0xff] }
 0x22a   : > { %v5639_v48 = vpop.f32.mrf.mxu1  ;;  %v4478_v28 = vadd.f32 %v5760_v22, %v5759_v57  ;;  %v3373_v58 = vadd.f32 %v4423_v8, %v5762_v1  ;;  %v5764_v2 = vld [vmem:[#allocation9_spill] sm:$0xff]  ;;  %v4481_v15 = vadd.f32 %v5767_v34, %v5766_v32  ;;  %v3467_v23 = vadd.f32 %v4484_v33, %v3370_v24 }
 0x22b   : > { %5755 = vst [vmem:[#allocation24_spill] sm:$0xff] %v5639_v48  ;;  %v4469_v48 = vadd.f32 %v4468_v20, %v4467_v53  ;;  %v5758_v53 = vld [vmem:[#allocation4_spill] sm:$0xff]  ;;  %v3381_v5 = vadd.f32 %v4429_v37, %v5764_v2  ;;  %v3365_v14 = vadd.f32 %v4417_v46, %v5765_v51 }
 0x22c   : > { %v4436_v9 = vpop.f32.mrf.mxu0  ;;  %v5641_v6 = vpop.f32.mrf.mxu1  ;;  %v3362_v20 = vadd.f32 %v4414_v47, %v5758_v53  ;;  %v3470_v7 = vadd.f32 %v4487_v63, %v3373_v58  ;;  %v5769_v50 = vld [vmem:[#allocation20_spill] sm:$0xff] }
 0x22d   : > { %v3446_v43 = vadd.f32 %v4469_v48, %v3349_v42  ;;  %v3378_v42 = vadd.f32 %v4426_v54, %v5763_v60  ;;  %v5770_v8 = vld [vmem:[#allocation22_spill] sm:$0xff] }
 0x22e   : > { %v4437_v59 = vpop.f32.mrf.mxu0  ;;  %v3459_v41 = vadd.f32 %v4478_v28, %v3362_v20  ;;  %v4435_v54 = vadd.f32 %v5770_v8, %v5769_v50  ;;  %v5773_v58 = vld [vmem:[#allocation21_spill] sm:$0xff] }
 0x22f   : > { %v4438_v17 = vadd.f32 %v4437_v59, %v4436_v9  ;;  %v3475_v37 = vadd.f32 %v4490_v0, %v3378_v42  ;;  %v5771_v9 = vld [vmem:[#allocation12_spill] sm:$0xff] }
 0x230   : > { %v4439_v3 = vpop.f32.mrf.mxu0  ;;  %v5774_v63 = vld [vmem:[#allocation23_spill] sm:$0xff] }
 0x231   : > { %v3394_v46 = vadd.f32 %v4438_v17, %v5771_v9  ;;  %v4496_v60 = vadd.f32 %v5774_v63, %v5773_v58 }
 0x232   : > { %v4440_v29 = vpop.f32.mrf.mxu0  ;;  %v5776_v11 = vld [vmem:[#allocation24_spill] sm:$0xff] }
 0x233   : > { %v4441_v19 = vadd.f32 %v4440_v29, %v4439_v3 }
 0x235   : > { %v4500_v44 = vpop.f32.mrf.mxu1 }
 0x237   : > { %v4501_v35 = vpop.f32.mrf.mxu1 }
 0x238   : > { %v4540_v39 = vpop.f32.mrf.mxu0  ;;  %v4502_v53 = vadd.f32 %v4501_v35, %v4500_v44 }
 0x239   : > { %v4503_v38 = vpop.f32.mrf.mxu1  ;;  %v3540_v16 = vadd.f32 %v4540_v39, %v3443_v56  ;;  %v3478_v56 = vadd.f32 %v4493_v10, %v3381_v5  ;;  %v5775_v5 = vld [vmem:[#allocation11_spill] sm:$0xff] }
 0x23a   : > { %v3531_v13 = vpop.f32.mrf.mxu0  ;;  %v3389_v10 = vadd.f32 %v4435_v54, %v5775_v5  ;;  %v3491_v34 = vadd.f32 %v4502_v53, %v3394_v46 }
 0x23b   : > { %v4504_v62 = vpop.f32.mrf.mxu1  ;;  %v3532_v21 = vadd.f32 %v3531_v13, %v3435_v61  ;;  %v3698_v20 = vmul.f32 %v3540_v16, %v3540_v16 }
 0x23c   : > { %v4541_v48 = vpop.f32.mrf.mxu0  ;;  %v4505_v24 = vadd.f32 %v4504_v62, %v4503_v38  ;;  %v3462_v62 = vadd.f32 %v4481_v15, %v3365_v14 }
 0x23d   : > { %v4548_v18 = vpop.f32.mrf.mxu1  ;;  %v3543_v25 = vadd.f32 %v4541_v48, %v3446_v43  ;;  %v3696_v39 = vmul.f32 %v3532_v21, %v3532_v21  ;;  %v5772_v43 = vld [vmem:[#allocation13_spill] sm:$0xff]  ;;  %v4499_v48 = vadd.f32 %v5641_v6, %v5776_v11  ;;  %v3454_v6 = vadd.f32 %v5655_v52, %v5649_v4 }
 0x23e   : > { %v3534_v36 = vpop.f32.mrf.mxu0  ;;  %v3397_v45 = vadd.f32 %v4441_v19, %v5772_v43 }
 0x23f   : > { %v3563_v26 = vpop.f32.mrf.mxu1  ;;  %v4203_v47 = vpack.c.bf16 %v3543_v25, %v3540_v16  ;;  %v3535_v27 = vadd.f32 %v3534_v36, %v3438_v55  ;;  %v5673_v55 = vadd.f32 %v4548_v18, %v3475_v37  ;;  %v3699_v42 = vmul.f32 %v3543_v25, %v3543_v25 }
 0x240   : > { %v3564_v13 = vadd.f32 %v3563_v26, %v3467_v23  ;;  %v3494_v19 = vadd.f32 %v4505_v24, %v3397_v45  ;;  %v3483_v23 = vadd.f32 %v4496_v60, %v3386_v12 }
 0x241   : > { %4243 = vst [vmem:[%s4960_s16 + $0x8] sm:$0xff] %v4203_v47   ;;  %v4549_v61 = vpop.f32.mrf.mxu1  ;;  %v4198_v59 = vpack.c.bf16 %v3535_v27, %v3532_v21  ;;  %v3674_v29 = vadd.f32 %v3535_v27, %v3532_v21  ;;  %v3697_v3 = vmul.f32 %v3535_v27, %v3535_v27  ;;  %v3486_v27 = vadd.f32 %v4499_v48, %v3389_v10 }
 0x242   : > { %v5675_v49 = vadd.f32 %v4549_v61, %v3478_v56  ;;  %v3704_v9 = vmul.f32 %v3564_v13, %v3564_v13 }
 0x243   : > { %4199 = vst [vmem:[%s4960_s16] sm:$0xff] %v4198_v59   ;;  %v3675_v57 = vadd.f32 %v3674_v29, %v3540_v16  ;;  %v3712_v22 = vadd.f32 %v3697_v3, %v3696_v39  ;;  %v3566_v28 = vpop.f32.mrf.mxu1  ;;  %v4544_v31 = vpop.f32.mrf.mxu0 }
 0x244   : > { %v4223_v33 = vpack.c.bf16 %v5675_v49, %v5673_v55  ;;  %v3567_v1 = vadd.f32 %v3566_v28, %v3470_v7  ;;  %v3556_v32 = vadd.f32 %v4544_v31, %v3459_v41  ;;  %v3707_v31 = vmul.f32 %v5675_v49, %v5675_v49 }
 0x245   : > { %v3713_v0 = vadd.f32 %v3712_v22, %v3698_v20  ;;  %v4552_v44 = vpop.f32.mrf.mxu1  ;;  %v3547_v35 = vpop.f32.mrf.mxu0  ;;  %v3676_v2 = vadd.f32 %v3675_v57, %v3543_v25  ;;  %v3706_v57 = vmul.f32 %v5673_v55, %v5673_v55 }
 0x246   : > { %4247 = vst [vmem:[%s4960_s16 + $0x28] sm:$0xff] %v4223_v33   ;;  %v4218_v38 = vpack.c.bf16 %v3567_v1, %v3564_v13  ;;  %v3548_v51 = vadd.f32 %v3547_v35, %v5651_v40  ;;  %v3588_v15 = vadd.f32 %v4552_v44, %v3491_v34  ;;  %v3702_v52 = vmul.f32 %v3556_v32, %v3556_v32 }
 0x247   : > { %v3714_v16 = vadd.f32 %v3713_v0, %v3699_v42  ;;  %v3579_v18 = vpop.f32.mrf.mxu1  ;;  %v4545_v21 = vpop.f32.mrf.mxu0  ;;  %v3705_v45 = vmul.f32 %v3567_v1, %v3567_v1 }
 0x248   : > { %4246 = vst [vmem:[%s4960_s16 + $0x20] sm:$0xff] %v4218_v38   ;;  %v3559_v17 = vadd.f32 %v4545_v21, %v3462_v62  ;;  %v3677_v25 = vadd.f32 %v3676_v2, %v3548_v51  ;;  %v3700_v36 = vmul.f32 %v3548_v51, %v3548_v51  ;;  %v3580_v50 = vadd.f32 %v3579_v18, %v3483_v23 }
 0x249   : > { %v4553_v26 = vpop.f32.mrf.mxu1  ;;  %v3550_v14 = vpop.f32.mrf.mxu0  ;;  %v3710_v44 = vmul.f32 %v3588_v15, %v3588_v15 }
 0x24a   : > { %v4213_v40 = vpack.c.bf16 %v3559_v17, %v3556_v32  ;;  %v3591_v47 = vadd.f32 %v4553_v26, %v3494_v19  ;;  %v3715_v7 = vadd.f32 %v3714_v16, %v3700_v36  ;;  %v3551_v41 = vadd.f32 %v3550_v14, %v3454_v6 }
 0x24b   : > { %v3582_v30 = vpop.f32.mrf.mxu1  ;;  %v3703_v59 = vmul.f32 %v3559_v17, %v3559_v17  ;;  %v3708_v58 = vmul.f32 %v3580_v50, %v3580_v50 }
 0x24c   : > { %4245 = vst [vmem:[%s4960_s16 + $0x18] sm:$0xff] %v4213_v40   ;;  %v4233_v8 = vpack.c.bf16 %v3591_v47, %v3588_v15  ;;  %v3583_v54 = vadd.f32 %v3582_v30, %v3486_v27  ;;  %v4208_v12 = vpack.c.bf16 %v3551_v41, %v3548_v51  ;;  %v3678_v37 = vadd.f32 %v3677_v25, %v3551_v41 }
 0x24d   : > { %v3701_v56 = vmul.f32 %v3551_v41, %v3551_v41  ;;  %v3711_v2 = vmul.f32 %v3591_v47, %v3591_v47 }
 0x24e   : > { %4249 = vst [vmem:[%s4960_s16 + $0x38] sm:$0xff] %v4233_v8   ;;  %v4228_v4 = vpack.c.bf16 %v3583_v54, %v3580_v50  ;;  %4244 = vst [vmem:[%s4960_s16 + $0x10] sm:$0xff] %v4208_v12   ;;  %v3679_v39 = vadd.f32 %v3678_v37, %v3556_v32  ;;  %v3709_v42 = vmul.f32 %v3583_v54, %v3583_v54 }
 0x24f   : > { %v3716_v61 = vadd.f32 %v3715_v7, %v3701_v56 }
 0x250   : > { %4248 = vst [vmem:[%s4960_s16 + $0x30] sm:$0xff] %v4228_v4   ;;  %v3680_v29 = vadd.f32 %v3679_v39, %v3559_v17 }
 0x251   : > { %v3717_v3 = vadd.f32 %v3716_v61, %v3702_v52 }
 0x252   : > { %v3681_v46 = vadd.f32 %v3680_v29, %v3564_v13 }
 0x253   : > { %v3718_v43 = vadd.f32 %v3717_v3, %v3703_v59 }
 0x254   : > { %v3682_v20 = vadd.f32 %v3681_v46, %v3567_v1 }
 0x255   : > { %v3719_v53 = vadd.f32 %v3718_v43, %v3704_v9 }
 0x256   : > { %v3683_v22 = vadd.f32 %v3682_v20, %v5673_v55 }
 0x257   : > { %v3720_v28 = vadd.f32 %v3719_v53, %v3705_v45 }
 0x258   : > { %v3684_v24 = vadd.f32 %v3683_v22, %v5675_v49 }
 0x259   : > { %v3721_v33 = vadd.f32 %v3720_v28, %v3706_v57 }
 0x25a   : > { %v3685_v63 = vadd.f32 %v3684_v24, %v3580_v50 }
 0x25b   : > { %v3722_v60 = vadd.f32 %v3721_v33, %v3707_v31 }
 0x25c   : > { %v3686_v13 = vadd.f32 %v3685_v63, %v3583_v54 }
 0x25d   : > { %v3723_v0 = vadd.f32 %v3722_v60, %v3708_v58 }
 0x25e   : > { %v3687_v1 = vadd.f32 %v3686_v13, %v3588_v15 }
 0x25f   : > { %v3724_v35 = vadd.f32 %v3723_v0, %v3709_v42 }
 0x260   : > { %v3688_v5 = vadd.f32 %v3687_v1, %v3591_v47 }
 0x261   : > { %v3725_v55 = vadd.f32 %v3724_v35, %v3710_v44 }
 0x262   : > { %v3689_v10 = vrot.slane %v3688_v5, 4 }
 0x263   : > { %v3726_v11 = vadd.f32 %v3725_v55, %v3711_v2 }
 0x264   : > { %v3690_v48 = vadd.f32 %v3689_v10, %v3688_v5 }
 0x265   : > { %v3727_v38 = vrot.slane %v3726_v11, 4 }
 0x266   : > { %v3691_v49 = vrot.slane %v3690_v48, 2 }
 0x267   : > { %v3728_v62 = vadd.f32 %v3727_v38, %v3726_v11 }
 0x268   : > { %v3692_v51 = vadd.f32 %v3691_v49, %v3690_v48 }
 0x269   : > { %v3729_v16 = vrot.slane %v3728_v62, 2 }
 0x26a   : > { %v3693_v18 = vrot.slane %v3692_v51, 1 }
 0x26b   : > { %v3730_v21 = vadd.f32 %v3729_v16, %v3728_v62 }
 0x26c   : > { %v3694_v32 = vadd.f32 %v3693_v18, %v3692_v51 }
 0x26d   : > { %v3731_v34 = vrot.slane %v3730_v21, 1 }
 0x26e   : > { %3695 = vst [vmem:[%s4987_s8] sm:$0x1] %v3694_v32 }
 0x26f   : > { %v3732_v17 = vadd.f32 %v3731_v34, %v3730_v21 }
 0x271   : > { %3733 = vst [vmem:[%s4987_s8 + $0x1] sm:$0x1] %v3732_v17 }
 0x272 PF: > { %s16_s22 = sadd.s32 1, %s4812_s22   ;;  %s5777_s18 = smov %s4804_s20 }
 0x273   : > { %p13_p12 = scmp.ge.s32.totalorder %s16_s22, 6   ;;  %s5778_s19 = smov %s4808_s21 }
 0x274   : > { %s5779_s20 = smov %s5782_s23  ;;  %s5780_s21 = smov %s5786_s24 }
 0x275   :  { %15 = sbr.rel (!%p13_p12) target bundleno = 3 (0x3), region = 101 }

</bundles_post_ra>
